<compile_context>
chip_gen: v6e
topology: v6e:2x2x1
jax: 0.10.0
libtpu: 0.0.40
codegen_flags: <defaults>
</compile_context>

<pallas_src>
import functools

import jax
import jax.numpy as jnp
from jax.experimental import pallas as pl
from jax.experimental.pallas import tpu as pltpu


# ----------------------------------------------------------------------------
# Single fused kernel: all LSTM layers + final FC
# ----------------------------------------------------------------------------
def _fused_lstm_fc_kernel(x_ref, w_ih0_ref, w_ihr_ref, w_hh_ref, b_ref,
                          h0_ref, c0_ref, fc_w_ref, fc_b_ref,
                          out_ref, hn_ref, cn_ref,
                          seq_scr, gates_scr,
                          *, seq_len, batch, hidden, num_layers, input_size,
                          out_size):
    S, B, H, L, O = seq_len, batch, hidden, num_layers, out_size
    del input_size  # shapes are carried by the refs

    def project(x2d, w, bias_row):
        # Hoisted input projection + bias for a whole layer:
        # one (S*B, K) x (K, 4H) MXU call + one bulk VPU add, instead of S tiny
        # per-step matmuls and S dependent bias adds on the serial chain.
        gates_scr[...] = (jnp.dot(x2d, w, preferred_element_type=jnp.float32)
                          + bias_row)

    # Layer 0 input projection (raw input sequence, already flattened (S*B, D)).
    project(x_ref[...], w_ih0_ref[...], b_ref[0:1, :])

    h = None
    for l in range(L):
        if l > 0:
            # Project the previous layer's full output sequence in one matmul.
            project(seq_scr[...], w_ihr_ref[l - 1], b_ref[l:l + 1, :])

        w_hh = w_hh_ref[l]          # (H, 4H)  loaded once per layer
        h = h0_ref[l]               # (B, H)
        c = c0_ref[l]               # (B, H)

        # Serial recurrence, fully unrolled (S is small and static).
        for t in range(S):
            lo, hi = t * B, (t + 1) * B        # static, sublane-aligned (B = 8)
            gates = gates_scr[lo:hi, :] + jnp.dot(
                h, w_hh, preferred_element_type=jnp.float32)
            # One sigmoid + one tanh over the full (B, 4H) slab (a single vreg
            # row-block at H = 32), then static per-gate slices.
            # PyTorch gate order: i, f, g, o.
            sig = jax.nn.sigmoid(gates)
            tah = jnp.tanh(gates)
            i_g = sig[:, 0 * H:1 * H]
            f_g = sig[:, 1 * H:2 * H]
            g_g = tah[:, 2 * H:3 * H]
            o_g = sig[:, 3 * H:4 * H]
            c = f_g * c + i_g * g_g
            h = o_g * jnp.tanh(c)
            seq_scr[lo:hi, :] = h              # layer output stays VMEM-resident

        hn_ref[l] = h
        cn_ref[l] = c

    # Final FC on the last layer's last hidden state (== lstm_out[-1] @ W^T + b).
    if O == 1:
        # N=1 would waste 127/128 MXU columns; VPU multiply + lane reduce instead.
        out_ref[...] = (jnp.sum(h * fc_w_ref[...], axis=-1, keepdims=True)
                        + fc_b_ref[...]).astype(out_ref.dtype)
    else:
        out = jax.lax.dot_general(h, fc_w_ref[...], (((1,), (1,)), ((), ())),
                                  preferred_element_type=jnp.float32)
        out_ref[...] = (out + fc_b_ref[...]).astype(out_ref.dtype)


def lstm_model_forward(params, x, hidden_state):
    """Equivalent of LSTM.forward(x, hidden_state).

    x:            (S, B, input_size)
    hidden_state: (h0, c0) each (L, B, H)
    returns (out (B, output_size), (h_n (L,B,H), c_n (L,B,H)))
    """
    h0_all, c0_all = hidden_state
    x = x.astype(jnp.float32)
    S, B, D = x.shape
    L, _, H = h0_all.shape
    O = params["fc_w"].shape[0]
    Lr = params["w_ihr_t"].shape[0]

    # Pad batch to the sublane width so every (B, .) slab is a full tile.
    Bp = ((B + 7) // 8) * 8
    if Bp != B:
        pad = ((0, 0), (0, Bp - B), (0, 0))
        x = jnp.pad(x, pad)
        h0_all = jnp.pad(h0_all, pad)
        c0_all = jnp.pad(c0_all, pad)

    # Flatten time x batch outside the kernel (contiguous, no-op view in XLA).
    x2d = x.reshape(S * Bp, D)

    kernel = functools.partial(
        _fused_lstm_fc_kernel, seq_len=S, batch=Bp, hidden=H,
        num_layers=L, input_size=D, out_size=O)

    out, h_n, c_n = pl.pallas_call(
        kernel,
        out_shape=(
            jax.ShapeDtypeStruct((Bp, O), jnp.float32),
            jax.ShapeDtypeStruct((L, Bp, H), jnp.float32),
            jax.ShapeDtypeStruct((L, Bp, H), jnp.float32),
        ),
        grid_spec=pltpu.PrefetchScalarGridSpec(
            num_scalar_prefetch=0,
            grid=(1,),
            in_specs=[
                pl.BlockSpec((S * Bp, D), lambda i: (0, 0)),         # x (flattened)
                pl.BlockSpec((D, 4 * H), lambda i: (0, 0)),          # W_ih layer0
                pl.BlockSpec((Lr, H, 4 * H), lambda i: (0, 0, 0)),   # W_ih layers 1..L-1
                pl.BlockSpec((L, H, 4 * H), lambda i: (0, 0, 0)),    # W_hh
                pl.BlockSpec((L, 4 * H), lambda i: (0, 0)),          # bias (lane-major)
                pl.BlockSpec((L, Bp, H), lambda i: (0, 0, 0)),       # h0
                pl.BlockSpec((L, Bp, H), lambda i: (0, 0, 0)),       # c0
                pl.BlockSpec((O, H), lambda i: (0, 0)),              # FC weight (O, H)
                pl.BlockSpec((1, O), lambda i: (0, 0)),              # FC bias
            ],
            out_specs=[
                pl.BlockSpec((Bp, O), lambda i: (0, 0)),             # out
                pl.BlockSpec((L, Bp, H), lambda i: (0, 0, 0)),       # h_n
                pl.BlockSpec((L, Bp, H), lambda i: (0, 0, 0)),       # c_n
            ],
            scratch_shapes=[
                pltpu.VMEM((S * Bp, H), jnp.float32),       # current layer outputs
                pltpu.VMEM((S * Bp, 4 * H), jnp.float32),   # hoisted proj + bias
            ],
        ),
        compiler_params=pltpu.CompilerParams(
            dimension_semantics=("arbitrary",)),
    )(x2d, params["w_ih0_t"], params["w_ihr_t"], params["w_hh_t"],
      params["bias"], h0_all, c0_all, params["fc_w"], params["fc_b"])

    # Slice padded batch rows back off.
    return out[:B], (h_n[:, :B], c_n[:, :B])


# ----------------------------------------------------------------------------
# Deterministic parameter init (PyTorch-style uniform(-1/sqrt(H), 1/sqrt(H)))
# ----------------------------------------------------------------------------
def init_params(key, input_size, lstm_size, lstm_layers, output_size):
    H = lstm_size
    k = 1.0 / jnp.sqrt(jnp.float32(H))
    w_ih0_t = None
    w_ihr_list, w_hh_list, b_list = [], [], []
    for l in range(lstm_layers):
        d_in = input_size if l == 0 else H
        key, k1, k2, k3, k4 = jax.random.split(key, 5)
        w_ih = jax.random.uniform(k1, (4 * H, d_in), jnp.float32, -k, k)
        w_hh = jax.random.uniform(k2, (4 * H, H), jnp.float32, -k, k)
        b_ih = jax.random.uniform(k3, (4 * H,), jnp.float32, -k, k)
        b_hh = jax.random.uniform(k4, (4 * H,), jnp.float32, -k, k)
        if l == 0:
            w_ih0_t = w_ih.T                             # (D_in, 4H)
        else:
            w_ihr_list.append(w_ih.T)                    # (H, 4H)
        w_hh_list.append(w_hh.T)                         # (H, 4H)
        b_list.append(b_ih + b_hh)                       # (4H,)

    w_ihr_t = (jnp.stack(w_ihr_list, 0) if w_ihr_list
               else jnp.zeros((1, H, 4 * H), jnp.float32))   # dummy if L == 1

    key, k1, k2 = jax.random.split(key, 3)
    w_fc = jax.random.uniform(k1, (output_size, H), jnp.float32, -k, k)
    b_fc = jax.random.uniform(k2, (output_size,), jnp.float32, -k, k)

    return {
        "w_ih0_t": w_ih0_t,                              # (D_in, 4H)
        "w_ihr_t": w_ihr_t,                              # (max(L-1,1), H, 4H)
        "w_hh_t": jnp.stack(w_hh_list, 0),               # (L, H, 4H)
        "bias": jnp.stack(b_list, 0),                    # (L, 4H)   lane-major
        "fc_w": w_fc,                                    # (O, H)
        "fc_b": b_fc[None, :],                           # (1, O)
    }


# ----------------------------------------------------------------------------
# Pure-JAX reference for correctness checking
# ----------------------------------------------------------------------------
def reference_forward(params, x, hidden_state):
    h0_all, c0_all = hidden_state
    x = x.astype(jnp.float32)
    L, H = params["w_hh_t"].shape[0], params["w_hh_t"].shape[1]
    layer_in = x
    h_ns, c_ns = [], []
    for l in range(L):
        w_ih_t = params["w_ih0_t"] if l == 0 else params["w_ihr_t"][l - 1]
        w_hh_t = params["w_hh_t"][l]
        bias = params["bias"][l]
        h, c = h0_all[l], c0_all[l]
        ys = []
        for t in range(x.shape[0]):
            gates = layer_in[t] @ w_ih_t + h @ w_hh_t + bias
            i_g = jax.nn.sigmoid(gates[:, 0 * H:1 * H])
            f_g = jax.nn.sigmoid(gates[:, 1 * H:2 * H])
            g_g = jnp.tanh(gates[:, 2 * H:3 * H])
            o_g = jax.nn.sigmoid(gates[:, 3 * H:4 * H])
            c = f_g * c + i_g * g_g
            h = o_g * jnp.tanh(c)
            ys.append(h)
        layer_in = jnp.stack(ys, 0)
        h_ns.append(h)
        c_ns.append(c)
    out = layer_in[-1] @ params["fc_w"].T + params["fc_b"]
    return out, (jnp.stack(h_ns, 0), jnp.stack(c_ns, 0))


if __name__ == "__main__":
    SEQ, BATCH = 8, 2
    INPUT_SIZE, LSTM_SIZE, LSTM_LAYERS, OUTPUT_SIZE = 16, 32, 4, 1

    key = jax.random.PRNGKey(0)
    key, kp, kx = jax.random.split(key, 3)
    params = init_params(kp, INPUT_SIZE, LSTM_SIZE, LSTM_LAYERS, OUTPUT_SIZE)

    x = jax.random.normal(kx, (SEQ, BATCH, INPUT_SIZE), jnp.float32)
    # init_hidden(batch_size): zeros
    h0 = jnp.zeros((LSTM_LAYERS, BATCH, LSTM_SIZE), jnp.float32)
    c0 = jnp.zeros((LSTM_LAYERS, BATCH, LSTM_SIZE), jnp.float32)

    out, (h_n, c_n) = lstm_model_forward(params, x, (h0, c0))
    jax.block_until_ready(out)
    jax.block_until_ready(h_n)
    jax.block_until_ready(c_n)

    out_ref, (h_ref, c_ref) = reference_forward(params, x, (h0, c0))
    assert out.shape == (BATCH, OUTPUT_SIZE)
    assert h_n.shape == (LSTM_LAYERS, BATCH, LSTM_SIZE)
    assert c_n.shape == (LSTM_LAYERS, BATCH, LSTM_SIZE)
    assert jnp.allclose(out, out_ref, atol=1e-4, rtol=1e-4)
    assert jnp.allclose(h_n, h_ref, atol=1e-4, rtol=1e-4)
    assert jnp.allclose(c_n, c_ref, atol=1e-4, rtol=1e-4)

    print("KERNEL_OK")
</pallas_src>

<mosaic_0001>
module attributes {stable_mosaic.version = 11 : i64} {
  func.func @_fused_lstm_fc_kernel(%arg0: i32, %arg1: memref<64x16xf32, #tpu.memory_space<vmem>>, %arg2: memref<16x128xf32, #tpu.memory_space<vmem>>, %arg3: memref<3x32x128xf32, #tpu.memory_space<vmem>>, %arg4: memref<4x32x128xf32, #tpu.memory_space<vmem>>, %arg5: memref<4x128xf32, #tpu.memory_space<vmem>>, %arg6: memref<4x8x32xf32, #tpu.memory_space<vmem>>, %arg7: memref<4x8x32xf32, #tpu.memory_space<vmem>>, %arg8: memref<1x32xf32, #tpu.memory_space<vmem>>, %arg9: memref<1x1xf32, #tpu.memory_space<vmem>>, %arg10: memref<8x1xf32, #tpu.memory_space<vmem>>, %arg11: memref<4x8x32xf32, #tpu.memory_space<vmem>>, %arg12: memref<4x8x32xf32, #tpu.memory_space<vmem>>, %arg13: memref<64x32xf32, #tpu.memory_space<vmem>>, %arg14: memref<64x128xf32, #tpu.memory_space<vmem>>) attributes {dimension_semantics = [#tpu.dimension_semantics<arbitrary>], iteration_bounds = array<i64: 1>, scalar_prefetch = 0 : i64, scratch_operands = 2 : i64, tpu.core_type = #tpu.core_type<tc>, window_params = [{pipeline_mode = #tpu.pipeline_mode<synchronous>, transform_indices = @transform_0, window_bounds = array<i64: 64, 16>}, {pipeline_mode = #tpu.pipeline_mode<synchronous>, transform_indices = @transform_1, window_bounds = array<i64: 16, 128>}, {pipeline_mode = #tpu.pipeline_mode<synchronous>, transform_indices = @transform_2, window_bounds = array<i64: 3, 32, 128>}, {pipeline_mode = #tpu.pipeline_mode<synchronous>, transform_indices = @transform_3, window_bounds = array<i64: 4, 32, 128>}, {pipeline_mode = #tpu.pipeline_mode<synchronous>, transform_indices = @transform_4, window_bounds = array<i64: 4, 128>}, {pipeline_mode = #tpu.pipeline_mode<synchronous>, transform_indices = @transform_5, window_bounds = array<i64: 4, 8, 32>}, {pipeline_mode = #tpu.pipeline_mode<synchronous>, transform_indices = @transform_6, window_bounds = array<i64: 4, 8, 32>}, {pipeline_mode = #tpu.pipeline_mode<synchronous>, transform_indices = @transform_7, window_bounds = array<i64: 1, 32>}, {pipeline_mode = #tpu.pipeline_mode<synchronous>, transform_indices = @transform_8, window_bounds = array<i64: 1, 1>}, {pipeline_mode = #tpu.pipeline_mode<synchronous>, transform_indices = @transform_9, window_bounds = array<i64: 8, 1>}, {pipeline_mode = #tpu.pipeline_mode<synchronous>, transform_indices = @transform_10, window_bounds = array<i64: 4, 8, 32>}, {pipeline_mode = #tpu.pipeline_mode<synchronous>, transform_indices = @transform_11, window_bounds = array<i64: 4, 8, 32>}]} {
    %c0 = arith.constant 0 : index
    %c0_0 = arith.constant 0 : index
    %0 = vector.load %arg1[%c0, %c0_0] : memref<64x16xf32, #tpu.memory_space<vmem>>, vector<64x16xf32>
    %c0_1 = arith.constant 0 : index
    %c0_2 = arith.constant 0 : index
    %1 = vector.load %arg2[%c0_1, %c0_2] : memref<16x128xf32, #tpu.memory_space<vmem>>, vector<16x128xf32>
    %c0_3 = arith.constant 0 : index
    %c0_4 = arith.constant 0 : index
    %2 = vector.load %arg5[%c0_3, %c0_4] : memref<4x128xf32, #tpu.memory_space<vmem>>, vector<1x128xf32>
    %cst = arith.constant dense<0.000000e+00> : vector<64x128xf32>
    %3 = tpu.matmul %0, %1, %cst {dimension_numbers = #tpu.dot_dimension_numbers<[1], [0], [0], [1], [0, 0, 1, 1], [], []>} : vector<64x16xf32>, vector<16x128xf32>, vector<64x128xf32> -> vector<64x128xf32>
    %4 = vector.broadcast %2 : vector<1x128xf32> to vector<64x128xf32>
    %5 = arith.addf %3, %4 : vector<64x128xf32>
    %c0_5 = arith.constant 0 : index
    %c0_6 = arith.constant 0 : index
    %6 = vector.load %arg14[%c0_5, %c0_6] : memref<64x128xf32, #tpu.memory_space<vmem>>, vector<64x128xf32>
    tpu.vector_store %arg14[%c0_5, %c0_6], %5 {strides = array<i32>} : memref<64x128xf32, #tpu.memory_space<vmem>>, vector<64x128xf32>,
    %c0_7 = arith.constant 0 : index
    %c0_8 = arith.constant 0 : index
    %c0_9 = arith.constant 0 : index
    %7 = vector.load %arg4[%c0_7, %c0_8, %c0_9] : memref<4x32x128xf32, #tpu.memory_space<vmem>>, vector<1x32x128xf32>
    %8 = vector.shape_cast %7 : vector<1x32x128xf32> to vector<32x128xf32>
    %c0_10 = arith.constant 0 : index
    %c0_11 = arith.constant 0 : index
    %c0_12 = arith.constant 0 : index
    %9 = vector.load %arg6[%c0_10, %c0_11, %c0_12] : memref<4x8x32xf32, #tpu.memory_space<vmem>>, vector<1x8x32xf32>
    %10 = vector.shape_cast %9 : vector<1x8x32xf32> to vector<8x32xf32>
    %c0_13 = arith.constant 0 : index
    %c0_14 = arith.constant 0 : index
    %c0_15 = arith.constant 0 : index
    %11 = vector.load %arg7[%c0_13, %c0_14, %c0_15] : memref<4x8x32xf32, #tpu.memory_space<vmem>>, vector<1x8x32xf32>
    %12 = vector.shape_cast %11 : vector<1x8x32xf32> to vector<8x32xf32>
    %c0_16 = arith.constant 0 : index
    %c0_17 = arith.constant 0 : index
    %13 = vector.load %arg14[%c0_16, %c0_17] : memref<64x128xf32, #tpu.memory_space<vmem>>, vector<8x128xf32>
    %cst_18 = arith.constant dense<0.000000e+00> : vector<8x128xf32>
    %14 = tpu.matmul %10, %8, %cst_18 {dimension_numbers = #tpu.dot_dimension_numbers<[1], [0], [0], [1], [0, 0, 1, 1], [], []>} : vector<8x32xf32>, vector<32x128xf32>, vector<8x128xf32> -> vector<8x128xf32>
    %15 = arith.addf %13, %14 : vector<8x128xf32>
    %16 = arith.negf %15 : vector<8x128xf32>
    %17 = math.exp %16 : vector<8x128xf32>
    %cst_19 = arith.constant 1.000000e+00 : f32
    %18 = vector.broadcast %cst_19 : f32 to vector<8x128xf32>
    %19 = arith.addf %18, %17 : vector<8x128xf32>
    %20 = arith.divf %18, %19 : vector<8x128xf32>
    %21 = math.tanh %15 : vector<8x128xf32>
    %22 = vector.extract_strided_slice %20 {offsets = [0, 0], sizes = [8, 32], strides = [1, 1]} : vector<8x128xf32> to vector<8x32xf32>
    %23 = vector.extract_strided_slice %20 {offsets = [0, 32], sizes = [8, 32], strides = [1, 1]} : vector<8x128xf32> to vector<8x32xf32>
    %24 = vector.extract_strided_slice %21 {offsets = [0, 64], sizes = [8, 32], strides = [1, 1]} : vector<8x128xf32> to vector<8x32xf32>
    %25 = vector.extract_strided_slice %20 {offsets = [0, 96], sizes = [8, 32], strides = [1, 1]} : vector<8x128xf32> to vector<8x32xf32>
    %26 = arith.mulf %23, %12 : vector<8x32xf32>
    %27 = arith.mulf %22, %24 : vector<8x32xf32>
    %28 = arith.addf %26, %27 : vector<8x32xf32>
    %29 = math.tanh %28 : vector<8x32xf32>
    %30 = arith.mulf %25, %29 : vector<8x32xf32>
    %c0_20 = arith.constant 0 : index
    %c0_21 = arith.constant 0 : index
    %31 = vector.load %arg13[%c0_20, %c0_21] : memref<64x32xf32, #tpu.memory_space<vmem>>, vector<8x32xf32>
    tpu.vector_store %arg13[%c0_20, %c0_21], %30 {strides = array<i32>} : memref<64x32xf32, #tpu.memory_space<vmem>>, vector<8x32xf32>,
    %c8 = arith.constant 8 : index
    %c0_22 = arith.constant 0 : index
    %32 = vector.load %arg14[%c8, %c0_22] : memref<64x128xf32, #tpu.memory_space<vmem>>, vector<8x128xf32>
    %cst_23 = arith.constant dense<0.000000e+00> : vector<8x128xf32>
    %33 = tpu.matmul %30, %8, %cst_23 {dimension_numbers = #tpu.dot_dimension_numbers<[1], [0], [0], [1], [0, 0, 1, 1], [], []>} : vector<8x32xf32>, vector<32x128xf32>, vector<8x128xf32> -> vector<8x128xf32>
    %34 = arith.addf %32, %33 : vector<8x128xf32>
    %35 = arith.negf %34 : vector<8x128xf32>
    %36 = math.exp %35 : vector<8x128xf32>
    %cst_24 = arith.constant 1.000000e+00 : f32
    %37 = vector.broadcast %cst_24 : f32 to vector<8x128xf32>
    %38 = arith.addf %37, %36 : vector<8x128xf32>
    %39 = arith.divf %37, %38 : vector<8x128xf32>
    %40 = math.tanh %34 : vector<8x128xf32>
    %41 = vector.extract_strided_slice %39 {offsets = [0, 0], sizes = [8, 32], strides = [1, 1]} : vector<8x128xf32> to vector<8x32xf32>
    %42 = vector.extract_strided_slice %39 {offsets = [0, 32], sizes = [8, 32], strides = [1, 1]} : vector<8x128xf32> to vector<8x32xf32>
    %43 = vector.extract_strided_slice %40 {offsets = [0, 64], sizes = [8, 32], strides = [1, 1]} : vector<8x128xf32> to vector<8x32xf32>
    %44 = vector.extract_strided_slice %39 {offsets = [0, 96], sizes = [8, 32], strides = [1, 1]} : vector<8x128xf32> to vector<8x32xf32>
    %45 = arith.mulf %42, %28 : vector<8x32xf32>
    %46 = arith.mulf %41, %43 : vector<8x32xf32>
    %47 = arith.addf %45, %46 : vector<8x32xf32>
    %48 = math.tanh %47 : vector<8x32xf32>
    %49 = arith.mulf %44, %48 : vector<8x32xf32>
    %c8_25 = arith.constant 8 : index
    %c0_26 = arith.constant 0 : index
    %50 = vector.load %arg13[%c8_25, %c0_26] : memref<64x32xf32, #tpu.memory_space<vmem>>, vector<8x32xf32>
    tpu.vector_store %arg13[%c8_25, %c0_26], %49 {strides = array<i32>} : memref<64x32xf32, #tpu.memory_space<vmem>>, vector<8x32xf32>,
    %c16 = arith.constant 16 : index
    %c0_27 = arith.constant 0 : index
    %51 = vector.load %arg14[%c16, %c0_27] : memref<64x128xf32, #tpu.memory_space<vmem>>, vector<8x128xf32>
    %cst_28 = arith.constant dense<0.000000e+00> : vector<8x128xf32>
    %52 = tpu.matmul %49, %8, %cst_28 {dimension_numbers = #tpu.dot_dimension_numbers<[1], [0], [0], [1], [0, 0, 1, 1], [], []>} : vector<8x32xf32>, vector<32x128xf32>, vector<8x128xf32> -> vector<8x128xf32>
    %53 = arith.addf %51, %52 : vector<8x128xf32>
    %54 = arith.negf %53 : vector<8x128xf32>
    %55 = math.exp %54 : vector<8x128xf32>
    %cst_29 = arith.constant 1.000000e+00 : f32
    %56 = vector.broadcast %cst_29 : f32 to vector<8x128xf32>
    %57 = arith.addf %56, %55 : vector<8x128xf32>
    %58 = arith.divf %56, %57 : vector<8x128xf32>
    %59 = math.tanh %53 : vector<8x128xf32>
    %60 = vector.extract_strided_slice %58 {offsets = [0, 0], sizes = [8, 32], strides = [1, 1]} : vector<8x128xf32> to vector<8x32xf32>
    %61 = vector.extract_strided_slice %58 {offsets = [0, 32], sizes = [8, 32], strides = [1, 1]} : vector<8x128xf32> to vector<8x32xf32>
    %62 = vector.extract_strided_slice %59 {offsets = [0, 64], sizes = [8, 32], strides = [1, 1]} : vector<8x128xf32> to vector<8x32xf32>
    %63 = vector.extract_strided_slice %58 {offsets = [0, 96], sizes = [8, 32], strides = [1, 1]} : vector<8x128xf32> to vector<8x32xf32>
    %64 = arith.mulf %61, %47 : vector<8x32xf32>
    %65 = arith.mulf %60, %62 : vector<8x32xf32>
    %66 = arith.addf %64, %65 : vector<8x32xf32>
    %67 = math.tanh %66 : vector<8x32xf32>
    %68 = arith.mulf %63, %67 : vector<8x32xf32>
    %c16_30 = arith.constant 16 : index
    %c0_31 = arith.constant 0 : index
    %69 = vector.load %arg13[%c16_30, %c0_31] : memref<64x32xf32, #tpu.memory_space<vmem>>, vector<8x32xf32>
    tpu.vector_store %arg13[%c16_30, %c0_31], %68 {strides = array<i32>} : memref<64x32xf32, #tpu.memory_space<vmem>>, vector<8x32xf32>,
    %c24 = arith.constant 24 : index
    %c0_32 = arith.constant 0 : index
    %70 = vector.load %arg14[%c24, %c0_32] : memref<64x128xf32, #tpu.memory_space<vmem>>, vector<8x128xf32>
    %cst_33 = arith.constant dense<0.000000e+00> : vector<8x128xf32>
    %71 = tpu.matmul %68, %8, %cst_33 {dimension_numbers = #tpu.dot_dimension_numbers<[1], [0], [0], [1], [0, 0, 1, 1], [], []>} : vector<8x32xf32>, vector<32x128xf32>, vector<8x128xf32> -> vector<8x128xf32>
    %72 = arith.addf %70, %71 : vector<8x128xf32>
    %73 = arith.negf %72 : vector<8x128xf32>
    %74 = math.exp %73 : vector<8x128xf32>
    %cst_34 = arith.constant 1.000000e+00 : f32
    %75 = vector.broadcast %cst_34 : f32 to vector<8x128xf32>
    %76 = arith.addf %75, %74 : vector<8x128xf32>
    %77 = arith.divf %75, %76 : vector<8x128xf32>
    %78 = math.tanh %72 : vector<8x128xf32>
    %79 = vector.extract_strided_slice %77 {offsets = [0, 0], sizes = [8, 32], strides = [1, 1]} : vector<8x128xf32> to vector<8x32xf32>
    %80 = vector.extract_strided_slice %77 {offsets = [0, 32], sizes = [8, 32], strides = [1, 1]} : vector<8x128xf32> to vector<8x32xf32>
    %81 = vector.extract_strided_slice %78 {offsets = [0, 64], sizes = [8, 32], strides = [1, 1]} : vector<8x128xf32> to vector<8x32xf32>
    %82 = vector.extract_strided_slice %77 {offsets = [0, 96], sizes = [8, 32], strides = [1, 1]} : vector<8x128xf32> to vector<8x32xf32>
    %83 = arith.mulf %80, %66 : vector<8x32xf32>
    %84 = arith.mulf %79, %81 : vector<8x32xf32>
    %85 = arith.addf %83, %84 : vector<8x32xf32>
    %86 = math.tanh %85 : vector<8x32xf32>
    %87 = arith.mulf %82, %86 : vector<8x32xf32>
    %c24_35 = arith.constant 24 : index
    %c0_36 = arith.constant 0 : index
    %88 = vector.load %arg13[%c24_35, %c0_36] : memref<64x32xf32, #tpu.memory_space<vmem>>, vector<8x32xf32>
    tpu.vector_store %arg13[%c24_35, %c0_36], %87 {strides = array<i32>} : memref<64x32xf32, #tpu.memory_space<vmem>>, vector<8x32xf32>,
    %c32 = arith.constant 32 : index
    %c0_37 = arith.constant 0 : index
    %89 = vector.load %arg14[%c32, %c0_37] : memref<64x128xf32, #tpu.memory_space<vmem>>, vector<8x128xf32>
    %cst_38 = arith.constant dense<0.000000e+00> : vector<8x128xf32>
    %90 = tpu.matmul %87, %8, %cst_38 {dimension_numbers = #tpu.dot_dimension_numbers<[1], [0], [0], [1], [0, 0, 1, 1], [], []>} : vector<8x32xf32>, vector<32x128xf32>, vector<8x128xf32> -> vector<8x128xf32>
    %91 = arith.addf %89, %90 : vector<8x128xf32>
    %92 = arith.negf %91 : vector<8x128xf32>
    %93 = math.exp %92 : vector<8x128xf32>
    %cst_39 = arith.constant 1.000000e+00 : f32
    %94 = vector.broadcast %cst_39 : f32 to vector<8x128xf32>
    %95 = arith.addf %94, %93 : vector<8x128xf32>
    %96 = arith.divf %94, %95 : vector<8x128xf32>
    %97 = math.tanh %91 : vector<8x128xf32>
    %98 = vector.extract_strided_slice %96 {offsets = [0, 0], sizes = [8, 32], strides = [1, 1]} : vector<8x128xf32> to vector<8x32xf32>
    %99 = vector.extract_strided_slice %96 {offsets = [0, 32], sizes = [8, 32], strides = [1, 1]} : vector<8x128xf32> to vector<8x32xf32>
    %100 = vector.extract_strided_slice %97 {offsets = [0, 64], sizes = [8, 32], strides = [1, 1]} : vector<8x128xf32> to vector<8x32xf32>
    %101 = vector.extract_strided_slice %96 {offsets = [0, 96], sizes = [8, 32], strides = [1, 1]} : vector<8x128xf32> to vector<8x32xf32>
    %102 = arith.mulf %99, %85 : vector<8x32xf32>
    %103 = arith.mulf %98, %100 : vector<8x32xf32>
    %104 = arith.addf %102, %103 : vector<8x32xf32>
    %105 = math.tanh %104 : vector<8x32xf32>
    %106 = arith.mulf %101, %105 : vector<8x32xf32>
    %c32_40 = arith.constant 32 : index
    %c0_41 = arith.constant 0 : index
    %107 = vector.load %arg13[%c32_40, %c0_41] : memref<64x32xf32, #tpu.memory_space<vmem>>, vector<8x32xf32>
    tpu.vector_store %arg13[%c32_40, %c0_41], %106 {strides = array<i32>} : memref<64x32xf32, #tpu.memory_space<vmem>>, vector<8x32xf32>,
    %c40 = arith.constant 40 : index
    %c0_42 = arith.constant 0 : index
    %108 = vector.load %arg14[%c40, %c0_42] : memref<64x128xf32, #tpu.memory_space<vmem>>, vector<8x128xf32>
    %cst_43 = arith.constant dense<0.000000e+00> : vector<8x128xf32>
    %109 = tpu.matmul %106, %8, %cst_43 {dimension_numbers = #tpu.dot_dimension_numbers<[1], [0], [0], [1], [0, 0, 1, 1], [], []>} : vector<8x32xf32>, vector<32x128xf32>, vector<8x128xf32> -> vector<8x128xf32>
    %110 = arith.addf %108, %109 : vector<8x128xf32>
    %111 = arith.negf %110 : vector<8x128xf32>
    %112 = math.exp %111 : vector<8x128xf32>
    %cst_44 = arith.constant 1.000000e+00 : f32
    %113 = vector.broadcast %cst_44 : f32 to vector<8x128xf32>
    %114 = arith.addf %113, %112 : vector<8x128xf32>
    %115 = arith.divf %113, %114 : vector<8x128xf32>
    %116 = math.tanh %110 : vector<8x128xf32>
    %117 = vector.extract_strided_slice %115 {offsets = [0, 0], sizes = [8, 32], strides = [1, 1]} : vector<8x128xf32> to vector<8x32xf32>
    %118 = vector.extract_strided_slice %115 {offsets = [0, 32], sizes = [8, 32], strides = [1, 1]} : vector<8x128xf32> to vector<8x32xf32>
    %119 = vector.extract_strided_slice %116 {offsets = [0, 64], sizes = [8, 32], strides = [1, 1]} : vector<8x128xf32> to vector<8x32xf32>
    %120 = vector.extract_strided_slice %115 {offsets = [0, 96], sizes = [8, 32], strides = [1, 1]} : vector<8x128xf32> to vector<8x32xf32>
    %121 = arith.mulf %118, %104 : vector<8x32xf32>
    %122 = arith.mulf %117, %119 : vector<8x32xf32>
    %123 = arith.addf %121, %122 : vector<8x32xf32>
    %124 = math.tanh %123 : vector<8x32xf32>
    %125 = arith.mulf %120, %124 : vector<8x32xf32>
    %c40_45 = arith.constant 40 : index
    %c0_46 = arith.constant 0 : index
    %126 = vector.load %arg13[%c40_45, %c0_46] : memref<64x32xf32, #tpu.memory_space<vmem>>, vector<8x32xf32>
    tpu.vector_store %arg13[%c40_45, %c0_46], %125 {strides = array<i32>} : memref<64x32xf32, #tpu.memory_space<vmem>>, vector<8x32xf32>,
    %c48 = arith.constant 48 : index
    %c0_47 = arith.constant 0 : index
    %127 = vector.load %arg14[%c48, %c0_47] : memref<64x128xf32, #tpu.memory_space<vmem>>, vector<8x128xf32>
    %cst_48 = arith.constant dense<0.000000e+00> : vector<8x128xf32>
    %128 = tpu.matmul %125, %8, %cst_48 {dimension_numbers = #tpu.dot_dimension_numbers<[1], [0], [0], [1], [0, 0, 1, 1], [], []>} : vector<8x32xf32>, vector<32x128xf32>, vector<8x128xf32> -> vector<8x128xf32>
    %129 = arith.addf %127, %128 : vector<8x128xf32>
    %130 = arith.negf %129 : vector<8x128xf32>
    %131 = math.exp %130 : vector<8x128xf32>
    %cst_49 = arith.constant 1.000000e+00 : f32
    %132 = vector.broadcast %cst_49 : f32 to vector<8x128xf32>
    %133 = arith.addf %132, %131 : vector<8x128xf32>
    %134 = arith.divf %132, %133 : vector<8x128xf32>
    %135 = math.tanh %129 : vector<8x128xf32>
    %136 = vector.extract_strided_slice %134 {offsets = [0, 0], sizes = [8, 32], strides = [1, 1]} : vector<8x128xf32> to vector<8x32xf32>
    %137 = vector.extract_strided_slice %134 {offsets = [0, 32], sizes = [8, 32], strides = [1, 1]} : vector<8x128xf32> to vector<8x32xf32>
    %138 = vector.extract_strided_slice %135 {offsets = [0, 64], sizes = [8, 32], strides = [1, 1]} : vector<8x128xf32> to vector<8x32xf32>
    %139 = vector.extract_strided_slice %134 {offsets = [0, 96], sizes = [8, 32], strides = [1, 1]} : vector<8x128xf32> to vector<8x32xf32>
    %140 = arith.mulf %137, %123 : vector<8x32xf32>
    %141 = arith.mulf %136, %138 : vector<8x32xf32>
    %142 = arith.addf %140, %141 : vector<8x32xf32>
    %143 = math.tanh %142 : vector<8x32xf32>
    %144 = arith.mulf %139, %143 : vector<8x32xf32>
    %c48_50 = arith.constant 48 : index
    %c0_51 = arith.constant 0 : index
    %145 = vector.load %arg13[%c48_50, %c0_51] : memref<64x32xf32, #tpu.memory_space<vmem>>, vector<8x32xf32>
    tpu.vector_store %arg13[%c48_50, %c0_51], %144 {strides = array<i32>} : memref<64x32xf32, #tpu.memory_space<vmem>>, vector<8x32xf32>,
    %c56 = arith.constant 56 : index
    %c0_52 = arith.constant 0 : index
    %146 = vector.load %arg14[%c56, %c0_52] : memref<64x128xf32, #tpu.memory_space<vmem>>, vector<8x128xf32>
    %cst_53 = arith.constant dense<0.000000e+00> : vector<8x128xf32>
    %147 = tpu.matmul %144, %8, %cst_53 {dimension_numbers = #tpu.dot_dimension_numbers<[1], [0], [0], [1], [0, 0, 1, 1], [], []>} : vector<8x32xf32>, vector<32x128xf32>, vector<8x128xf32> -> vector<8x128xf32>
    %148 = arith.addf %146, %147 : vector<8x128xf32>
    %149 = arith.negf %148 : vector<8x128xf32>
    %150 = math.exp %149 : vector<8x128xf32>
    %cst_54 = arith.constant 1.000000e+00 : f32
    %151 = vector.broadcast %cst_54 : f32 to vector<8x128xf32>
    %152 = arith.addf %151, %150 : vector<8x128xf32>
    %153 = arith.divf %151, %152 : vector<8x128xf32>
    %154 = math.tanh %148 : vector<8x128xf32>
    %155 = vector.extract_strided_slice %153 {offsets = [0, 0], sizes = [8, 32], strides = [1, 1]} : vector<8x128xf32> to vector<8x32xf32>
    %156 = vector.extract_strided_slice %153 {offsets = [0, 32], sizes = [8, 32], strides = [1, 1]} : vector<8x128xf32> to vector<8x32xf32>
    %157 = vector.extract_strided_slice %154 {offsets = [0, 64], sizes = [8, 32], strides = [1, 1]} : vector<8x128xf32> to vector<8x32xf32>
    %158 = vector.extract_strided_slice %153 {offsets = [0, 96], sizes = [8, 32], strides = [1, 1]} : vector<8x128xf32> to vector<8x32xf32>
    %159 = arith.mulf %156, %142 : vector<8x32xf32>
    %160 = arith.mulf %155, %157 : vector<8x32xf32>
    %161 = arith.addf %159, %160 : vector<8x32xf32>
    %162 = math.tanh %161 : vector<8x32xf32>
    %163 = arith.mulf %158, %162 : vector<8x32xf32>
    %c56_55 = arith.constant 56 : index
    %c0_56 = arith.constant 0 : index
    %164 = vector.load %arg13[%c56_55, %c0_56] : memref<64x32xf32, #tpu.memory_space<vmem>>, vector<8x32xf32>
    tpu.vector_store %arg13[%c56_55, %c0_56], %163 {strides = array<i32>} : memref<64x32xf32, #tpu.memory_space<vmem>>, vector<8x32xf32>,
    %c0_57 = arith.constant 0 : index
    %c0_58 = arith.constant 0 : index
    %c0_59 = arith.constant 0 : index
    %165 = vector.load %arg11[%c0_57, %c0_58, %c0_59] : memref<4x8x32xf32, #tpu.memory_space<vmem>>, vector<1x8x32xf32>
    %166 = vector.shape_cast %165 : vector<1x8x32xf32> to vector<8x32xf32>
    %167 = vector.shape_cast %163 : vector<8x32xf32> to vector<1x8x32xf32>
    tpu.vector_store %arg11[%c0_57, %c0_58, %c0_59], %167 {strides = array<i32>} : memref<4x8x32xf32, #tpu.memory_space<vmem>>, vector<1x8x32xf32>,
    %c0_60 = arith.constant 0 : index
    %c0_61 = arith.constant 0 : index
    %c0_62 = arith.constant 0 : index
    %168 = vector.load %arg12[%c0_60, %c0_61, %c0_62] : memref<4x8x32xf32, #tpu.memory_space<vmem>>, vector<1x8x32xf32>
    %169 = vector.shape_cast %168 : vector<1x8x32xf32> to vector<8x32xf32>
    %170 = vector.shape_cast %161 : vector<8x32xf32> to vector<1x8x32xf32>
    tpu.vector_store %arg12[%c0_60, %c0_61, %c0_62], %170 {strides = array<i32>} : memref<4x8x32xf32, #tpu.memory_space<vmem>>, vector<1x8x32xf32>,
    %c0_63 = arith.constant 0 : index
    %c0_64 = arith.constant 0 : index
    %171 = vector.load %arg13[%c0_63, %c0_64] : memref<64x32xf32, #tpu.memory_space<vmem>>, vector<64x32xf32>
    %c0_65 = arith.constant 0 : index
    %c0_66 = arith.constant 0 : index
    %c0_67 = arith.constant 0 : index
    %172 = vector.load %arg3[%c0_65, %c0_66, %c0_67] : memref<3x32x128xf32, #tpu.memory_space<vmem>>, vector<1x32x128xf32>
    %173 = vector.shape_cast %172 : vector<1x32x128xf32> to vector<32x128xf32>
    %c1 = arith.constant 1 : index
    %c0_68 = arith.constant 0 : index
    %174 = vector.load %arg5[%c1, %c0_68] : memref<4x128xf32, #tpu.memory_space<vmem>>, vector<1x128xf32>
    %cst_69 = arith.constant dense<0.000000e+00> : vector<64x128xf32>
    %175 = tpu.matmul %171, %173, %cst_69 {dimension_numbers = #tpu.dot_dimension_numbers<[1], [0], [0], [1], [0, 0, 1, 1], [], []>} : vector<64x32xf32>, vector<32x128xf32>, vector<64x128xf32> -> vector<64x128xf32>
    %176 = vector.broadcast %174 : vector<1x128xf32> to vector<64x128xf32>
    %177 = arith.addf %175, %176 : vector<64x128xf32>
    %c0_70 = arith.constant 0 : index
    %c0_71 = arith.constant 0 : index
    %178 = vector.load %arg14[%c0_70, %c0_71] : memref<64x128xf32, #tpu.memory_space<vmem>>, vector<64x128xf32>
    tpu.vector_store %arg14[%c0_70, %c0_71], %177 {strides = array<i32>} : memref<64x128xf32, #tpu.memory_space<vmem>>, vector<64x128xf32>,
    %c1_72 = arith.constant 1 : index
    %c0_73 = arith.constant 0 : index
    %c0_74 = arith.constant 0 : index
    %179 = vector.load %arg4[%c1_72, %c0_73, %c0_74] : memref<4x32x128xf32, #tpu.memory_space<vmem>>, vector<1x32x128xf32>
    %180 = vector.shape_cast %179 : vector<1x32x128xf32> to vector<32x128xf32>
    %c1_75 = arith.constant 1 : index
    %c0_76 = arith.constant 0 : index
    %c0_77 = arith.constant 0 : index
    %181 = vector.load %arg6[%c1_75, %c0_76, %c0_77] : memref<4x8x32xf32, #tpu.memory_space<vmem>>, vector<1x8x32xf32>
    %182 = vector.shape_cast %181 : vector<1x8x32xf32> to vector<8x32xf32>
    %c1_78 = arith.constant 1 : index
    %c0_79 = arith.constant 0 : index
    %c0_80 = arith.constant 0 : index
    %183 = vector.load %arg7[%c1_78, %c0_79, %c0_80] : memref<4x8x32xf32, #tpu.memory_space<vmem>>, vector<1x8x32xf32>
    %184 = vector.shape_cast %183 : vector<1x8x32xf32> to vector<8x32xf32>
    %c0_81 = arith.constant 0 : index
    %c0_82 = arith.constant 0 : index
    %185 = vector.load %arg14[%c0_81, %c0_82] : memref<64x128xf32, #tpu.memory_space<vmem>>, vector<8x128xf32>
    %cst_83 = arith.constant dense<0.000000e+00> : vector<8x128xf32>
    %186 = tpu.matmul %182, %180, %cst_83 {dimension_numbers = #tpu.dot_dimension_numbers<[1], [0], [0], [1], [0, 0, 1, 1], [], []>} : vector<8x32xf32>, vector<32x128xf32>, vector<8x128xf32> -> vector<8x128xf32>
    %187 = arith.addf %185, %186 : vector<8x128xf32>
    %188 = arith.negf %187 : vector<8x128xf32>
    %189 = math.exp %188 : vector<8x128xf32>
    %cst_84 = arith.constant 1.000000e+00 : f32
    %190 = vector.broadcast %cst_84 : f32 to vector<8x128xf32>
    %191 = arith.addf %190, %189 : vector<8x128xf32>
    %192 = arith.divf %190, %191 : vector<8x128xf32>
    %193 = math.tanh %187 : vector<8x128xf32>
    %194 = vector.extract_strided_slice %192 {offsets = [0, 0], sizes = [8, 32], strides = [1, 1]} : vector<8x128xf32> to vector<8x32xf32>
    %195 = vector.extract_strided_slice %192 {offsets = [0, 32], sizes = [8, 32], strides = [1, 1]} : vector<8x128xf32> to vector<8x32xf32>
    %196 = vector.extract_strided_slice %193 {offsets = [0, 64], sizes = [8, 32], strides = [1, 1]} : vector<8x128xf32> to vector<8x32xf32>
    %197 = vector.extract_strided_slice %192 {offsets = [0, 96], sizes = [8, 32], strides = [1, 1]} : vector<8x128xf32> to vector<8x32xf32>
    %198 = arith.mulf %195, %184 : vector<8x32xf32>
    %199 = arith.mulf %194, %196 : vector<8x32xf32>
    %200 = arith.addf %198, %199 : vector<8x32xf32>
    %201 = math.tanh %200 : vector<8x32xf32>
    %202 = arith.mulf %197, %201 : vector<8x32xf32>
    %c0_85 = arith.constant 0 : index
    %c0_86 = arith.constant 0 : index
    %203 = vector.load %arg13[%c0_85, %c0_86] : memref<64x32xf32, #tpu.memory_space<vmem>>, vector<8x32xf32>
    tpu.vector_store %arg13[%c0_85, %c0_86], %202 {strides = array<i32>} : memref<64x32xf32, #tpu.memory_space<vmem>>, vector<8x32xf32>,
    %c8_87 = arith.constant 8 : index
    %c0_88 = arith.constant 0 : index
    %204 = vector.load %arg14[%c8_87, %c0_88] : memref<64x128xf32, #tpu.memory_space<vmem>>, vector<8x128xf32>
    %cst_89 = arith.constant dense<0.000000e+00> : vector<8x128xf32>
    %205 = tpu.matmul %202, %180, %cst_89 {dimension_numbers = #tpu.dot_dimension_numbers<[1], [0], [0], [1], [0, 0, 1, 1], [], []>} : vector<8x32xf32>, vector<32x128xf32>, vector<8x128xf32> -> vector<8x128xf32>
    %206 = arith.addf %204, %205 : vector<8x128xf32>
    %207 = arith.negf %206 : vector<8x128xf32>
    %208 = math.exp %207 : vector<8x128xf32>
    %cst_90 = arith.constant 1.000000e+00 : f32
    %209 = vector.broadcast %cst_90 : f32 to vector<8x128xf32>
    %210 = arith.addf %209, %208 : vector<8x128xf32>
    %211 = arith.divf %209, %210 : vector<8x128xf32>
    %212 = math.tanh %206 : vector<8x128xf32>
    %213 = vector.extract_strided_slice %211 {offsets = [0, 0], sizes = [8, 32], strides = [1, 1]} : vector<8x128xf32> to vector<8x32xf32>
    %214 = vector.extract_strided_slice %211 {offsets = [0, 32], sizes = [8, 32], strides = [1, 1]} : vector<8x128xf32> to vector<8x32xf32>
    %215 = vector.extract_strided_slice %212 {offsets = [0, 64], sizes = [8, 32], strides = [1, 1]} : vector<8x128xf32> to vector<8x32xf32>
    %216 = vector.extract_strided_slice %211 {offsets = [0, 96], sizes = [8, 32], strides = [1, 1]} : vector<8x128xf32> to vector<8x32xf32>
    %217 = arith.mulf %214, %200 : vector<8x32xf32>
    %218 = arith.mulf %213, %215 : vector<8x32xf32>
    %219 = arith.addf %217, %218 : vector<8x32xf32>
    %220 = math.tanh %219 : vector<8x32xf32>
    %221 = arith.mulf %216, %220 : vector<8x32xf32>
    %c8_91 = arith.constant 8 : index
    %c0_92 = arith.constant 0 : index
    %222 = vector.load %arg13[%c8_91, %c0_92] : memref<64x32xf32, #tpu.memory_space<vmem>>, vector<8x32xf32>
    tpu.vector_store %arg13[%c8_91, %c0_92], %221 {strides = array<i32>} : memref<64x32xf32, #tpu.memory_space<vmem>>, vector<8x32xf32>,
    %c16_93 = arith.constant 16 : index
    %c0_94 = arith.constant 0 : index
    %223 = vector.load %arg14[%c16_93, %c0_94] : memref<64x128xf32, #tpu.memory_space<vmem>>, vector<8x128xf32>
    %cst_95 = arith.constant dense<0.000000e+00> : vector<8x128xf32>
    %224 = tpu.matmul %221, %180, %cst_95 {dimension_numbers = #tpu.dot_dimension_numbers<[1], [0], [0], [1], [0, 0, 1, 1], [], []>} : vector<8x32xf32>, vector<32x128xf32>, vector<8x128xf32> -> vector<8x128xf32>
    %225 = arith.addf %223, %224 : vector<8x128xf32>
    %226 = arith.negf %225 : vector<8x128xf32>
    %227 = math.exp %226 : vector<8x128xf32>
    %cst_96 = arith.constant 1.000000e+00 : f32
    %228 = vector.broadcast %cst_96 : f32 to vector<8x128xf32>
    %229 = arith.addf %228, %227 : vector<8x128xf32>
    %230 = arith.divf %228, %229 : vector<8x128xf32>
    %231 = math.tanh %225 : vector<8x128xf32>
    %232 = vector.extract_strided_slice %230 {offsets = [0, 0], sizes = [8, 32], strides = [1, 1]} : vector<8x128xf32> to vector<8x32xf32>
    %233 = vector.extract_strided_slice %230 {offsets = [0, 32], sizes = [8, 32], strides = [1, 1]} : vector<8x128xf32> to vector<8x32xf32>
    %234 = vector.extract_strided_slice %231 {offsets = [0, 64], sizes = [8, 32], strides = [1, 1]} : vector<8x128xf32> to vector<8x32xf32>
    %235 = vector.extract_strided_slice %230 {offsets = [0, 96], sizes = [8, 32], strides = [1, 1]} : vector<8x128xf32> to vector<8x32xf32>
    %236 = arith.mulf %233, %219 : vector<8x32xf32>
    %237 = arith.mulf %232, %234 : vector<8x32xf32>
    %238 = arith.addf %236, %237 : vector<8x32xf32>
    %239 = math.tanh %238 : vector<8x32xf32>
    %240 = arith.mulf %235, %239 : vector<8x32xf32>
    %c16_97 = arith.constant 16 : index
    %c0_98 = arith.constant 0 : index
    %241 = vector.load %arg13[%c16_97, %c0_98] : memref<64x32xf32, #tpu.memory_space<vmem>>, vector<8x32xf32>
    tpu.vector_store %arg13[%c16_97, %c0_98], %240 {strides = array<i32>} : memref<64x32xf32, #tpu.memory_space<vmem>>, vector<8x32xf32>,
    %c24_99 = arith.constant 24 : index
    %c0_100 = arith.constant 0 : index
    %242 = vector.load %arg14[%c24_99, %c0_100] : memref<64x128xf32, #tpu.memory_space<vmem>>, vector<8x128xf32>
    %cst_101 = arith.constant dense<0.000000e+00> : vector<8x128xf32>
    %243 = tpu.matmul %240, %180, %cst_101 {dimension_numbers = #tpu.dot_dimension_numbers<[1], [0], [0], [1], [0, 0, 1, 1], [], []>} : vector<8x32xf32>, vector<32x128xf32>, vector<8x128xf32> -> vector<8x128xf32>
    %244 = arith.addf %242, %243 : vector<8x128xf32>
    %245 = arith.negf %244 : vector<8x128xf32>
    %246 = math.exp %245 : vector<8x128xf32>
    %cst_102 = arith.constant 1.000000e+00 : f32
    %247 = vector.broadcast %cst_102 : f32 to vector<8x128xf32>
    %248 = arith.addf %247, %246 : vector<8x128xf32>
    %249 = arith.divf %247, %248 : vector<8x128xf32>
    %250 = math.tanh %244 : vector<8x128xf32>
    %251 = vector.extract_strided_slice %249 {offsets = [0, 0], sizes = [8, 32], strides = [1, 1]} : vector<8x128xf32> to vector<8x32xf32>
    %252 = vector.extract_strided_slice %249 {offsets = [0, 32], sizes = [8, 32], strides = [1, 1]} : vector<8x128xf32> to vector<8x32xf32>
    %253 = vector.extract_strided_slice %250 {offsets = [0, 64], sizes = [8, 32], strides = [1, 1]} : vector<8x128xf32> to vector<8x32xf32>
    %254 = vector.extract_strided_slice %249 {offsets = [0, 96], sizes = [8, 32], strides = [1, 1]} : vector<8x128xf32> to vector<8x32xf32>
    %255 = arith.mulf %252, %238 : vector<8x32xf32>
    %256 = arith.mulf %251, %253 : vector<8x32xf32>
    %257 = arith.addf %255, %256 : vector<8x32xf32>
    %258 = math.tanh %257 : vector<8x32xf32>
    %259 = arith.mulf %254, %258 : vector<8x32xf32>
    %c24_103 = arith.constant 24 : index
    %c0_104 = arith.constant 0 : index
    %260 = vector.load %arg13[%c24_103, %c0_104] : memref<64x32xf32, #tpu.memory_space<vmem>>, vector<8x32xf32>
    tpu.vector_store %arg13[%c24_103, %c0_104], %259 {strides = array<i32>} : memref<64x32xf32, #tpu.memory_space<vmem>>, vector<8x32xf32>,
    %c32_105 = arith.constant 32 : index
    %c0_106 = arith.constant 0 : index
    %261 = vector.load %arg14[%c32_105, %c0_106] : memref<64x128xf32, #tpu.memory_space<vmem>>, vector<8x128xf32>
    %cst_107 = arith.constant dense<0.000000e+00> : vector<8x128xf32>
    %262 = tpu.matmul %259, %180, %cst_107 {dimension_numbers = #tpu.dot_dimension_numbers<[1], [0], [0], [1], [0, 0, 1, 1], [], []>} : vector<8x32xf32>, vector<32x128xf32>, vector<8x128xf32> -> vector<8x128xf32>
    %263 = arith.addf %261, %262 : vector<8x128xf32>
    %264 = arith.negf %263 : vector<8x128xf32>
    %265 = math.exp %264 : vector<8x128xf32>
    %cst_108 = arith.constant 1.000000e+00 : f32
    %266 = vector.broadcast %cst_108 : f32 to vector<8x128xf32>
    %267 = arith.addf %266, %265 : vector<8x128xf32>
    %268 = arith.divf %266, %267 : vector<8x128xf32>
    %269 = math.tanh %263 : vector<8x128xf32>
    %270 = vector.extract_strided_slice %268 {offsets = [0, 0], sizes = [8, 32], strides = [1, 1]} : vector<8x128xf32> to vector<8x32xf32>
    %271 = vector.extract_strided_slice %268 {offsets = [0, 32], sizes = [8, 32], strides = [1, 1]} : vector<8x128xf32> to vector<8x32xf32>
    %272 = vector.extract_strided_slice %269 {offsets = [0, 64], sizes = [8, 32], strides = [1, 1]} : vector<8x128xf32> to vector<8x32xf32>
    %273 = vector.extract_strided_slice %268 {offsets = [0, 96], sizes = [8, 32], strides = [1, 1]} : vector<8x128xf32> to vector<8x32xf32>
    %274 = arith.mulf %271, %257 : vector<8x32xf32>
    %275 = arith.mulf %270, %272 : vector<8x32xf32>
    %276 = arith.addf %274, %275 : vector<8x32xf32>
    %277 = math.tanh %276 : vector<8x32xf32>
    %278 = arith.mulf %273, %277 : vector<8x32xf32>
    %c32_109 = arith.constant 32 : index
    %c0_110 = arith.constant 0 : index
    %279 = vector.load %arg13[%c32_109, %c0_110] : memref<64x32xf32, #tpu.memory_space<vmem>>, vector<8x32xf32>
    tpu.vector_store %arg13[%c32_109, %c0_110], %278 {strides = array<i32>} : memref<64x32xf32, #tpu.memory_space<vmem>>, vector<8x32xf32>,
    %c40_111 = arith.constant 40 : index
    %c0_112 = arith.constant 0 : index
    %280 = vector.load %arg14[%c40_111, %c0_112] : memref<64x128xf32, #tpu.memory_space<vmem>>, vector<8x128xf32>
    %cst_113 = arith.constant dense<0.000000e+00> : vector<8x128xf32>
    %281 = tpu.matmul %278, %180, %cst_113 {dimension_numbers = #tpu.dot_dimension_numbers<[1], [0], [0], [1], [0, 0, 1, 1], [], []>} : vector<8x32xf32>, vector<32x128xf32>, vector<8x128xf32> -> vector<8x128xf32>
    %282 = arith.addf %280, %281 : vector<8x128xf32>
    %283 = arith.negf %282 : vector<8x128xf32>
    %284 = math.exp %283 : vector<8x128xf32>
    %cst_114 = arith.constant 1.000000e+00 : f32
    %285 = vector.broadcast %cst_114 : f32 to vector<8x128xf32>
    %286 = arith.addf %285, %284 : vector<8x128xf32>
    %287 = arith.divf %285, %286 : vector<8x128xf32>
    %288 = math.tanh %282 : vector<8x128xf32>
    %289 = vector.extract_strided_slice %287 {offsets = [0, 0], sizes = [8, 32], strides = [1, 1]} : vector<8x128xf32> to vector<8x32xf32>
    %290 = vector.extract_strided_slice %287 {offsets = [0, 32], sizes = [8, 32], strides = [1, 1]} : vector<8x128xf32> to vector<8x32xf32>
    %291 = vector.extract_strided_slice %288 {offsets = [0, 64], sizes = [8, 32], strides = [1, 1]} : vector<8x128xf32> to vector<8x32xf32>
    %292 = vector.extract_strided_slice %287 {offsets = [0, 96], sizes = [8, 32], strides = [1, 1]} : vector<8x128xf32> to vector<8x32xf32>
    %293 = arith.mulf %290, %276 : vector<8x32xf32>
    %294 = arith.mulf %289, %291 : vector<8x32xf32>
    %295 = arith.addf %293, %294 : vector<8x32xf32>
    %296 = math.tanh %295 : vector<8x32xf32>
    %297 = arith.mulf %292, %296 : vector<8x32xf32>
    %c40_115 = arith.constant 40 : index
    %c0_116 = arith.constant 0 : index
    %298 = vector.load %arg13[%c40_115, %c0_116] : memref<64x32xf32, #tpu.memory_space<vmem>>, vector<8x32xf32>
    tpu.vector_store %arg13[%c40_115, %c0_116], %297 {strides = array<i32>} : memref<64x32xf32, #tpu.memory_space<vmem>>, vector<8x32xf32>,
    %c48_117 = arith.constant 48 : index
    %c0_118 = arith.constant 0 : index
    %299 = vector.load %arg14[%c48_117, %c0_118] : memref<64x128xf32, #tpu.memory_space<vmem>>, vector<8x128xf32>
    %cst_119 = arith.constant dense<0.000000e+00> : vector<8x128xf32>
    %300 = tpu.matmul %297, %180, %cst_119 {dimension_numbers = #tpu.dot_dimension_numbers<[1], [0], [0], [1], [0, 0, 1, 1], [], []>} : vector<8x32xf32>, vector<32x128xf32>, vector<8x128xf32> -> vector<8x128xf32>
    %301 = arith.addf %299, %300 : vector<8x128xf32>
    %302 = arith.negf %301 : vector<8x128xf32>
    %303 = math.exp %302 : vector<8x128xf32>
    %cst_120 = arith.constant 1.000000e+00 : f32
    %304 = vector.broadcast %cst_120 : f32 to vector<8x128xf32>
    %305 = arith.addf %304, %303 : vector<8x128xf32>
    %306 = arith.divf %304, %305 : vector<8x128xf32>
    %307 = math.tanh %301 : vector<8x128xf32>
    %308 = vector.extract_strided_slice %306 {offsets = [0, 0], sizes = [8, 32], strides = [1, 1]} : vector<8x128xf32> to vector<8x32xf32>
    %309 = vector.extract_strided_slice %306 {offsets = [0, 32], sizes = [8, 32], strides = [1, 1]} : vector<8x128xf32> to vector<8x32xf32>
    %310 = vector.extract_strided_slice %307 {offsets = [0, 64], sizes = [8, 32], strides = [1, 1]} : vector<8x128xf32> to vector<8x32xf32>
    %311 = vector.extract_strided_slice %306 {offsets = [0, 96], sizes = [8, 32], strides = [1, 1]} : vector<8x128xf32> to vector<8x32xf32>
    %312 = arith.mulf %309, %295 : vector<8x32xf32>
    %313 = arith.mulf %308, %310 : vector<8x32xf32>
    %314 = arith.addf %312, %313 : vector<8x32xf32>
    %315 = math.tanh %314 : vector<8x32xf32>
    %316 = arith.mulf %311, %315 : vector<8x32xf32>
    %c48_121 = arith.constant 48 : index
    %c0_122 = arith.constant 0 : index
    %317 = vector.load %arg13[%c48_121, %c0_122] : memref<64x32xf32, #tpu.memory_space<vmem>>, vector<8x32xf32>
    tpu.vector_store %arg13[%c48_121, %c0_122], %316 {strides = array<i32>} : memref<64x32xf32, #tpu.memory_space<vmem>>, vector<8x32xf32>,
    %c56_123 = arith.constant 56 : index
    %c0_124 = arith.constant 0 : index
    %318 = vector.load %arg14[%c56_123, %c0_124] : memref<64x128xf32, #tpu.memory_space<vmem>>, vector<8x128xf32>
    %cst_125 = arith.constant dense<0.000000e+00> : vector<8x128xf32>
    %319 = tpu.matmul %316, %180, %cst_125 {dimension_numbers = #tpu.dot_dimension_numbers<[1], [0], [0], [1], [0, 0, 1, 1], [], []>} : vector<8x32xf32>, vector<32x128xf32>, vector<8x128xf32> -> vector<8x128xf32>
    %320 = arith.addf %318, %319 : vector<8x128xf32>
    %321 = arith.negf %320 : vector<8x128xf32>
    %322 = math.exp %321 : vector<8x128xf32>
    %cst_126 = arith.constant 1.000000e+00 : f32
    %323 = vector.broadcast %cst_126 : f32 to vector<8x128xf32>
    %324 = arith.addf %323, %322 : vector<8x128xf32>
    %325 = arith.divf %323, %324 : vector<8x128xf32>
    %326 = math.tanh %320 : vector<8x128xf32>
    %327 = vector.extract_strided_slice %325 {offsets = [0, 0], sizes = [8, 32], strides = [1, 1]} : vector<8x128xf32> to vector<8x32xf32>
    %328 = vector.extract_strided_slice %325 {offsets = [0, 32], sizes = [8, 32], strides = [1, 1]} : vector<8x128xf32> to vector<8x32xf32>
    %329 = vector.extract_strided_slice %326 {offsets = [0, 64], sizes = [8, 32], strides = [1, 1]} : vector<8x128xf32> to vector<8x32xf32>
    %330 = vector.extract_strided_slice %325 {offsets = [0, 96], sizes = [8, 32], strides = [1, 1]} : vector<8x128xf32> to vector<8x32xf32>
    %331 = arith.mulf %328, %314 : vector<8x32xf32>
    %332 = arith.mulf %327, %329 : vector<8x32xf32>
    %333 = arith.addf %331, %332 : vector<8x32xf32>
    %334 = math.tanh %333 : vector<8x32xf32>
    %335 = arith.mulf %330, %334 : vector<8x32xf32>
    %c56_127 = arith.constant 56 : index
    %c0_128 = arith.constant 0 : index
    %336 = vector.load %arg13[%c56_127, %c0_128] : memref<64x32xf32, #tpu.memory_space<vmem>>, vector<8x32xf32>
    tpu.vector_store %arg13[%c56_127, %c0_128], %335 {strides = array<i32>} : memref<64x32xf32, #tpu.memory_space<vmem>>, vector<8x32xf32>,
    %c1_129 = arith.constant 1 : index
    %c0_130 = arith.constant 0 : index
    %c0_131 = arith.constant 0 : index
    %337 = vector.load %arg11[%c1_129, %c0_130, %c0_131] : memref<4x8x32xf32, #tpu.memory_space<vmem>>, vector<1x8x32xf32>
    %338 = vector.shape_cast %337 : vector<1x8x32xf32> to vector<8x32xf32>
    %339 = vector.shape_cast %335 : vector<8x32xf32> to vector<1x8x32xf32>
    tpu.vector_store %arg11[%c1_129, %c0_130, %c0_131], %339 {strides = array<i32>} : memref<4x8x32xf32, #tpu.memory_space<vmem>>, vector<1x8x32xf32>,
    %c1_132 = arith.constant 1 : index
    %c0_133 = arith.constant 0 : index
    %c0_134 = arith.constant 0 : index
    %340 = vector.load %arg12[%c1_132, %c0_133, %c0_134] : memref<4x8x32xf32, #tpu.memory_space<vmem>>, vector<1x8x32xf32>
    %341 = vector.shape_cast %340 : vector<1x8x32xf32> to vector<8x32xf32>
    %342 = vector.shape_cast %333 : vector<8x32xf32> to vector<1x8x32xf32>
    tpu.vector_store %arg12[%c1_132, %c0_133, %c0_134], %342 {strides = array<i32>} : memref<4x8x32xf32, #tpu.memory_space<vmem>>, vector<1x8x32xf32>,
    %c0_135 = arith.constant 0 : index
    %c0_136 = arith.constant 0 : index
    %343 = vector.load %arg13[%c0_135, %c0_136] : memref<64x32xf32, #tpu.memory_space<vmem>>, vector<64x32xf32>
    %c1_137 = arith.constant 1 : index
    %c0_138 = arith.constant 0 : index
    %c0_139 = arith.constant 0 : index
    %344 = vector.load %arg3[%c1_137, %c0_138, %c0_139] : memref<3x32x128xf32, #tpu.memory_space<vmem>>, vector<1x32x128xf32>
    %345 = vector.shape_cast %344 : vector<1x32x128xf32> to vector<32x128xf32>
    %c2 = arith.constant 2 : index
    %c0_140 = arith.constant 0 : index
    %346 = vector.load %arg5[%c2, %c0_140] : memref<4x128xf32, #tpu.memory_space<vmem>>, vector<1x128xf32>
    %cst_141 = arith.constant dense<0.000000e+00> : vector<64x128xf32>
    %347 = tpu.matmul %343, %345, %cst_141 {dimension_numbers = #tpu.dot_dimension_numbers<[1], [0], [0], [1], [0, 0, 1, 1], [], []>} : vector<64x32xf32>, vector<32x128xf32>, vector<64x128xf32> -> vector<64x128xf32>
    %348 = vector.broadcast %346 : vector<1x128xf32> to vector<64x128xf32>
    %349 = arith.addf %347, %348 : vector<64x128xf32>
    %c0_142 = arith.constant 0 : index
    %c0_143 = arith.constant 0 : index
    %350 = vector.load %arg14[%c0_142, %c0_143] : memref<64x128xf32, #tpu.memory_space<vmem>>, vector<64x128xf32>
    tpu.vector_store %arg14[%c0_142, %c0_143], %349 {strides = array<i32>} : memref<64x128xf32, #tpu.memory_space<vmem>>, vector<64x128xf32>,
    %c2_144 = arith.constant 2 : index
    %c0_145 = arith.constant 0 : index
    %c0_146 = arith.constant 0 : index
    %351 = vector.load %arg4[%c2_144, %c0_145, %c0_146] : memref<4x32x128xf32, #tpu.memory_space<vmem>>, vector<1x32x128xf32>
    %352 = vector.shape_cast %351 : vector<1x32x128xf32> to vector<32x128xf32>
    %c2_147 = arith.constant 2 : index
    %c0_148 = arith.constant 0 : index
    %c0_149 = arith.constant 0 : index
    %353 = vector.load %arg6[%c2_147, %c0_148, %c0_149] : memref<4x8x32xf32, #tpu.memory_space<vmem>>, vector<1x8x32xf32>
    %354 = vector.shape_cast %353 : vector<1x8x32xf32> to vector<8x32xf32>
    %c2_150 = arith.constant 2 : index
    %c0_151 = arith.constant 0 : index
    %c0_152 = arith.constant 0 : index
    %355 = vector.load %arg7[%c2_150, %c0_151, %c0_152] : memref<4x8x32xf32, #tpu.memory_space<vmem>>, vector<1x8x32xf32>
    %356 = vector.shape_cast %355 : vector<1x8x32xf32> to vector<8x32xf32>
    %c0_153 = arith.constant 0 : index
    %c0_154 = arith.constant 0 : index
    %357 = vector.load %arg14[%c0_153, %c0_154] : memref<64x128xf32, #tpu.memory_space<vmem>>, vector<8x128xf32>
    %cst_155 = arith.constant dense<0.000000e+00> : vector<8x128xf32>
    %358 = tpu.matmul %354, %352, %cst_155 {dimension_numbers = #tpu.dot_dimension_numbers<[1], [0], [0], [1], [0, 0, 1, 1], [], []>} : vector<8x32xf32>, vector<32x128xf32>, vector<8x128xf32> -> vector<8x128xf32>
    %359 = arith.addf %357, %358 : vector<8x128xf32>
    %360 = arith.negf %359 : vector<8x128xf32>
    %361 = math.exp %360 : vector<8x128xf32>
    %cst_156 = arith.constant 1.000000e+00 : f32
    %362 = vector.broadcast %cst_156 : f32 to vector<8x128xf32>
    %363 = arith.addf %362, %361 : vector<8x128xf32>
    %364 = arith.divf %362, %363 : vector<8x128xf32>
    %365 = math.tanh %359 : vector<8x128xf32>
    %366 = vector.extract_strided_slice %364 {offsets = [0, 0], sizes = [8, 32], strides = [1, 1]} : vector<8x128xf32> to vector<8x32xf32>
    %367 = vector.extract_strided_slice %364 {offsets = [0, 32], sizes = [8, 32], strides = [1, 1]} : vector<8x128xf32> to vector<8x32xf32>
    %368 = vector.extract_strided_slice %365 {offsets = [0, 64], sizes = [8, 32], strides = [1, 1]} : vector<8x128xf32> to vector<8x32xf32>
    %369 = vector.extract_strided_slice %364 {offsets = [0, 96], sizes = [8, 32], strides = [1, 1]} : vector<8x128xf32> to vector<8x32xf32>
    %370 = arith.mulf %367, %356 : vector<8x32xf32>
    %371 = arith.mulf %366, %368 : vector<8x32xf32>
    %372 = arith.addf %370, %371 : vector<8x32xf32>
    %373 = math.tanh %372 : vector<8x32xf32>
    %374 = arith.mulf %369, %373 : vector<8x32xf32>
    %c0_157 = arith.constant 0 : index
    %c0_158 = arith.constant 0 : index
    %375 = vector.load %arg13[%c0_157, %c0_158] : memref<64x32xf32, #tpu.memory_space<vmem>>, vector<8x32xf32>
    tpu.vector_store %arg13[%c0_157, %c0_158], %374 {strides = array<i32>} : memref<64x32xf32, #tpu.memory_space<vmem>>, vector<8x32xf32>,
    %c8_159 = arith.constant 8 : index
    %c0_160 = arith.constant 0 : index
    %376 = vector.load %arg14[%c8_159, %c0_160] : memref<64x128xf32, #tpu.memory_space<vmem>>, vector<8x128xf32>
    %cst_161 = arith.constant dense<0.000000e+00> : vector<8x128xf32>
    %377 = tpu.matmul %374, %352, %cst_161 {dimension_numbers = #tpu.dot_dimension_numbers<[1], [0], [0], [1], [0, 0, 1, 1], [], []>} : vector<8x32xf32>, vector<32x128xf32>, vector<8x128xf32> -> vector<8x128xf32>
    %378 = arith.addf %376, %377 : vector<8x128xf32>
    %379 = arith.negf %378 : vector<8x128xf32>
    %380 = math.exp %379 : vector<8x128xf32>
    %cst_162 = arith.constant 1.000000e+00 : f32
    %381 = vector.broadcast %cst_162 : f32 to vector<8x128xf32>
    %382 = arith.addf %381, %380 : vector<8x128xf32>
    %383 = arith.divf %381, %382 : vector<8x128xf32>
    %384 = math.tanh %378 : vector<8x128xf32>
    %385 = vector.extract_strided_slice %383 {offsets = [0, 0], sizes = [8, 32], strides = [1, 1]} : vector<8x128xf32> to vector<8x32xf32>
    %386 = vector.extract_strided_slice %383 {offsets = [0, 32], sizes = [8, 32], strides = [1, 1]} : vector<8x128xf32> to vector<8x32xf32>
    %387 = vector.extract_strided_slice %384 {offsets = [0, 64], sizes = [8, 32], strides = [1, 1]} : vector<8x128xf32> to vector<8x32xf32>
    %388 = vector.extract_strided_slice %383 {offsets = [0, 96], sizes = [8, 32], strides = [1, 1]} : vector<8x128xf32> to vector<8x32xf32>
    %389 = arith.mulf %386, %372 : vector<8x32xf32>
    %390 = arith.mulf %385, %387 : vector<8x32xf32>
    %391 = arith.addf %389, %390 : vector<8x32xf32>
    %392 = math.tanh %391 : vector<8x32xf32>
    %393 = arith.mulf %388, %392 : vector<8x32xf32>
    %c8_163 = arith.constant 8 : index
    %c0_164 = arith.constant 0 : index
    %394 = vector.load %arg13[%c8_163, %c0_164] : memref<64x32xf32, #tpu.memory_space<vmem>>, vector<8x32xf32>
    tpu.vector_store %arg13[%c8_163, %c0_164], %393 {strides = array<i32>} : memref<64x32xf32, #tpu.memory_space<vmem>>, vector<8x32xf32>,
    %c16_165 = arith.constant 16 : index
    %c0_166 = arith.constant 0 : index
    %395 = vector.load %arg14[%c16_165, %c0_166] : memref<64x128xf32, #tpu.memory_space<vmem>>, vector<8x128xf32>
    %cst_167 = arith.constant dense<0.000000e+00> : vector<8x128xf32>
    %396 = tpu.matmul %393, %352, %cst_167 {dimension_numbers = #tpu.dot_dimension_numbers<[1], [0], [0], [1], [0, 0, 1, 1], [], []>} : vector<8x32xf32>, vector<32x128xf32>, vector<8x128xf32> -> vector<8x128xf32>
    %397 = arith.addf %395, %396 : vector<8x128xf32>
    %398 = arith.negf %397 : vector<8x128xf32>
    %399 = math.exp %398 : vector<8x128xf32>
    %cst_168 = arith.constant 1.000000e+00 : f32
    %400 = vector.broadcast %cst_168 : f32 to vector<8x128xf32>
    %401 = arith.addf %400, %399 : vector<8x128xf32>
    %402 = arith.divf %400, %401 : vector<8x128xf32>
    %403 = math.tanh %397 : vector<8x128xf32>
    %404 = vector.extract_strided_slice %402 {offsets = [0, 0], sizes = [8, 32], strides = [1, 1]} : vector<8x128xf32> to vector<8x32xf32>
    %405 = vector.extract_strided_slice %402 {offsets = [0, 32], sizes = [8, 32], strides = [1, 1]} : vector<8x128xf32> to vector<8x32xf32>
    %406 = vector.extract_strided_slice %403 {offsets = [0, 64], sizes = [8, 32], strides = [1, 1]} : vector<8x128xf32> to vector<8x32xf32>
    %407 = vector.extract_strided_slice %402 {offsets = [0, 96], sizes = [8, 32], strides = [1, 1]} : vector<8x128xf32> to vector<8x32xf32>
    %408 = arith.mulf %405, %391 : vector<8x32xf32>
    %409 = arith.mulf %404, %406 : vector<8x32xf32>
    %410 = arith.addf %408, %409 : vector<8x32xf32>
    %411 = math.tanh %410 : vector<8x32xf32>
    %412 = arith.mulf %407, %411 : vector<8x32xf32>
    %c16_169 = arith.constant 16 : index
    %c0_170 = arith.constant 0 : index
    %413 = vector.load %arg13[%c16_169, %c0_170] : memref<64x32xf32, #tpu.memory_space<vmem>>, vector<8x32xf32>
    tpu.vector_store %arg13[%c16_169, %c0_170], %412 {strides = array<i32>} : memref<64x32xf32, #tpu.memory_space<vmem>>, vector<8x32xf32>,
    %c24_171 = arith.constant 24 : index
    %c0_172 = arith.constant 0 : index
    %414 = vector.load %arg14[%c24_171, %c0_172] : memref<64x128xf32, #tpu.memory_space<vmem>>, vector<8x128xf32>
    %cst_173 = arith.constant dense<0.000000e+00> : vector<8x128xf32>
    %415 = tpu.matmul %412, %352, %cst_173 {dimension_numbers = #tpu.dot_dimension_numbers<[1], [0], [0], [1], [0, 0, 1, 1], [], []>} : vector<8x32xf32>, vector<32x128xf32>, vector<8x128xf32> -> vector<8x128xf32>
    %416 = arith.addf %414, %415 : vector<8x128xf32>
    %417 = arith.negf %416 : vector<8x128xf32>
    %418 = math.exp %417 : vector<8x128xf32>
    %cst_174 = arith.constant 1.000000e+00 : f32
    %419 = vector.broadcast %cst_174 : f32 to vector<8x128xf32>
    %420 = arith.addf %419, %418 : vector<8x128xf32>
    %421 = arith.divf %419, %420 : vector<8x128xf32>
    %422 = math.tanh %416 : vector<8x128xf32>
    %423 = vector.extract_strided_slice %421 {offsets = [0, 0], sizes = [8, 32], strides = [1, 1]} : vector<8x128xf32> to vector<8x32xf32>
    %424 = vector.extract_strided_slice %421 {offsets = [0, 32], sizes = [8, 32], strides = [1, 1]} : vector<8x128xf32> to vector<8x32xf32>
    %425 = vector.extract_strided_slice %422 {offsets = [0, 64], sizes = [8, 32], strides = [1, 1]} : vector<8x128xf32> to vector<8x32xf32>
    %426 = vector.extract_strided_slice %421 {offsets = [0, 96], sizes = [8, 32], strides = [1, 1]} : vector<8x128xf32> to vector<8x32xf32>
    %427 = arith.mulf %424, %410 : vector<8x32xf32>
    %428 = arith.mulf %423, %425 : vector<8x32xf32>
    %429 = arith.addf %427, %428 : vector<8x32xf32>
    %430 = math.tanh %429 : vector<8x32xf32>
    %431 = arith.mulf %426, %430 : vector<8x32xf32>
    %c24_175 = arith.constant 24 : index
    %c0_176 = arith.constant 0 : index
    %432 = vector.load %arg13[%c24_175, %c0_176] : memref<64x32xf32, #tpu.memory_space<vmem>>, vector<8x32xf32>
    tpu.vector_store %arg13[%c24_175, %c0_176], %431 {strides = array<i32>} : memref<64x32xf32, #tpu.memory_space<vmem>>, vector<8x32xf32>,
    %c32_177 = arith.constant 32 : index
    %c0_178 = arith.constant 0 : index
    %433 = vector.load %arg14[%c32_177, %c0_178] : memref<64x128xf32, #tpu.memory_space<vmem>>, vector<8x128xf32>
    %cst_179 = arith.constant dense<0.000000e+00> : vector<8x128xf32>
    %434 = tpu.matmul %431, %352, %cst_179 {dimension_numbers = #tpu.dot_dimension_numbers<[1], [0], [0], [1], [0, 0, 1, 1], [], []>} : vector<8x32xf32>, vector<32x128xf32>, vector<8x128xf32> -> vector<8x128xf32>
    %435 = arith.addf %433, %434 : vector<8x128xf32>
    %436 = arith.negf %435 : vector<8x128xf32>
    %437 = math.exp %436 : vector<8x128xf32>
    %cst_180 = arith.constant 1.000000e+00 : f32
    %438 = vector.broadcast %cst_180 : f32 to vector<8x128xf32>
    %439 = arith.addf %438, %437 : vector<8x128xf32>
    %440 = arith.divf %438, %439 : vector<8x128xf32>
    %441 = math.tanh %435 : vector<8x128xf32>
    %442 = vector.extract_strided_slice %440 {offsets = [0, 0], sizes = [8, 32], strides = [1, 1]} : vector<8x128xf32> to vector<8x32xf32>
    %443 = vector.extract_strided_slice %440 {offsets = [0, 32], sizes = [8, 32], strides = [1, 1]} : vector<8x128xf32> to vector<8x32xf32>
    %444 = vector.extract_strided_slice %441 {offsets = [0, 64], sizes = [8, 32], strides = [1, 1]} : vector<8x128xf32> to vector<8x32xf32>
    %445 = vector.extract_strided_slice %440 {offsets = [0, 96], sizes = [8, 32], strides = [1, 1]} : vector<8x128xf32> to vector<8x32xf32>
    %446 = arith.mulf %443, %429 : vector<8x32xf32>
    %447 = arith.mulf %442, %444 : vector<8x32xf32>
    %448 = arith.addf %446, %447 : vector<8x32xf32>
    %449 = math.tanh %448 : vector<8x32xf32>
    %450 = arith.mulf %445, %449 : vector<8x32xf32>
    %c32_181 = arith.constant 32 : index
    %c0_182 = arith.constant 0 : index
    %451 = vector.load %arg13[%c32_181, %c0_182] : memref<64x32xf32, #tpu.memory_space<vmem>>, vector<8x32xf32>
    tpu.vector_store %arg13[%c32_181, %c0_182], %450 {strides = array<i32>} : memref<64x32xf32, #tpu.memory_space<vmem>>, vector<8x32xf32>,
    %c40_183 = arith.constant 40 : index
    %c0_184 = arith.constant 0 : index
    %452 = vector.load %arg14[%c40_183, %c0_184] : memref<64x128xf32, #tpu.memory_space<vmem>>, vector<8x128xf32>
    %cst_185 = arith.constant dense<0.000000e+00> : vector<8x128xf32>
    %453 = tpu.matmul %450, %352, %cst_185 {dimension_numbers = #tpu.dot_dimension_numbers<[1], [0], [0], [1], [0, 0, 1, 1], [], []>} : vector<8x32xf32>, vector<32x128xf32>, vector<8x128xf32> -> vector<8x128xf32>
    %454 = arith.addf %452, %453 : vector<8x128xf32>
    %455 = arith.negf %454 : vector<8x128xf32>
    %456 = math.exp %455 : vector<8x128xf32>
    %cst_186 = arith.constant 1.000000e+00 : f32
    %457 = vector.broadcast %cst_186 : f32 to vector<8x128xf32>
    %458 = arith.addf %457, %456 : vector<8x128xf32>
    %459 = arith.divf %457, %458 : vector<8x128xf32>
    %460 = math.tanh %454 : vector<8x128xf32>
    %461 = vector.extract_strided_slice %459 {offsets = [0, 0], sizes = [8, 32], strides = [1, 1]} : vector<8x128xf32> to vector<8x32xf32>
    %462 = vector.extract_strided_slice %459 {offsets = [0, 32], sizes = [8, 32], strides = [1, 1]} : vector<8x128xf32> to vector<8x32xf32>
    %463 = vector.extract_strided_slice %460 {offsets = [0, 64], sizes = [8, 32], strides = [1, 1]} : vector<8x128xf32> to vector<8x32xf32>
    %464 = vector.extract_strided_slice %459 {offsets = [0, 96], sizes = [8, 32], strides = [1, 1]} : vector<8x128xf32> to vector<8x32xf32>
    %465 = arith.mulf %462, %448 : vector<8x32xf32>
    %466 = arith.mulf %461, %463 : vector<8x32xf32>
    %467 = arith.addf %465, %466 : vector<8x32xf32>
    %468 = math.tanh %467 : vector<8x32xf32>
    %469 = arith.mulf %464, %468 : vector<8x32xf32>
    %c40_187 = arith.constant 40 : index
    %c0_188 = arith.constant 0 : index
    %470 = vector.load %arg13[%c40_187, %c0_188] : memref<64x32xf32, #tpu.memory_space<vmem>>, vector<8x32xf32>
    tpu.vector_store %arg13[%c40_187, %c0_188], %469 {strides = array<i32>} : memref<64x32xf32, #tpu.memory_space<vmem>>, vector<8x32xf32>,
    %c48_189 = arith.constant 48 : index
    %c0_190 = arith.constant 0 : index
    %471 = vector.load %arg14[%c48_189, %c0_190] : memref<64x128xf32, #tpu.memory_space<vmem>>, vector<8x128xf32>
    %cst_191 = arith.constant dense<0.000000e+00> : vector<8x128xf32>
    %472 = tpu.matmul %469, %352, %cst_191 {dimension_numbers = #tpu.dot_dimension_numbers<[1], [0], [0], [1], [0, 0, 1, 1], [], []>} : vector<8x32xf32>, vector<32x128xf32>, vector<8x128xf32> -> vector<8x128xf32>
    %473 = arith.addf %471, %472 : vector<8x128xf32>
    %474 = arith.negf %473 : vector<8x128xf32>
    %475 = math.exp %474 : vector<8x128xf32>
    %cst_192 = arith.constant 1.000000e+00 : f32
    %476 = vector.broadcast %cst_192 : f32 to vector<8x128xf32>
    %477 = arith.addf %476, %475 : vector<8x128xf32>
    %478 = arith.divf %476, %477 : vector<8x128xf32>
    %479 = math.tanh %473 : vector<8x128xf32>
    %480 = vector.extract_strided_slice %478 {offsets = [0, 0], sizes = [8, 32], strides = [1, 1]} : vector<8x128xf32> to vector<8x32xf32>
    %481 = vector.extract_strided_slice %478 {offsets = [0, 32], sizes = [8, 32], strides = [1, 1]} : vector<8x128xf32> to vector<8x32xf32>
    %482 = vector.extract_strided_slice %479 {offsets = [0, 64], sizes = [8, 32], strides = [1, 1]} : vector<8x128xf32> to vector<8x32xf32>
    %483 = vector.extract_strided_slice %478 {offsets = [0, 96], sizes = [8, 32], strides = [1, 1]} : vector<8x128xf32> to vector<8x32xf32>
    %484 = arith.mulf %481, %467 : vector<8x32xf32>
    %485 = arith.mulf %480, %482 : vector<8x32xf32>
    %486 = arith.addf %484, %485 : vector<8x32xf32>
    %487 = math.tanh %486 : vector<8x32xf32>
    %488 = arith.mulf %483, %487 : vector<8x32xf32>
    %c48_193 = arith.constant 48 : index
    %c0_194 = arith.constant 0 : index
    %489 = vector.load %arg13[%c48_193, %c0_194] : memref<64x32xf32, #tpu.memory_space<vmem>>, vector<8x32xf32>
    tpu.vector_store %arg13[%c48_193, %c0_194], %488 {strides = array<i32>} : memref<64x32xf32, #tpu.memory_space<vmem>>, vector<8x32xf32>,
    %c56_195 = arith.constant 56 : index
    %c0_196 = arith.constant 0 : index
    %490 = vector.load %arg14[%c56_195, %c0_196] : memref<64x128xf32, #tpu.memory_space<vmem>>, vector<8x128xf32>
    %cst_197 = arith.constant dense<0.000000e+00> : vector<8x128xf32>
    %491 = tpu.matmul %488, %352, %cst_197 {dimension_numbers = #tpu.dot_dimension_numbers<[1], [0], [0], [1], [0, 0, 1, 1], [], []>} : vector<8x32xf32>, vector<32x128xf32>, vector<8x128xf32> -> vector<8x128xf32>
    %492 = arith.addf %490, %491 : vector<8x128xf32>
    %493 = arith.negf %492 : vector<8x128xf32>
    %494 = math.exp %493 : vector<8x128xf32>
    %cst_198 = arith.constant 1.000000e+00 : f32
    %495 = vector.broadcast %cst_198 : f32 to vector<8x128xf32>
    %496 = arith.addf %495, %494 : vector<8x128xf32>
    %497 = arith.divf %495, %496 : vector<8x128xf32>
    %498 = math.tanh %492 : vector<8x128xf32>
    %499 = vector.extract_strided_slice %497 {offsets = [0, 0], sizes = [8, 32], strides = [1, 1]} : vector<8x128xf32> to vector<8x32xf32>
    %500 = vector.extract_strided_slice %497 {offsets = [0, 32], sizes = [8, 32], strides = [1, 1]} : vector<8x128xf32> to vector<8x32xf32>
    %501 = vector.extract_strided_slice %498 {offsets = [0, 64], sizes = [8, 32], strides = [1, 1]} : vector<8x128xf32> to vector<8x32xf32>
    %502 = vector.extract_strided_slice %497 {offsets = [0, 96], sizes = [8, 32], strides = [1, 1]} : vector<8x128xf32> to vector<8x32xf32>
    %503 = arith.mulf %500, %486 : vector<8x32xf32>
    %504 = arith.mulf %499, %501 : vector<8x32xf32>
    %505 = arith.addf %503, %504 : vector<8x32xf32>
    %506 = math.tanh %505 : vector<8x32xf32>
    %507 = arith.mulf %502, %506 : vector<8x32xf32>
    %c56_199 = arith.constant 56 : index
    %c0_200 = arith.constant 0 : index
    %508 = vector.load %arg13[%c56_199, %c0_200] : memref<64x32xf32, #tpu.memory_space<vmem>>, vector<8x32xf32>
    tpu.vector_store %arg13[%c56_199, %c0_200], %507 {strides = array<i32>} : memref<64x32xf32, #tpu.memory_space<vmem>>, vector<8x32xf32>,
    %c2_201 = arith.constant 2 : index
    %c0_202 = arith.constant 0 : index
    %c0_203 = arith.constant 0 : index
    %509 = vector.load %arg11[%c2_201, %c0_202, %c0_203] : memref<4x8x32xf32, #tpu.memory_space<vmem>>, vector<1x8x32xf32>
    %510 = vector.shape_cast %509 : vector<1x8x32xf32> to vector<8x32xf32>
    %511 = vector.shape_cast %507 : vector<8x32xf32> to vector<1x8x32xf32>
    tpu.vector_store %arg11[%c2_201, %c0_202, %c0_203], %511 {strides = array<i32>} : memref<4x8x32xf32, #tpu.memory_space<vmem>>, vector<1x8x32xf32>,
    %c2_204 = arith.constant 2 : index
    %c0_205 = arith.constant 0 : index
    %c0_206 = arith.constant 0 : index
    %512 = vector.load %arg12[%c2_204, %c0_205, %c0_206] : memref<4x8x32xf32, #tpu.memory_space<vmem>>, vector<1x8x32xf32>
    %513 = vector.shape_cast %512 : vector<1x8x32xf32> to vector<8x32xf32>
    %514 = vector.shape_cast %505 : vector<8x32xf32> to vector<1x8x32xf32>
    tpu.vector_store %arg12[%c2_204, %c0_205, %c0_206], %514 {strides = array<i32>} : memref<4x8x32xf32, #tpu.memory_space<vmem>>, vector<1x8x32xf32>,
    %c0_207 = arith.constant 0 : index
    %c0_208 = arith.constant 0 : index
    %515 = vector.load %arg13[%c0_207, %c0_208] : memref<64x32xf32, #tpu.memory_space<vmem>>, vector<64x32xf32>
    %c2_209 = arith.constant 2 : index
    %c0_210 = arith.constant 0 : index
    %c0_211 = arith.constant 0 : index
    %516 = vector.load %arg3[%c2_209, %c0_210, %c0_211] : memref<3x32x128xf32, #tpu.memory_space<vmem>>, vector<1x32x128xf32>
    %517 = vector.shape_cast %516 : vector<1x32x128xf32> to vector<32x128xf32>
    %c3 = arith.constant 3 : index
    %c0_212 = arith.constant 0 : index
    %518 = vector.load %arg5[%c3, %c0_212] : memref<4x128xf32, #tpu.memory_space<vmem>>, vector<1x128xf32>
    %cst_213 = arith.constant dense<0.000000e+00> : vector<64x128xf32>
    %519 = tpu.matmul %515, %517, %cst_213 {dimension_numbers = #tpu.dot_dimension_numbers<[1], [0], [0], [1], [0, 0, 1, 1], [], []>} : vector<64x32xf32>, vector<32x128xf32>, vector<64x128xf32> -> vector<64x128xf32>
    %520 = vector.broadcast %518 : vector<1x128xf32> to vector<64x128xf32>
    %521 = arith.addf %519, %520 : vector<64x128xf32>
    %c0_214 = arith.constant 0 : index
    %c0_215 = arith.constant 0 : index
    %522 = vector.load %arg14[%c0_214, %c0_215] : memref<64x128xf32, #tpu.memory_space<vmem>>, vector<64x128xf32>
    tpu.vector_store %arg14[%c0_214, %c0_215], %521 {strides = array<i32>} : memref<64x128xf32, #tpu.memory_space<vmem>>, vector<64x128xf32>,
    %c3_216 = arith.constant 3 : index
    %c0_217 = arith.constant 0 : index
    %c0_218 = arith.constant 0 : index
    %523 = vector.load %arg4[%c3_216, %c0_217, %c0_218] : memref<4x32x128xf32, #tpu.memory_space<vmem>>, vector<1x32x128xf32>
    %524 = vector.shape_cast %523 : vector<1x32x128xf32> to vector<32x128xf32>
    %c3_219 = arith.constant 3 : index
    %c0_220 = arith.constant 0 : index
    %c0_221 = arith.constant 0 : index
    %525 = vector.load %arg6[%c3_219, %c0_220, %c0_221] : memref<4x8x32xf32, #tpu.memory_space<vmem>>, vector<1x8x32xf32>
    %526 = vector.shape_cast %525 : vector<1x8x32xf32> to vector<8x32xf32>
    %c3_222 = arith.constant 3 : index
    %c0_223 = arith.constant 0 : index
    %c0_224 = arith.constant 0 : index
    %527 = vector.load %arg7[%c3_222, %c0_223, %c0_224] : memref<4x8x32xf32, #tpu.memory_space<vmem>>, vector<1x8x32xf32>
    %528 = vector.shape_cast %527 : vector<1x8x32xf32> to vector<8x32xf32>
    %c0_225 = arith.constant 0 : index
    %c0_226 = arith.constant 0 : index
    %529 = vector.load %arg14[%c0_225, %c0_226] : memref<64x128xf32, #tpu.memory_space<vmem>>, vector<8x128xf32>
    %cst_227 = arith.constant dense<0.000000e+00> : vector<8x128xf32>
    %530 = tpu.matmul %526, %524, %cst_227 {dimension_numbers = #tpu.dot_dimension_numbers<[1], [0], [0], [1], [0, 0, 1, 1], [], []>} : vector<8x32xf32>, vector<32x128xf32>, vector<8x128xf32> -> vector<8x128xf32>
    %531 = arith.addf %529, %530 : vector<8x128xf32>
    %532 = arith.negf %531 : vector<8x128xf32>
    %533 = math.exp %532 : vector<8x128xf32>
    %cst_228 = arith.constant 1.000000e+00 : f32
    %534 = vector.broadcast %cst_228 : f32 to vector<8x128xf32>
    %535 = arith.addf %534, %533 : vector<8x128xf32>
    %536 = arith.divf %534, %535 : vector<8x128xf32>
    %537 = math.tanh %531 : vector<8x128xf32>
    %538 = vector.extract_strided_slice %536 {offsets = [0, 0], sizes = [8, 32], strides = [1, 1]} : vector<8x128xf32> to vector<8x32xf32>
    %539 = vector.extract_strided_slice %536 {offsets = [0, 32], sizes = [8, 32], strides = [1, 1]} : vector<8x128xf32> to vector<8x32xf32>
    %540 = vector.extract_strided_slice %537 {offsets = [0, 64], sizes = [8, 32], strides = [1, 1]} : vector<8x128xf32> to vector<8x32xf32>
    %541 = vector.extract_strided_slice %536 {offsets = [0, 96], sizes = [8, 32], strides = [1, 1]} : vector<8x128xf32> to vector<8x32xf32>
    %542 = arith.mulf %539, %528 : vector<8x32xf32>
    %543 = arith.mulf %538, %540 : vector<8x32xf32>
    %544 = arith.addf %542, %543 : vector<8x32xf32>
    %545 = math.tanh %544 : vector<8x32xf32>
    %546 = arith.mulf %541, %545 : vector<8x32xf32>
    %c0_229 = arith.constant 0 : index
    %c0_230 = arith.constant 0 : index
    %547 = vector.load %arg13[%c0_229, %c0_230] : memref<64x32xf32, #tpu.memory_space<vmem>>, vector<8x32xf32>
    tpu.vector_store %arg13[%c0_229, %c0_230], %546 {strides = array<i32>} : memref<64x32xf32, #tpu.memory_space<vmem>>, vector<8x32xf32>,
    %c8_231 = arith.constant 8 : index
    %c0_232 = arith.constant 0 : index
    %548 = vector.load %arg14[%c8_231, %c0_232] : memref<64x128xf32, #tpu.memory_space<vmem>>, vector<8x128xf32>
    %cst_233 = arith.constant dense<0.000000e+00> : vector<8x128xf32>
    %549 = tpu.matmul %546, %524, %cst_233 {dimension_numbers = #tpu.dot_dimension_numbers<[1], [0], [0], [1], [0, 0, 1, 1], [], []>} : vector<8x32xf32>, vector<32x128xf32>, vector<8x128xf32> -> vector<8x128xf32>
    %550 = arith.addf %548, %549 : vector<8x128xf32>
    %551 = arith.negf %550 : vector<8x128xf32>
    %552 = math.exp %551 : vector<8x128xf32>
    %cst_234 = arith.constant 1.000000e+00 : f32
    %553 = vector.broadcast %cst_234 : f32 to vector<8x128xf32>
    %554 = arith.addf %553, %552 : vector<8x128xf32>
    %555 = arith.divf %553, %554 : vector<8x128xf32>
    %556 = math.tanh %550 : vector<8x128xf32>
    %557 = vector.extract_strided_slice %555 {offsets = [0, 0], sizes = [8, 32], strides = [1, 1]} : vector<8x128xf32> to vector<8x32xf32>
    %558 = vector.extract_strided_slice %555 {offsets = [0, 32], sizes = [8, 32], strides = [1, 1]} : vector<8x128xf32> to vector<8x32xf32>
    %559 = vector.extract_strided_slice %556 {offsets = [0, 64], sizes = [8, 32], strides = [1, 1]} : vector<8x128xf32> to vector<8x32xf32>
    %560 = vector.extract_strided_slice %555 {offsets = [0, 96], sizes = [8, 32], strides = [1, 1]} : vector<8x128xf32> to vector<8x32xf32>
    %561 = arith.mulf %558, %544 : vector<8x32xf32>
    %562 = arith.mulf %557, %559 : vector<8x32xf32>
    %563 = arith.addf %561, %562 : vector<8x32xf32>
    %564 = math.tanh %563 : vector<8x32xf32>
    %565 = arith.mulf %560, %564 : vector<8x32xf32>
    %c8_235 = arith.constant 8 : index
    %c0_236 = arith.constant 0 : index
    %566 = vector.load %arg13[%c8_235, %c0_236] : memref<64x32xf32, #tpu.memory_space<vmem>>, vector<8x32xf32>
    tpu.vector_store %arg13[%c8_235, %c0_236], %565 {strides = array<i32>} : memref<64x32xf32, #tpu.memory_space<vmem>>, vector<8x32xf32>,
    %c16_237 = arith.constant 16 : index
    %c0_238 = arith.constant 0 : index
    %567 = vector.load %arg14[%c16_237, %c0_238] : memref<64x128xf32, #tpu.memory_space<vmem>>, vector<8x128xf32>
    %cst_239 = arith.constant dense<0.000000e+00> : vector<8x128xf32>
    %568 = tpu.matmul %565, %524, %cst_239 {dimension_numbers = #tpu.dot_dimension_numbers<[1], [0], [0], [1], [0, 0, 1, 1], [], []>} : vector<8x32xf32>, vector<32x128xf32>, vector<8x128xf32> -> vector<8x128xf32>
    %569 = arith.addf %567, %568 : vector<8x128xf32>
    %570 = arith.negf %569 : vector<8x128xf32>
    %571 = math.exp %570 : vector<8x128xf32>
    %cst_240 = arith.constant 1.000000e+00 : f32
    %572 = vector.broadcast %cst_240 : f32 to vector<8x128xf32>
    %573 = arith.addf %572, %571 : vector<8x128xf32>
    %574 = arith.divf %572, %573 : vector<8x128xf32>
    %575 = math.tanh %569 : vector<8x128xf32>
    %576 = vector.extract_strided_slice %574 {offsets = [0, 0], sizes = [8, 32], strides = [1, 1]} : vector<8x128xf32> to vector<8x32xf32>
    %577 = vector.extract_strided_slice %574 {offsets = [0, 32], sizes = [8, 32], strides = [1, 1]} : vector<8x128xf32> to vector<8x32xf32>
    %578 = vector.extract_strided_slice %575 {offsets = [0, 64], sizes = [8, 32], strides = [1, 1]} : vector<8x128xf32> to vector<8x32xf32>
    %579 = vector.extract_strided_slice %574 {offsets = [0, 96], sizes = [8, 32], strides = [1, 1]} : vector<8x128xf32> to vector<8x32xf32>
    %580 = arith.mulf %577, %563 : vector<8x32xf32>
    %581 = arith.mulf %576, %578 : vector<8x32xf32>
    %582 = arith.addf %580, %581 : vector<8x32xf32>
    %583 = math.tanh %582 : vector<8x32xf32>
    %584 = arith.mulf %579, %583 : vector<8x32xf32>
    %c16_241 = arith.constant 16 : index
    %c0_242 = arith.constant 0 : index
    %585 = vector.load %arg13[%c16_241, %c0_242] : memref<64x32xf32, #tpu.memory_space<vmem>>, vector<8x32xf32>
    tpu.vector_store %arg13[%c16_241, %c0_242], %584 {strides = array<i32>} : memref<64x32xf32, #tpu.memory_space<vmem>>, vector<8x32xf32>,
    %c24_243 = arith.constant 24 : index
    %c0_244 = arith.constant 0 : index
    %586 = vector.load %arg14[%c24_243, %c0_244] : memref<64x128xf32, #tpu.memory_space<vmem>>, vector<8x128xf32>
    %cst_245 = arith.constant dense<0.000000e+00> : vector<8x128xf32>
    %587 = tpu.matmul %584, %524, %cst_245 {dimension_numbers = #tpu.dot_dimension_numbers<[1], [0], [0], [1], [0, 0, 1, 1], [], []>} : vector<8x32xf32>, vector<32x128xf32>, vector<8x128xf32> -> vector<8x128xf32>
    %588 = arith.addf %586, %587 : vector<8x128xf32>
    %589 = arith.negf %588 : vector<8x128xf32>
    %590 = math.exp %589 : vector<8x128xf32>
    %cst_246 = arith.constant 1.000000e+00 : f32
    %591 = vector.broadcast %cst_246 : f32 to vector<8x128xf32>
    %592 = arith.addf %591, %590 : vector<8x128xf32>
    %593 = arith.divf %591, %592 : vector<8x128xf32>
    %594 = math.tanh %588 : vector<8x128xf32>
    %595 = vector.extract_strided_slice %593 {offsets = [0, 0], sizes = [8, 32], strides = [1, 1]} : vector<8x128xf32> to vector<8x32xf32>
    %596 = vector.extract_strided_slice %593 {offsets = [0, 32], sizes = [8, 32], strides = [1, 1]} : vector<8x128xf32> to vector<8x32xf32>
    %597 = vector.extract_strided_slice %594 {offsets = [0, 64], sizes = [8, 32], strides = [1, 1]} : vector<8x128xf32> to vector<8x32xf32>
    %598 = vector.extract_strided_slice %593 {offsets = [0, 96], sizes = [8, 32], strides = [1, 1]} : vector<8x128xf32> to vector<8x32xf32>
    %599 = arith.mulf %596, %582 : vector<8x32xf32>
    %600 = arith.mulf %595, %597 : vector<8x32xf32>
    %601 = arith.addf %599, %600 : vector<8x32xf32>
    %602 = math.tanh %601 : vector<8x32xf32>
    %603 = arith.mulf %598, %602 : vector<8x32xf32>
    %c24_247 = arith.constant 24 : index
    %c0_248 = arith.constant 0 : index
    %604 = vector.load %arg13[%c24_247, %c0_248] : memref<64x32xf32, #tpu.memory_space<vmem>>, vector<8x32xf32>
    tpu.vector_store %arg13[%c24_247, %c0_248], %603 {strides = array<i32>} : memref<64x32xf32, #tpu.memory_space<vmem>>, vector<8x32xf32>,
    %c32_249 = arith.constant 32 : index
    %c0_250 = arith.constant 0 : index
    %605 = vector.load %arg14[%c32_249, %c0_250] : memref<64x128xf32, #tpu.memory_space<vmem>>, vector<8x128xf32>
    %cst_251 = arith.constant dense<0.000000e+00> : vector<8x128xf32>
    %606 = tpu.matmul %603, %524, %cst_251 {dimension_numbers = #tpu.dot_dimension_numbers<[1], [0], [0], [1], [0, 0, 1, 1], [], []>} : vector<8x32xf32>, vector<32x128xf32>, vector<8x128xf32> -> vector<8x128xf32>
    %607 = arith.addf %605, %606 : vector<8x128xf32>
    %608 = arith.negf %607 : vector<8x128xf32>
    %609 = math.exp %608 : vector<8x128xf32>
    %cst_252 = arith.constant 1.000000e+00 : f32
    %610 = vector.broadcast %cst_252 : f32 to vector<8x128xf32>
    %611 = arith.addf %610, %609 : vector<8x128xf32>
    %612 = arith.divf %610, %611 : vector<8x128xf32>
    %613 = math.tanh %607 : vector<8x128xf32>
    %614 = vector.extract_strided_slice %612 {offsets = [0, 0], sizes = [8, 32], strides = [1, 1]} : vector<8x128xf32> to vector<8x32xf32>
    %615 = vector.extract_strided_slice %612 {offsets = [0, 32], sizes = [8, 32], strides = [1, 1]} : vector<8x128xf32> to vector<8x32xf32>
    %616 = vector.extract_strided_slice %613 {offsets = [0, 64], sizes = [8, 32], strides = [1, 1]} : vector<8x128xf32> to vector<8x32xf32>
    %617 = vector.extract_strided_slice %612 {offsets = [0, 96], sizes = [8, 32], strides = [1, 1]} : vector<8x128xf32> to vector<8x32xf32>
    %618 = arith.mulf %615, %601 : vector<8x32xf32>
    %619 = arith.mulf %614, %616 : vector<8x32xf32>
    %620 = arith.addf %618, %619 : vector<8x32xf32>
    %621 = math.tanh %620 : vector<8x32xf32>
    %622 = arith.mulf %617, %621 : vector<8x32xf32>
    %c32_253 = arith.constant 32 : index
    %c0_254 = arith.constant 0 : index
    %623 = vector.load %arg13[%c32_253, %c0_254] : memref<64x32xf32, #tpu.memory_space<vmem>>, vector<8x32xf32>
    tpu.vector_store %arg13[%c32_253, %c0_254], %622 {strides = array<i32>} : memref<64x32xf32, #tpu.memory_space<vmem>>, vector<8x32xf32>,
    %c40_255 = arith.constant 40 : index
    %c0_256 = arith.constant 0 : index
    %624 = vector.load %arg14[%c40_255, %c0_256] : memref<64x128xf32, #tpu.memory_space<vmem>>, vector<8x128xf32>
    %cst_257 = arith.constant dense<0.000000e+00> : vector<8x128xf32>
    %625 = tpu.matmul %622, %524, %cst_257 {dimension_numbers = #tpu.dot_dimension_numbers<[1], [0], [0], [1], [0, 0, 1, 1], [], []>} : vector<8x32xf32>, vector<32x128xf32>, vector<8x128xf32> -> vector<8x128xf32>
    %626 = arith.addf %624, %625 : vector<8x128xf32>
    %627 = arith.negf %626 : vector<8x128xf32>
    %628 = math.exp %627 : vector<8x128xf32>
    %cst_258 = arith.constant 1.000000e+00 : f32
    %629 = vector.broadcast %cst_258 : f32 to vector<8x128xf32>
    %630 = arith.addf %629, %628 : vector<8x128xf32>
    %631 = arith.divf %629, %630 : vector<8x128xf32>
    %632 = math.tanh %626 : vector<8x128xf32>
    %633 = vector.extract_strided_slice %631 {offsets = [0, 0], sizes = [8, 32], strides = [1, 1]} : vector<8x128xf32> to vector<8x32xf32>
    %634 = vector.extract_strided_slice %631 {offsets = [0, 32], sizes = [8, 32], strides = [1, 1]} : vector<8x128xf32> to vector<8x32xf32>
    %635 = vector.extract_strided_slice %632 {offsets = [0, 64], sizes = [8, 32], strides = [1, 1]} : vector<8x128xf32> to vector<8x32xf32>
    %636 = vector.extract_strided_slice %631 {offsets = [0, 96], sizes = [8, 32], strides = [1, 1]} : vector<8x128xf32> to vector<8x32xf32>
    %637 = arith.mulf %634, %620 : vector<8x32xf32>
    %638 = arith.mulf %633, %635 : vector<8x32xf32>
    %639 = arith.addf %637, %638 : vector<8x32xf32>
    %640 = math.tanh %639 : vector<8x32xf32>
    %641 = arith.mulf %636, %640 : vector<8x32xf32>
    %c40_259 = arith.constant 40 : index
    %c0_260 = arith.constant 0 : index
    %642 = vector.load %arg13[%c40_259, %c0_260] : memref<64x32xf32, #tpu.memory_space<vmem>>, vector<8x32xf32>
    tpu.vector_store %arg13[%c40_259, %c0_260], %641 {strides = array<i32>} : memref<64x32xf32, #tpu.memory_space<vmem>>, vector<8x32xf32>,
    %c48_261 = arith.constant 48 : index
    %c0_262 = arith.constant 0 : index
    %643 = vector.load %arg14[%c48_261, %c0_262] : memref<64x128xf32, #tpu.memory_space<vmem>>, vector<8x128xf32>
    %cst_263 = arith.constant dense<0.000000e+00> : vector<8x128xf32>
    %644 = tpu.matmul %641, %524, %cst_263 {dimension_numbers = #tpu.dot_dimension_numbers<[1], [0], [0], [1], [0, 0, 1, 1], [], []>} : vector<8x32xf32>, vector<32x128xf32>, vector<8x128xf32> -> vector<8x128xf32>
    %645 = arith.addf %643, %644 : vector<8x128xf32>
    %646 = arith.negf %645 : vector<8x128xf32>
    %647 = math.exp %646 : vector<8x128xf32>
    %cst_264 = arith.constant 1.000000e+00 : f32
    %648 = vector.broadcast %cst_264 : f32 to vector<8x128xf32>
    %649 = arith.addf %648, %647 : vector<8x128xf32>
    %650 = arith.divf %648, %649 : vector<8x128xf32>
    %651 = math.tanh %645 : vector<8x128xf32>
    %652 = vector.extract_strided_slice %650 {offsets = [0, 0], sizes = [8, 32], strides = [1, 1]} : vector<8x128xf32> to vector<8x32xf32>
    %653 = vector.extract_strided_slice %650 {offsets = [0, 32], sizes = [8, 32], strides = [1, 1]} : vector<8x128xf32> to vector<8x32xf32>
    %654 = vector.extract_strided_slice %651 {offsets = [0, 64], sizes = [8, 32], strides = [1, 1]} : vector<8x128xf32> to vector<8x32xf32>
    %655 = vector.extract_strided_slice %650 {offsets = [0, 96], sizes = [8, 32], strides = [1, 1]} : vector<8x128xf32> to vector<8x32xf32>
    %656 = arith.mulf %653, %639 : vector<8x32xf32>
    %657 = arith.mulf %652, %654 : vector<8x32xf32>
    %658 = arith.addf %656, %657 : vector<8x32xf32>
    %659 = math.tanh %658 : vector<8x32xf32>
    %660 = arith.mulf %655, %659 : vector<8x32xf32>
    %c48_265 = arith.constant 48 : index
    %c0_266 = arith.constant 0 : index
    %661 = vector.load %arg13[%c48_265, %c0_266] : memref<64x32xf32, #tpu.memory_space<vmem>>, vector<8x32xf32>
    tpu.vector_store %arg13[%c48_265, %c0_266], %660 {strides = array<i32>} : memref<64x32xf32, #tpu.memory_space<vmem>>, vector<8x32xf32>,
    %c56_267 = arith.constant 56 : index
    %c0_268 = arith.constant 0 : index
    %662 = vector.load %arg14[%c56_267, %c0_268] : memref<64x128xf32, #tpu.memory_space<vmem>>, vector<8x128xf32>
    %cst_269 = arith.constant dense<0.000000e+00> : vector<8x128xf32>
    %663 = tpu.matmul %660, %524, %cst_269 {dimension_numbers = #tpu.dot_dimension_numbers<[1], [0], [0], [1], [0, 0, 1, 1], [], []>} : vector<8x32xf32>, vector<32x128xf32>, vector<8x128xf32> -> vector<8x128xf32>
    %664 = arith.addf %662, %663 : vector<8x128xf32>
    %665 = arith.negf %664 : vector<8x128xf32>
    %666 = math.exp %665 : vector<8x128xf32>
    %cst_270 = arith.constant 1.000000e+00 : f32
    %667 = vector.broadcast %cst_270 : f32 to vector<8x128xf32>
    %668 = arith.addf %667, %666 : vector<8x128xf32>
    %669 = arith.divf %667, %668 : vector<8x128xf32>
    %670 = math.tanh %664 : vector<8x128xf32>
    %671 = vector.extract_strided_slice %669 {offsets = [0, 0], sizes = [8, 32], strides = [1, 1]} : vector<8x128xf32> to vector<8x32xf32>
    %672 = vector.extract_strided_slice %669 {offsets = [0, 32], sizes = [8, 32], strides = [1, 1]} : vector<8x128xf32> to vector<8x32xf32>
    %673 = vector.extract_strided_slice %670 {offsets = [0, 64], sizes = [8, 32], strides = [1, 1]} : vector<8x128xf32> to vector<8x32xf32>
    %674 = vector.extract_strided_slice %669 {offsets = [0, 96], sizes = [8, 32], strides = [1, 1]} : vector<8x128xf32> to vector<8x32xf32>
    %675 = arith.mulf %672, %658 : vector<8x32xf32>
    %676 = arith.mulf %671, %673 : vector<8x32xf32>
    %677 = arith.addf %675, %676 : vector<8x32xf32>
    %678 = math.tanh %677 : vector<8x32xf32>
    %679 = arith.mulf %674, %678 : vector<8x32xf32>
    %c56_271 = arith.constant 56 : index
    %c0_272 = arith.constant 0 : index
    %680 = vector.load %arg13[%c56_271, %c0_272] : memref<64x32xf32, #tpu.memory_space<vmem>>, vector<8x32xf32>
    tpu.vector_store %arg13[%c56_271, %c0_272], %679 {strides = array<i32>} : memref<64x32xf32, #tpu.memory_space<vmem>>, vector<8x32xf32>,
    %c3_273 = arith.constant 3 : index
    %c0_274 = arith.constant 0 : index
    %c0_275 = arith.constant 0 : index
    %681 = vector.load %arg11[%c3_273, %c0_274, %c0_275] : memref<4x8x32xf32, #tpu.memory_space<vmem>>, vector<1x8x32xf32>
    %682 = vector.shape_cast %681 : vector<1x8x32xf32> to vector<8x32xf32>
    %683 = vector.shape_cast %679 : vector<8x32xf32> to vector<1x8x32xf32>
    tpu.vector_store %arg11[%c3_273, %c0_274, %c0_275], %683 {strides = array<i32>} : memref<4x8x32xf32, #tpu.memory_space<vmem>>, vector<1x8x32xf32>,
    %c3_276 = arith.constant 3 : index
    %c0_277 = arith.constant 0 : index
    %c0_278 = arith.constant 0 : index
    %684 = vector.load %arg12[%c3_276, %c0_277, %c0_278] : memref<4x8x32xf32, #tpu.memory_space<vmem>>, vector<1x8x32xf32>
    %685 = vector.shape_cast %684 : vector<1x8x32xf32> to vector<8x32xf32>
    %686 = vector.shape_cast %677 : vector<8x32xf32> to vector<1x8x32xf32>
    tpu.vector_store %arg12[%c3_276, %c0_277, %c0_278], %686 {strides = array<i32>} : memref<4x8x32xf32, #tpu.memory_space<vmem>>, vector<1x8x32xf32>,
    %c0_279 = arith.constant 0 : index
    %c0_280 = arith.constant 0 : index
    %687 = vector.load %arg8[%c0_279, %c0_280] : memref<1x32xf32, #tpu.memory_space<vmem>>, vector<1x32xf32>
    %688 = vector.broadcast %687 : vector<1x32xf32> to vector<8x32xf32>
    %689 = arith.mulf %679, %688 : vector<8x32xf32>
    %cst_281 = arith.constant dense<0.000000e+00> : vector<8xf32>
    %690 = vector.multi_reduction <add>, %689, %cst_281 [1] : vector<8x32xf32> to vector<8xf32>
    %691 = vector.shape_cast %690 : vector<8xf32> to vector<8x1xf32>
    %c0_282 = arith.constant 0 : index
    %c0_283 = arith.constant 0 : index
    %692 = vector.load %arg9[%c0_282, %c0_283] : memref<1x1xf32, #tpu.memory_space<vmem>>, vector<1x1xf32>
    %693 = vector.broadcast %692 : vector<1x1xf32> to vector<8x1xf32>
    %694 = arith.addf %691, %693 : vector<8x1xf32>
    %c0_284 = arith.constant 0 : index
    %c0_285 = arith.constant 0 : index
    %695 = vector.load %arg10[%c0_284, %c0_285] : memref<8x1xf32, #tpu.memory_space<vmem>>, vector<8x1xf32>
    tpu.vector_store %arg10[%c0_284, %c0_285], %694 {strides = array<i32>} : memref<8x1xf32, #tpu.memory_space<vmem>>, vector<8x1xf32>,
    return
  }
  func.func @transform_0(%arg0: i32) -> (i32, i32) {
    %c0_i32 = arith.constant 0 : i32
    %c0_i32_0 = arith.constant 0 : i32
    %c0_i32_1 = arith.constant 0 : i32
    return %c0_i32, %c0_i32_0 : i32, i32
  }
  func.func @transform_1(%arg0: i32) -> (i32, i32) {
    %c0_i32 = arith.constant 0 : i32
    %c0_i32_0 = arith.constant 0 : i32
    %c0_i32_1 = arith.constant 0 : i32
    return %c0_i32, %c0_i32_0 : i32, i32
  }
  func.func @transform_2(%arg0: i32) -> (i32, i32, i32) {
    %c0_i32 = arith.constant 0 : i32
    %c0_i32_0 = arith.constant 0 : i32
    %c0_i32_1 = arith.constant 0 : i32
    %c0_i32_2 = arith.constant 0 : i32
    return %c0_i32, %c0_i32_0, %c0_i32_1 : i32, i32, i32
  }
  func.func @transform_3(%arg0: i32) -> (i32, i32, i32) {
    %c0_i32 = arith.constant 0 : i32
    %c0_i32_0 = arith.constant 0 : i32
    %c0_i32_1 = arith.constant 0 : i32
    %c0_i32_2 = arith.constant 0 : i32
    return %c0_i32, %c0_i32_0, %c0_i32_1 : i32, i32, i32
  }
  func.func @transform_4(%arg0: i32) -> (i32, i32) {
    %c0_i32 = arith.constant 0 : i32
    %c0_i32_0 = arith.constant 0 : i32
    %c0_i32_1 = arith.constant 0 : i32
    return %c0_i32, %c0_i32_0 : i32, i32
  }
  func.func @transform_5(%arg0: i32) -> (i32, i32, i32) {
    %c0_i32 = arith.constant 0 : i32
    %c0_i32_0 = arith.constant 0 : i32
    %c0_i32_1 = arith.constant 0 : i32
    %c0_i32_2 = arith.constant 0 : i32
    return %c0_i32, %c0_i32_0, %c0_i32_1 : i32, i32, i32
  }
  func.func @transform_6(%arg0: i32) -> (i32, i32, i32) {
    %c0_i32 = arith.constant 0 : i32
    %c0_i32_0 = arith.constant 0 : i32
    %c0_i32_1 = arith.constant 0 : i32
    %c0_i32_2 = arith.constant 0 : i32
    return %c0_i32, %c0_i32_0, %c0_i32_1 : i32, i32, i32
  }
  func.func @transform_7(%arg0: i32) -> (i32, i32) {
    %c0_i32 = arith.constant 0 : i32
    %c0_i32_0 = arith.constant 0 : i32
    %c0_i32_1 = arith.constant 0 : i32
    return %c0_i32, %c0_i32_0 : i32, i32
  }
  func.func @transform_8(%arg0: i32) -> (i32, i32) {
    %c0_i32 = arith.constant 0 : i32
    %c0_i32_0 = arith.constant 0 : i32
    %c0_i32_1 = arith.constant 0 : i32
    return %c0_i32, %c0_i32_0 : i32, i32
  }
  func.func @transform_9(%arg0: i32) -> (i32, i32) {
    %c0_i32 = arith.constant 0 : i32
    %c0_i32_0 = arith.constant 0 : i32
    %c0_i32_1 = arith.constant 0 : i32
    return %c0_i32, %c0_i32_0 : i32, i32
  }
  func.func @transform_10(%arg0: i32) -> (i32, i32, i32) {
    %c0_i32 = arith.constant 0 : i32
    %c0_i32_0 = arith.constant 0 : i32
    %c0_i32_1 = arith.constant 0 : i32
    %c0_i32_2 = arith.constant 0 : i32
    return %c0_i32, %c0_i32_0, %c0_i32_1 : i32, i32, i32
  }
  func.func @transform_11(%arg0: i32) -> (i32, i32, i32) {
    %c0_i32 = arith.constant 0 : i32
    %c0_i32_0 = arith.constant 0 : i32
    %c0_i32_1 = arith.constant 0 : i32
    %c0_i32_2 = arith.constant 0 : i32
    return %c0_i32, %c0_i32_0, %c0_i32_1 : i32, i32, i32
  }
}

</mosaic_0001>

<bundles_post_ra>
// kernel: tpu_custom_call.1
= control target key start
LH: loop header
LB: loop body
LE: loop exit
PB: predicated region body
PF: predicated region fallthrough
CT: control target
= control target key end

     0   :  { %s6107_s0 = inlined_call_operand.vmem [shape: f32[64,16], index: 0, kind: input, shape index: {}]   ;;  %s6108_s1 = inlined_call_operand.vmem [shape: f32[16,128], index: 1, kind: input, shape index: {}]   ;;  %s6109_s2 = inlined_call_operand.hbm [shape: f32[3,32,128], index: 2, kind: input, shape index: {}]   ;;  %s6110_s3 = inlined_call_operand.hbm [shape: f32[4,32,128], index: 3, kind: input, shape index: {}]   ;;  %s6111_s4 = inlined_call_operand.vmem [shape: f32[4,128], index: 4, kind: input, shape index: {}]   ;;  %s6112_s5 = inlined_call_operand.vmem [shape: f32[4,8,32], index: 5, kind: input, shape index: {}]   ;;  %s6113_s6 = inlined_call_operand.vmem [shape: f32[4,8,32], index: 6, kind: input, shape index: {}]   ;;  %s6114_s7 = inlined_call_operand.vmem [shape: f32[1,32], index: 7, kind: input, shape index: {}]   ;;  %s6115_s8 = inlined_call_operand.<no memory space> [shape: f32[1,1], index: 8, kind: input, shape index: {}]   ;;  %s6116_s9 = inlined_call_operand.vmem [shape: f32[8,1], index: 9, kind: output, shape index: {0}]   ;;  %s6117_s10 = inlined_call_operand.hbm [shape: f32[4,8,32], index: 10, kind: output, shape index: {1}]   ;;  %s6118_s11 = inlined_call_operand.hbm [shape: f32[4,8,32], index: 11, kind: output, shape index: {2}]  }
   0x1   :  { %v17_v0 = vstv %s6115_s8 }
   0x2   :  { %18 = vst [vmem:[#allocation4] sm:$0x1] %v17_v0 }
   0x3   :  { %19 = vsyncpa [#allocation6], 0 }
   0x4   :  { %20 = vsyncpa [#allocation9], 0 }
   0x5   :  { %21 = vsyncpa [#allocation7], 0 }
   0x6   :  { %22 = vsyncpa [#allocation12], 0  ;;  %s5226_s19 = smov [#allocation5]  }
   0x7   :  { %s32_s20 = sshll.u32 %s5226_s19, 4  ;;  %s33_s20 = int_to_ptr.vmem [resolvable:$true] %s32_s20 }
   0x8   :  { %s5146_s21 = scalar_lea.vmem %s33_s20, 1536  ;;  %p5151_p1 = scmp.lt.s32.totalorder %s33_s20, %s33_s20 }
   0x9   :  { %p5147_p0 = scmp.ne.s32.totalorder %s33_s20, %s5146_s21  ;;  %p5152_p2 = scmp.lt.s32.totalorder %s5146_s21, %s5146_s21 }
   0xb   :  { %p5153_p3 = por %p5152_p2, %p5151_p1 }
   0xd   :  { %p5154_p4 = pnand %p5153_p3, %p5147_p0 }
   0xf   :  { %5157 = shalt.err (!%p5154_p4)
}
  0x10   :  { %s5227_s22 = smov 128   ;;  %s5228_s23 = smov 8  }
  0x11   :  { %38 = dma.hbm_to_vmem [thread:$0]  %s6109_s2, 1536, %s33_s20, [#allocation6], %s5227_s22, %s5227_s22, %s5228_s23  }
  0x12   :  { %s5229_s25 = smov [#allocation8]  }
  0x13   :  { %s44_s26 = sshll.u32 %s5229_s25, 4  ;;  %s45_s26 = int_to_ptr.vmem [resolvable:$true] %s44_s26 }
  0x14   :  { %s5166_s27 = scalar_lea.vmem %s45_s26, 2048  ;;  %p5171_p6 = scmp.lt.s32.totalorder %s45_s26, %s45_s26 }
  0x15   :  { %p5167_p5 = scmp.ne.s32.totalorder %s45_s26, %s5166_s27  ;;  %p5172_p7 = scmp.lt.s32.totalorder %s5166_s27, %s5166_s27 }
  0x17   :  { %p5173_p8 = por %p5172_p7, %p5171_p6 }
  0x19   :  { %p5174_p9 = pnand %p5173_p8, %p5167_p5 }
  0x1b   :  { %5177 = shalt.err (!%p5174_p9)
}
  0x1c   :  { %50 = dma.hbm_to_vmem [thread:$0]  %s6110_s3, 2048, %s45_s26, [#allocation9], %s5227_s22, %s5227_s22, %s5228_s23  }
  0x1d   :  { %5218 = dma.done.wait [#allocation6], 1536  }
  0x1e   :  { %5219 = vsyncadd [#allocation6], 4294965760 }
  0x1f   :  { %5220 = dma.done.wait [#allocation9], 2048  }
  0x20   :  { %5221 = vsyncadd [#allocation9], 4294965248  ;;  %v5230_v1 = vmov 0.0   ;;  %vm5231_vm0 = vmmov 0   ;;  %v76_v2 = vld [vmem:[%s6108_s1 + $0x8] sm:$0xff]  ;;  %v5318_v3 = vld [vmem:[#allocation8 + $0x18] sm:$0xff] }
  0x21   :  { %4459 = vmatprep.subr.mxu1 %v5230_v1  ;;  %4467 = vmatprep.mubr.msk.f32.mxu1 %vm5231_vm0, %v5230_v1  ;;  %v75_v4 = vld [vmem:[%s6108_s1] sm:$0xff]  ;;  %v5324_v5 = vld [vmem:[#allocation8 + $0x10] sm:$0xff]  ;;  %vm82_vm1 = vcmask 130048   ;;  %v68_v7 = vld [vmem:[%s6107_s0 + $0x8] sm:$0xff]  ;;  %vm227_vm2 = vcmask 261120   ;;  %s5232_s20 = smov 64  }
  0x22   :  { %4443 = vmatprep.subr.mxu0 %v76_v2  ;;  %4460 = vmatpush3.msra.mxu1 %v5318_v3  ;;  %v67_v6 = vld [vmem:[%s6107_s0] sm:$0xff]  ;;  %v5334_v8 = vld [vmem:[#allocation8 + $0x8] sm:$0xff]  ;;  %s5233_s24 = smov 32   ;;  %v70_v49 = vld [vmem:[%s6107_s0 + $0x18] sm:$0xff]  ;;  %s5234_s3 = smov 96  }
  0x23   :  { %4444 = vmatpush3.msra.mxu0 %v76_v2  ;;  %4461 = vmatprep.subr.mxu1 %v5230_v1  ;;  %v5339_v9 = vld [vmem:[#allocation8] sm:$0xff]  ;;  %v5371_v12 = vld [vmem:[%s6111_s4] ss:$0 sm:$0xff]  ;;  %v69_v48 = vld [vmem:[%s6107_s0 + $0x10] sm:$0xff]  ;;  %s5236_s14 = smov [#allocation11]  }
  0x24   :  { %4445 = vmatprep.subr.mxu0 %v75_v4  ;;  %4462 = vmatpush3.msra.mxu1 %v5324_v5  ;;  %v224_v10 = vld [vmem:[%s6112_s5] sm:$0xff]  ;;  %v72_v51 = vld [vmem:[%s6107_s0 + $0x28] sm:$0xff]  ;;  %v73_v52 = vld [vmem:[%s6107_s0 + $0x30] sm:$0xff] }
  0x25   :  { %4446 = vmatpush3.msra.mxu0 %v75_v4  ;;  %4447 = vmatprep.mubr.msk.f32.mxu0 %vm82_vm1, %v67_v6  ;;  %v225_v19 = vld [vmem:[%s6113_s6] sm:$0xff]  ;;  %v74_v53 = vld [vmem:[%s6107_s0 + $0x38] sm:$0xff] }
  0x26   :  { %4463 = vmatprep.subr.mxu1 %v5230_v1  ;;  %4448 = vmatmul.mubr.msk.f32.vlgmr.msra.gmra.mxu0 %vm82_vm1, %v68_v7  ;;  %v71_v50 = vld [vmem:[%s6107_s0 + $0x20] sm:$0xff] }
  0x27   :  { %4464 = vmatpush3.msra.mxu1 %v5334_v8  ;;  %4481 = vmatprep.subr.mxu0 %v5230_v1 }
  0x28   :  { %4465 = vmatprep.subr.mxu1 %v5230_v1  ;;  %4482 = vmatpush3.msra.mxu0 %v5318_v3 }
  0x29   :  { %4466 = vmatpush3.msra.mxu1 %v5339_v9  ;;  %4483 = vmatprep.subr.mxu0 %v5230_v1 }
  0x2a   :  { %4468 = vmatmul.mubr.msk.f32.vlgmr.msra.gmra.mxu1 %vm227_vm2, %v224_v10  ;;  %4470 = vmatprep.subr.mxu1 %v5230_v1 }
  0x2b   :  { %4471 = vmatpush3.msra.mxu1 %v5318_v3  ;;  %4478 = vmatprep.mubr.msk.f32.mxu1 %vm5231_vm0, %v5230_v1 }
  0x2c   :  { %4472 = vmatprep.subr.mxu1 %v5230_v1  ;;  %4484 = vmatpush3.msra.mxu0 %v5324_v5 }
  0x2d   :  { %4473 = vmatpush3.msra.mxu1 %v5324_v5  ;;  %4485 = vmatprep.subr.mxu0 %v5230_v1 }
  0x2e   :  { %4474 = vmatprep.subr.mxu1 %v5230_v1  ;;  %4486 = vmatpush3.msra.mxu0 %v5334_v8 }
  0x2f   :  { %4475 = vmatpush3.msra.mxu1 %v5334_v8  ;;  %4487 = vmatprep.subr.mxu0 %v5230_v1 }
  0x30   :  { %4476 = vmatprep.subr.mxu1 %v5230_v1  ;;  %4488 = vmatpush3.msra.mxu0 %v5339_v9 }
  0x31   :  { %4477 = vmatpush3.msra.mxu1 %v5339_v9  ;;  %4503 = vmatprep.subr.mxu0 %v5230_v1 }
  0x32   :  { %4492 = vmatprep.subr.mxu1 %v5230_v1  ;;  %4450 = vmatprep.mubr.msk.f32.mxu0 %vm82_vm1, %v69_v48 }
  0x33   :  { %4451 = vmatmul.mubr.msk.f32.gmra.mxu0 %vm82_vm1, %v70_v49 }
  0x34   :  { %4453 = vmatprep.mubr.msk.f32.mxu0 %vm82_vm1, %v71_v50 }
  0x37   :  { %4454 = vmatmul.mubr.msk.f32.gmra.mxu0 %vm82_vm1, %v72_v51 }
  0x38   :  { %4456 = vmatprep.mubr.msk.f32.mxu0 %vm82_vm1, %v73_v52 }
  0x3b   :  { %4457 = vmatmul.mubr.msk.f32.gmra.mxu0 %vm82_vm1, %v74_v53 }
  0x3c   :  { %4489 = vmatprep.mubr.msk.f32.mxu0 %vm5231_vm0, %v5230_v1 }
  0xe6   :  { %v4449_v11 = vpop.f32.mrf.mxu0 }
  0xe7   :  { %v179_v34 = vadd.f32 %v4449_v11, %v5371_v12 }
  0xe8   :  { %v173_v13 = vpop.f32.mrf.mxu0 }
  0xe9   :  { %v174_v14 = vadd.f32 %v5371_v12, %v173_v13 }
  0xea   :  { %v297_v15 = vpop.f32.mrf.mxu1 }
  0xeb   :  { %v301_v16 = vadd.f32 %v297_v15, %v174_v14 }
  0xec   :  { %v4469_v17 = vpop.f32.mrf.mxu1 }
  0xed   :  { %4882 = vtanh.f32 %v301_v16  ;;  %v4139_v20 = vmul.f32 -1.442695, %v301_v16 }
  0xef   :  { %4884 = vpow2.f32 %v4139_v20 }
  0xf3   :  { %v4452_v58 = vpop.f32.mrf.mxu0 }
  0xf5   :  { %v183_v59 = vpop.f32.mrf.mxu0 }
  0xf6   :  { %v184_v0 = vadd.f32 %v5371_v12, %v183_v59 }
  0xf7   :  { %v5437_v60 = vpop.f32.mrf.mxu0 }
  0xf9   :  { %v5439_v61 = vpop.f32.mrf.mxu0 }
  0xfa   :  { %v4883_v18 = vpop.eup %4882 }
  0xfb   :  { %315 = vrot.lane.b32.xlu0 %v4883_v18, %s5232_s20  ;;  %v5441_v62 = vpop.f32.mrf.mxu0 }
  0xfc   :  { %v4885_v21 = vpop.eup %4884 }
  0xfd   :  { %v305_v22 = vadd.f32 1.0, %v4885_v21  ;;  %v5443_v63 = vpop.f32.mrf.mxu0 }
  0xff   :  { %310 = vrot.lane.b32.xlu0 %v225_v19, %s5233_s24  ;;  %4886 = vrcp.f32 %v305_v22 }
 0x10c   :  { %v4887_v23 = vpop.eup %4886 }
 0x16d   :  { %v316_v24 = vpop.permute.xlu0 %315 }
 0x16e   :  { %v318_v25 = vmul.f32 %v4887_v23, %v316_v24  ;;  %v189_v24 = vadd.f32 %v4452_v58, %v5371_v12 }
 0x170   :  { %320 = vrot.lane.b32.xlu1 %v318_v25, %s5233_s24 }
 0x171   :  { %v311_v26 = vpop.permute.xlu0 %310 }
 0x172   :  { %v313_v27 = vmul.f32 %v4887_v23, %v311_v26 }
 0x1e2   :  { %v321_v28 = vpop.permute.xlu1 %320 }
 0x1e3   :  { %v323_v29 = vadd.f32 %v321_v28, %v313_v27 }
 0x1e5   :  { %4888 = vtanh.f32 %v323_v29 }
 0x1f2   :  { %v4889_v30 = vpop.eup %4888 }
 0x1f3   :  { %326 = vrot.lane.b32.xlu1 %v4889_v30, %s5232_s20 }
 0x265   :  { %v327_v31 = vpop.permute.xlu1 %326 }
 0x266   :  { %v329_v32 = vmul.f32 %v4887_v23, %v327_v31 }
 0x268   :  { %331 = vrot.lane.b32.xlu0 %v329_v32, %s5233_s24 }
 0x2da   :  { %v332_v33 = vpop.permute.xlu0 %331 }
 0x2db   :  { %334 = vst.msk [vmem:[#allocation2] sm:$0xff] %vm227_vm2, %v332_v33  ;;  %4479 = vmatmul.mubr.msk.f32.vlgmr.msra.gmra.mxu1 %vm227_vm2, %v332_v33 }
 0x2dc   :  { %4493 = vmatpush3.msra.mxu1 %v5318_v3  ;;  %4500 = vmatprep.mubr.msk.f32.mxu1 %vm5231_vm0, %v5230_v1 }
 0x2dd   :  { %4494 = vmatprep.subr.mxu1 %v5230_v1 }
 0x2de   :  { %4495 = vmatpush3.msra.mxu1 %v5324_v5 }
 0x2df   :  { %4496 = vmatprep.subr.mxu1 %v5230_v1 }
 0x2e0   :  { %4497 = vmatpush3.msra.mxu1 %v5334_v8 }
 0x2e1   :  { %4498 = vmatprep.subr.mxu1 %v5230_v1 }
 0x2e2   :  { %4499 = vmatpush3.msra.mxu1 %v5339_v9 }
 0x2e3   :  { %4514 = vmatprep.subr.mxu1 %v5230_v1 }
 0x39b   :  { %v404_v35 = vpop.f32.mrf.mxu1 }
 0x39c   :  { %v408_v36 = vadd.f32 %v404_v35, %v179_v34 }
 0x39d   :  { %v4480_v37 = vpop.f32.mrf.mxu1 }
 0x39e   :  { %4890 = vtanh.f32 %v408_v36  ;;  %v4141_v39 = vmul.f32 -1.442695, %v408_v36 }
 0x3a0   :  { %4892 = vpow2.f32 %v4141_v39 }
 0x3ab   :  { %v4891_v38 = vpop.eup %4890 }
 0x3ac   :  { %418 = vrot.lane.b32.xlu1 %v4891_v38, %s5232_s20 }
 0x3ad   :  { %v4893_v40 = vpop.eup %4892 }
 0x3ae   :  { %v412_v41 = vadd.f32 1.0, %v4893_v40 }
 0x3b0   :  { %4894 = vrcp.f32 %v412_v41 }
 0x3bd   :  { %v4895_v42 = vpop.eup %4894 }
 0x3be   :  { %v416_v45 = vmul.f32 %v4895_v42, %v323_v29 }
 0x41e   :  { %v419_v43 = vpop.permute.xlu1 %418 }
 0x41f   :  { %v421_v44 = vmul.f32 %v4895_v42, %v419_v43 }
 0x421   :  { %423 = vrot.lane.b32.xlu0 %v421_v44, %s5233_s24 }
 0x493   :  { %v424_v46 = vpop.permute.xlu0 %423 }
 0x494   :  { %v426_v47 = vadd.f32 %v424_v46, %v416_v45 }
 0x496   :  { %4896 = vtanh.f32 %v426_v47 }
 0x4a3   :  { %v4897_v54 = vpop.eup %4896 }
 0x4a4   :  { %429 = vrot.lane.b32.xlu1 %v4897_v54, %s5232_s20 }
 0x516   :  { %v430_v55 = vpop.permute.xlu1 %429 }
 0x517   :  { %v432_v56 = vmul.f32 %v4895_v42, %v430_v55  ;;  %v194_v42 = vadd.f32 %v5371_v12, %v5439_v61 }
 0x519   :  { %434 = vrot.lane.b32.xlu0 %v432_v56, %s5233_s24 }
 0x58b   :  { %v435_v57 = vpop.permute.xlu0 %434 }
 0x58c   :  { %437 = vst.msk [vmem:[#allocation2 + $0x8] sm:$0xff] %vm227_vm2, %v435_v57  ;;  %4490 = vmatmul.mubr.msk.f32.vlgmr.msra.gmra.mxu0 %vm227_vm2, %v435_v57 }
 0x58d   :  { %4504 = vmatpush3.msra.mxu0 %v5318_v3  ;;  %4511 = vmatprep.mubr.msk.f32.mxu0 %vm5231_vm0, %v5230_v1 }
 0x58e   :  { %4505 = vmatprep.subr.mxu0 %v5230_v1 }
 0x58f   :  { %4506 = vmatpush3.msra.mxu0 %v5324_v5 }
 0x590   :  { %4507 = vmatprep.subr.mxu0 %v5230_v1 }
 0x591   :  { %4508 = vmatpush3.msra.mxu0 %v5334_v8 }
 0x592   :  { %4509 = vmatprep.subr.mxu0 %v5230_v1 }
 0x593   :  { %4510 = vmatpush3.msra.mxu0 %v5339_v9 }
 0x594   :  { %4525 = vmatprep.subr.mxu0 %v5230_v1 }
 0x64c   :  { %v507_v2 = vpop.f32.mrf.mxu0 }
 0x64d   :  { %v511_v4 = vadd.f32 %v507_v2, %v184_v0 }
 0x64e   :  { %v4491_v6 = vpop.f32.mrf.mxu0 }
 0x64f   :  { %4898 = vtanh.f32 %v511_v4  ;;  %v4143_v10 = vmul.f32 -1.442695, %v511_v4 }
 0x651   :  { %4900 = vpow2.f32 %v4143_v10 }
 0x65c   :  { %v4899_v7 = vpop.eup %4898 }
 0x65d   :  { %521 = vrot.lane.b32.xlu1 %v4899_v7, %s5232_s20 }
 0x65e   :  { %v4901_v11 = vpop.eup %4900 }
 0x65f   :  { %v515_v13 = vadd.f32 1.0, %v4901_v11 }
 0x661   :  { %4902 = vrcp.f32 %v515_v13 }
 0x66e   :  { %v4903_v14 = vpop.eup %4902 }
 0x66f   :  { %v519_v17 = vmul.f32 %v4903_v14, %v426_v47 }
 0x6cf   :  { %v522_v15 = vpop.permute.xlu1 %521 }
 0x6d0   :  { %v524_v16 = vmul.f32 %v4903_v14, %v522_v15 }
 0x6d2   :  { %526 = vrot.lane.b32.xlu0 %v524_v16, %s5233_s24 }
 0x744   :  { %v527_v18 = vpop.permute.xlu0 %526 }
 0x745   :  { %v529_v19 = vadd.f32 %v527_v18, %v519_v17 }
 0x747   :  { %4904 = vtanh.f32 %v529_v19 }
 0x754   :  { %v4905_v20 = vpop.eup %4904 }
 0x755   :  { %532 = vrot.lane.b32.xlu1 %v4905_v20, %s5232_s20  ;;  %v1062_v20 = vld [vmem:[#allocation2] sm:$0xff] }
 0x7c7   :  { %v533_v21 = vpop.permute.xlu1 %532 }
 0x7c8   :  { %v535_v22 = vmul.f32 %v4903_v14, %v533_v21  ;;  %v1073_v14 = vld [vmem:[#allocation5 + $0x18] sm:$0xff]  ;;  %v1071_v21 = vld [vmem:[#allocation5 + $0x8] sm:$0xff] }
 0x7ca   :  { %537 = vrot.lane.b32.xlu0 %v535_v22, %s5233_s24  ;;  %v1070_v22 = vld [vmem:[#allocation5] sm:$0xff] }
 0x83c   :  { %v538_v23 = vpop.permute.xlu0 %537 }
 0x83d   :  { %540 = vst.msk [vmem:[#allocation2 + $0x10] sm:$0xff] %vm227_vm2, %v538_v23  ;;  %4501 = vmatmul.mubr.msk.f32.vlgmr.msra.gmra.mxu1 %vm227_vm2, %v538_v23  ;;  %v1063_v23 = vld [vmem:[#allocation2 + $0x8] sm:$0xff] }
 0x83e   :  { %4515 = vmatpush3.msra.mxu1 %v5318_v3  ;;  %4522 = vmatprep.mubr.msk.f32.mxu1 %vm5231_vm0, %v5230_v1 }
 0x83f   :  { %4516 = vmatprep.subr.mxu1 %v5230_v1 }
 0x840   :  { %4517 = vmatpush3.msra.mxu1 %v5324_v5 }
 0x841   :  { %4518 = vmatprep.subr.mxu1 %v5230_v1 }
 0x842   :  { %4519 = vmatpush3.msra.mxu1 %v5334_v8 }
 0x843   :  { %4520 = vmatprep.subr.mxu1 %v5230_v1 }
 0x844   :  { %4521 = vmatpush3.msra.mxu1 %v5339_v9 }
 0x845   :  { %4536 = vmatprep.subr.mxu1 %v5230_v1 }
 0x8fd   :  { %v610_v25 = vpop.f32.mrf.mxu1 }
 0x8fe   :  { %v614_v26 = vadd.f32 %v610_v25, %v189_v24  ;;  %v1064_v24 = vld [vmem:[#allocation2 + $0x10] sm:$0xff] }
 0x8ff   :  { %v4502_v27 = vpop.f32.mrf.mxu1 }
 0x900   :  { %4906 = vtanh.f32 %v614_v26  ;;  %v4145_v29 = vmul.f32 -1.442695, %v614_v26 }
 0x902   :  { %4908 = vpow2.f32 %v4145_v29 }
 0x90d   :  { %v4907_v28 = vpop.eup %4906 }
 0x90e   :  { %624 = vrot.lane.b32.xlu1 %v4907_v28, %s5232_s20  ;;  %v204_v28 = vadd.f32 %v5371_v12, %v5443_v63 }
 0x90f   :  { %v4909_v30 = vpop.eup %4908 }
 0x910   :  { %v618_v31 = vadd.f32 1.0, %v4909_v30 }
 0x912   :  { %4910 = vrcp.f32 %v618_v31 }
 0x91f   :  { %v4911_v32 = vpop.eup %4910 }
 0x920   :  { %v622_v35 = vmul.f32 %v4911_v32, %v529_v19  ;;  %v1072_v19 = vld [vmem:[#allocation5 + $0x10] sm:$0xff] }
 0x980   :  { %v625_v33 = vpop.permute.xlu1 %624 }
 0x981   :  { %v627_v34 = vmul.f32 %v4911_v32, %v625_v33 }
 0x983   :  { %629 = vrot.lane.b32.xlu0 %v627_v34, %s5233_s24 }
 0x9f5   :  { %v630_v36 = vpop.permute.xlu0 %629 }
 0x9f6   :  { %v632_v37 = vadd.f32 %v630_v36, %v622_v35 }
 0x9f8   :  { %4912 = vtanh.f32 %v632_v37 }
 0xa05   :  { %v4913_v38 = vpop.eup %4912 }
 0xa06   :  { %635 = vrot.lane.b32.xlu1 %v4913_v38, %s5232_s20 }
 0xa78   :  { %v636_v39 = vpop.permute.xlu1 %635 }
 0xa79   :  { %v638_v40 = vmul.f32 %v4911_v32, %v636_v39 }
 0xa7b   :  { %640 = vrot.lane.b32.xlu0 %v638_v40, %s5233_s24 }
 0xaed   :  { %v641_v41 = vpop.permute.xlu0 %640 }
 0xaee   :  { %643 = vst.msk [vmem:[#allocation2 + $0x18] sm:$0xff] %vm227_vm2, %v641_v41  ;;  %4512 = vmatmul.mubr.msk.f32.vlgmr.msra.gmra.mxu0 %vm227_vm2, %v641_v41 }
 0xaef   :  { %4526 = vmatpush3.msra.mxu0 %v5318_v3  ;;  %4533 = vmatprep.mubr.msk.f32.mxu0 %vm5231_vm0, %v5230_v1 }
 0xaf0   :  { %4527 = vmatprep.subr.mxu0 %v5230_v1 }
 0xaf1   :  { %4528 = vmatpush3.msra.mxu0 %v5324_v5 }
 0xaf2   :  { %4529 = vmatprep.subr.mxu0 %v5230_v1 }
 0xaf3   :  { %4530 = vmatpush3.msra.mxu0 %v5334_v8 }
 0xaf4   :  { %4531 = vmatprep.subr.mxu0 %v5230_v1 }
 0xaf5   :  { %4532 = vmatpush3.msra.mxu0 %v5339_v9  ;;  %v1065_v25 = vld [vmem:[#allocation2 + $0x18] sm:$0xff] }
 0xaf6   :  { %4547 = vmatprep.subr.mxu0 %v1073_v14 }
 0xbae   :  { %v713_v43 = vpop.f32.mrf.mxu0 }
 0xbaf   :  { %v717_v44 = vadd.f32 %v713_v43, %v194_v42  ;;  %v5519_v42 = vld [vmem:[#allocation8 + $0x38] sm:$0xff]  ;;  %v5522_v43 = vld [vmem:[#allocation8 + $0x30] sm:$0xff] }
 0xbb0   :  { %v4513_v45 = vpop.f32.mrf.mxu0 }
 0xbb1   :  { %4914 = vtanh.f32 %v717_v44  ;;  %v4147_v47 = vmul.f32 -1.442695, %v717_v44  ;;  %v5526_v44 = vld [vmem:[#allocation8 + $0x28] sm:$0xff]  ;;  %v5530_v45 = vld [vmem:[#allocation8 + $0x20] sm:$0xff] }
 0xbb3   :  { %4916 = vpow2.f32 %v4147_v47 }
 0xbbe   :  { %v4915_v46 = vpop.eup %4914 }
 0xbbf   :  { %727 = vrot.lane.b32.xlu1 %v4915_v46, %s5232_s20 }
 0xbc0   :  { %v4917_v48 = vpop.eup %4916 }
 0xbc1   :  { %v721_v49 = vadd.f32 1.0, %v4917_v48  ;;  %v4164_v48 = vld [vmem:[%s6113_s6 + $0x8] sm:$0xff] }
 0xbc3   :  { %4918 = vrcp.f32 %v721_v49 }
 0xbd0   :  { %v4919_v50 = vpop.eup %4918 }
 0xbd1   :  { %v725_v53 = vmul.f32 %v4919_v50, %v632_v37 }
 0xc31   :  { %v728_v51 = vpop.permute.xlu1 %727 }
 0xc32   :  { %v730_v52 = vmul.f32 %v4919_v50, %v728_v51 }
 0xc34   :  { %732 = vrot.lane.b32.xlu0 %v730_v52, %s5233_s24  ;;  %v209_v52 = vadd.f32 %v5441_v62, %v5371_v12 }
 0xca6   :  { %v733_v54 = vpop.permute.xlu0 %732 }
 0xca7   :  { %v735_v55 = vadd.f32 %v733_v54, %v725_v53 }
 0xca9   :  { %4920 = vtanh.f32 %v735_v55 }
 0xcb6   :  { %v4921_v56 = vpop.eup %4920 }
 0xcb7   :  { %738 = vrot.lane.b32.xlu1 %v4921_v56, %s5232_s20 }
 0xd29   :  { %v739_v57 = vpop.permute.xlu1 %738 }
 0xd2a   :  { %v741_v58 = vmul.f32 %v4919_v50, %v739_v57  ;;  %v4163_v50 = vld [vmem:[%s6112_s5 + $0x8] sm:$0xff] }
 0xd2c   :  { %743 = vrot.lane.b32.xlu0 %v741_v58, %s5233_s24  ;;  %v5574_v58 = vld [vmem:[%s6111_s4 + $0x1] ss:$0 sm:$0xff] }
 0xd9e   :  { %v744_v59 = vpop.permute.xlu0 %743 }
 0xd9f   :  { %746 = vst.msk [vmem:[#allocation2 + $0x20] sm:$0xff] %vm227_vm2, %v744_v59  ;;  %4523 = vmatmul.mubr.msk.f32.vlgmr.msra.gmra.mxu1 %vm227_vm2, %v744_v59 }
 0xda0   :  { %4537 = vmatpush3.msra.mxu1 %v5318_v3  ;;  %4544 = vmatprep.mubr.msk.f32.mxu1 %vm5231_vm0, %v5230_v1  ;;  %v199_v3 = vadd.f32 %v5437_v60, %v5371_v12 }
 0xda1   :  { %4538 = vmatprep.subr.mxu1 %v5230_v1 }
 0xda2   :  { %4539 = vmatpush3.msra.mxu1 %v5324_v5 }
 0xda3   :  { %4540 = vmatprep.subr.mxu1 %v5230_v1 }
 0xda4   :  { %4541 = vmatpush3.msra.mxu1 %v5334_v8 }
 0xda5   :  { %4542 = vmatprep.subr.mxu1 %v5230_v1 }
 0xda6   :  { %4543 = vmatpush3.msra.mxu1 %v5339_v9  ;;  %v1066_v26 = vld [vmem:[#allocation2 + $0x20] sm:$0xff] }
 0xda7   :  { %4567 = vmatprep.subr.mxu1 %v5230_v1 }
 0xe5f   :  { %v816_v61 = vpop.f32.mrf.mxu1 }
 0xe60   :  { %v820_v0 = vadd.f32 %v816_v61, %v199_v3 }
 0xe61   :  { %v4524_v2 = vpop.f32.mrf.mxu1 }
 0xe62   :  { %4922 = vtanh.f32 %v820_v0  ;;  %v4149_v5 = vmul.f32 -1.442695, %v820_v0 }
 0xe64   :  { %4924 = vpow2.f32 %v4149_v5 }
 0xe6f   :  { %v4923_v4 = vpop.eup %4922 }
 0xe70   :  { %830 = vrot.lane.b32.xlu1 %v4923_v4, %s5232_s20 }
 0xe71   :  { %v4925_v6 = vpop.eup %4924 }
 0xe72   :  { %v824_v8 = vadd.f32 1.0, %v4925_v6 }
 0xe74   :  { %4926 = vrcp.f32 %v824_v8 }
 0xe81   :  { %v4927_v7 = vpop.eup %4926 }
 0xe82   :  { %v828_v11 = vmul.f32 %v4927_v7, %v735_v55 }
 0xee2   :  { %v831_v10 = vpop.permute.xlu1 %830 }
 0xee3   :  { %v833_v9 = vmul.f32 %v4927_v7, %v831_v10 }
 0xee5   :  { %835 = vrot.lane.b32.xlu0 %v833_v9, %s5233_s24 }
 0xf57   :  { %v836_v13 = vpop.permute.xlu0 %835 }
 0xf58   :  { %v838_v60 = vadd.f32 %v836_v13, %v828_v11 }
 0xf5a   :  { %4928 = vtanh.f32 %v838_v60 }
 0xf67   :  { %v4929_v15 = vpop.eup %4928 }
 0xf68   :  { %841 = vrot.lane.b32.xlu1 %v4929_v15, %s5232_s20 }
 0xfda   :  { %v842_v16 = vpop.permute.xlu1 %841 }
 0xfdb   :  { %v844_v17 = vmul.f32 %v4927_v7, %v842_v16 }
 0xfdd   :  { %846 = vrot.lane.b32.xlu0 %v844_v17, %s5233_s24 }
0x104f   :  { %v847_v18 = vpop.permute.xlu0 %846 }
0x1050   :  { %849 = vst.msk [vmem:[#allocation2 + $0x28] sm:$0xff] %vm227_vm2, %v847_v18  ;;  %4534 = vmatmul.mubr.msk.f32.vlgmr.msra.gmra.mxu0 %vm227_vm2, %v847_v18 }
0x1051   :  { %4548 = vmatpush3.msra.mxu0 %v1073_v14  ;;  %4555 = vmatprep.mubr.msk.f32.mxu0 %vm227_vm2, %v1062_v20 }
0x1052   :  { %4549 = vmatprep.subr.mxu0 %v1072_v19 }
0x1053   :  { %4550 = vmatpush3.msra.mxu0 %v1072_v19 }
0x1054   :  { %4551 = vmatprep.subr.mxu0 %v1071_v21 }
0x1055   :  { %4552 = vmatpush3.msra.mxu0 %v1071_v21 }
0x1056   :  { %4553 = vmatprep.subr.mxu0 %v1070_v22 }
0x1057   :  { %4554 = vmatpush3.msra.mxu0 %v1070_v22  ;;  %v1067_v27 = vld [vmem:[#allocation2 + $0x28] sm:$0xff] }
0x1058   :  { %4556 = vmatmul.mubr.msk.f32.vlgmr.msra.gmra.mxu0 %vm227_vm2, %v1063_v23  ;;  %4589 = vmatprep.subr.mxu0 %v5230_v1 }
0x1059   :  { %4558 = vmatprep.mubr.msk.f32.mxu0 %vm227_vm2, %v1064_v24  ;;  %4590 = vmatpush3.msra.mxu0 %v5519_v42 }
0x105a   :  { %4591 = vmatprep.subr.mxu0 %v5230_v1 }
0x105b   :  { %4592 = vmatpush3.msra.mxu0 %v5522_v43 }
0x105c   :  { %4559 = vmatmul.mubr.msk.f32.gmra.mxu0 %vm227_vm2, %v1065_v25  ;;  %4593 = vmatprep.subr.mxu0 %v5230_v1 }
0x105d   :  { %4561 = vmatprep.mubr.msk.f32.mxu0 %vm227_vm2, %v1066_v26  ;;  %4594 = vmatpush3.msra.mxu0 %v5526_v44 }
0x105e   :  { %4595 = vmatprep.subr.mxu0 %v5230_v1 }
0x105f   :  { %4596 = vmatpush3.msra.mxu0 %v5530_v45 }
0x1060   :  { %4562 = vmatmul.mubr.msk.f32.gmra.mxu0 %vm227_vm2, %v1067_v27  ;;  %4611 = vmatprep.subr.mxu0 %v5230_v1 }
0x1110   :  { %v919_v29 = vpop.f32.mrf.mxu0 }
0x1111   :  { %v923_v30 = vadd.f32 %v919_v29, %v204_v28 }
0x1112   :  { %v4535_v31 = vpop.f32.mrf.mxu0 }
0x1113   :  { %4930 = vtanh.f32 %v923_v30  ;;  %v4151_v33 = vmul.f32 -1.442695, %v923_v30 }
0x1115   :  { %4932 = vpow2.f32 %v4151_v33 }
0x1118   :  { %v5569_v53 = vpop.f32.mrf.mxu0 }
0x1119   :  { %v1175_v29 = vadd.f32 %v5569_v53, %v5574_v58 }
0x111a   :  { %v1169_v57 = vpop.f32.mrf.mxu0 }
0x111b   :  { %v1170_v59 = vadd.f32 %v5574_v58, %v1169_v57 }
0x1120   :  { %v4931_v32 = vpop.eup %4930 }
0x1121   :  { %933 = vrot.lane.b32.xlu1 %v4931_v32, %s5232_s20 }
0x1122   :  { %v4933_v34 = vpop.eup %4932 }
0x1123   :  { %v927_v35 = vadd.f32 1.0, %v4933_v34 }
0x1125   :  { %4934 = vrcp.f32 %v927_v35 }
0x1132   :  { %v4935_v36 = vpop.eup %4934 }
0x1133   :  { %v931_v39 = vmul.f32 %v4935_v36, %v838_v60 }
0x1193   :  { %v934_v37 = vpop.permute.xlu1 %933 }
0x1194   :  { %v936_v38 = vmul.f32 %v4935_v36, %v934_v37 }
0x1196   :  { %938 = vrot.lane.b32.xlu0 %v936_v38, %s5233_s24 }
0x1208   :  { %v939_v40 = vpop.permute.xlu0 %938 }
0x1209   :  { %v5515_v63 = vadd.f32 %v939_v40, %v931_v39 }
0x120b   :  { %4936 = vtanh.f32 %v5515_v63 }
0x1218   :  { %v4937_v41 = vpop.eup %4936 }
0x1219   :  { %944 = vrot.lane.b32.xlu1 %v4937_v41, %s5232_s20 }
0x128b   :  { %v945_v46 = vpop.permute.xlu1 %944 }
0x128c   :  { %v947_v47 = vmul.f32 %v4935_v36, %v945_v46 }
0x128e   :  { %949 = vrot.lane.b32.xlu0 %v947_v47, %s5233_s24 }
0x1292   :  { %1308 = vrot.lane.b32.xlu0 %v4164_v48, %s5233_s24 }
0x1300   :  { %v950_v49 = vpop.permute.xlu0 %949 }
0x1301   :  { %952 = vst.msk [vmem:[#allocation2 + $0x30] sm:$0xff] %vm227_vm2, %v950_v49  ;;  %4545 = vmatmul.mubr.msk.f32.vlgmr.msra.gmra.mxu1 %vm227_vm2, %v950_v49 }
0x1302   :  { %4568 = vmatpush3.msra.mxu1 %v5519_v42  ;;  %4575 = vmatprep.mubr.msk.f32.mxu1 %vm5231_vm0, %v5230_v1 }
0x1303   :  { %4569 = vmatprep.subr.mxu1 %v5230_v1 }
0x1304   :  { %4570 = vmatpush3.msra.mxu1 %v5522_v43  ;;  %v1309_v7 = vpop.permute.xlu0 %1308 }
0x1305   :  { %4571 = vmatprep.subr.mxu1 %v5230_v1 }
0x1306   :  { %4572 = vmatpush3.msra.mxu1 %v5526_v44 }
0x1307   :  { %4573 = vmatprep.subr.mxu1 %v5230_v1 }
0x1308   :  { %4574 = vmatpush3.msra.mxu1 %v5530_v45  ;;  %v1068_v51 = vld [vmem:[#allocation2 + $0x30] sm:$0xff] }
0x1309   :  { %4576 = vmatmul.mubr.msk.f32.vlgmr.msra.gmra.mxu1 %vm227_vm2, %v4163_v50  ;;  %4564 = vmatprep.mubr.msk.f32.mxu0 %vm227_vm2, %v1068_v51 }
0x130a   :  { %4578 = vmatprep.subr.mxu1 %v5230_v1  ;;  %4586 = vmatprep.mubr.msk.f32.mxu1 %vm5231_vm0, %v5230_v1 }
0x130b   :  { %4579 = vmatpush3.msra.mxu1 %v5519_v42 }
0x130c   :  { %4580 = vmatprep.subr.mxu1 %v5230_v1 }
0x130d   :  { %4581 = vmatpush3.msra.mxu1 %v5522_v43 }
0x130e   :  { %4582 = vmatprep.subr.mxu1 %v5230_v1 }
0x130f   :  { %4583 = vmatpush3.msra.mxu1 %v5526_v44 }
0x1310   :  { %4584 = vmatprep.subr.mxu1 %v5230_v1 }
0x1311   :  { %4585 = vmatpush3.msra.mxu1 %v5530_v45 }
0x1312   :  { %4600 = vmatprep.subr.mxu1 %v5230_v1 }
0x13c1   :  { %v1022_v54 = vpop.f32.mrf.mxu1 }
0x13c2   :  { %v1026_v55 = vadd.f32 %v1022_v54, %v209_v52  ;;  %v4560_v52 = vpop.f32.mrf.mxu0 }
0x13c3   :  { %v4546_v56 = vpop.f32.mrf.mxu1 }
0x13c4   :  { %v4153_v14 = vmul.f32 -1.442695, %v1026_v55  ;;  %v1179_v53 = vpop.f32.mrf.mxu0 }
0x13c6   :  { %v5624_v54 = vpop.f32.mrf.mxu0 }
0x13c9   :  { %v1295_v3 = vpop.f32.mrf.mxu1 }
0x13ca   :  { %v1299_v61 = vadd.f32 %v1295_v3, %v1170_v59  ;;  %v1180_v59 = vadd.f32 %v5574_v58, %v1179_v53 }
0x13cb   :  { %v4577_v0 = vpop.f32.mrf.mxu1 }
0x13cc   :  { %4938 = vtanh.f32 %v1299_v61  ;;  %v4166_v12 = vmul.f32 -1.442695, %v1299_v61 }
0x13ce   :  { %4940 = vpow2.f32 %v4166_v12 }
0x13d9   :  { %v4939_v2 = vpop.eup %4938 }
0x13da   :  { %1313 = vrot.lane.b32.xlu1 %v4939_v2, %s5232_s20 }
0x13db   :  { %v4941_v62 = vpop.eup %4940 }
0x13dc   :  { %v1303_v4 = vadd.f32 1.0, %v4941_v62 }
0x13de   :  { %4942 = vrcp.f32 %v1303_v4 }
0x13eb   :  { %v4943_v5 = vpop.eup %4942 }
0x13ec   :  { %v1311_v10 = vmul.f32 %v4943_v5, %v1309_v7 }
0x144c   :  { %v1314_v6 = vpop.permute.xlu1 %1313 }
0x144d   :  { %v1316_v8 = vmul.f32 %v4943_v5, %v1314_v6 }
0x144f   :  { %1318 = vrot.lane.b32.xlu1 %v1316_v8, %s5233_s24 }
0x14c1   :  { %v1319_v9 = vpop.permute.xlu1 %1318 }
0x14c2   :  { %v1321_v11 = vadd.f32 %v1319_v9, %v1311_v10 }
0x14c4   :  { %4944 = vtanh.f32 %v1321_v11 }
0x14c5   :  { %4946 = vtanh.f32 %v1026_v55  ;;  %v5626_v55 = vpop.f32.mrf.mxu0 }
0x14c6   :  { %4948 = vpow2.f32 %v4153_v14 }
0x14d1   :  { %v4945_v13 = vpop.eup %4944 }
0x14d2   :  { %1324 = vrot.lane.b32.xlu0 %v4945_v13, %s5232_s20  ;;  %v4947_v60 = vpop.eup %4946 }
0x14d3   :  { %v4949_v15 = vpop.eup %4948 }
0x14d4   :  { %v1030_v16 = vadd.f32 1.0, %v4949_v15  ;;  %v1185_v15 = vadd.f32 %v4560_v52, %v5574_v58 }
0x14d6   :  { %1036 = vrot.lane.b32.xlu0 %v4947_v60, %s5232_s20  ;;  %4950 = vrcp.f32 %v1030_v16 }
0x14e3   :  { %v4951_v19 = vpop.eup %4950 }
0x14e4   :  { %v1034_v23 = vmul.f32 %v4951_v19, %v5515_v63 }
0x1544   :  { %v1325_v17 = vpop.permute.xlu0 %1324 }
0x1545   :  { %v1327_v18 = vmul.f32 %v4943_v5, %v1325_v17 }
0x1547   :  { %1329 = vrot.lane.b32.xlu1 %v1327_v18, %s5233_s24 }
0x1548   :  { %v1037_v20 = vpop.permute.xlu0 %1036 }
0x1549   :  { %v1039_v21 = vmul.f32 %v4951_v19, %v1037_v20 }
0x154b   :  { %1041 = vrot.lane.b32.xlu0 %v1039_v21, %s5233_s24 }
0x15b9   :  { %v1330_v22 = vpop.permute.xlu1 %1329 }
0x15ba   :  { %1332 = vst.msk [vmem:[#allocation2] sm:$0xff] %vm227_vm2, %v1330_v22  ;;  %4587 = vmatmul.mubr.msk.f32.vlgmr.msra.gmra.mxu1 %vm227_vm2, %v1330_v22 }
0x15bb   :  { %4601 = vmatpush3.msra.mxu1 %v5519_v42  ;;  %4608 = vmatprep.mubr.msk.f32.mxu1 %vm5231_vm0, %v5230_v1 }
0x15bc   :  { %4602 = vmatprep.subr.mxu1 %v5230_v1 }
0x15bd   :  { %v1042_v24 = vpop.permute.xlu0 %1041  ;;  %4603 = vmatpush3.msra.mxu1 %v5522_v43 }
0x15be   :  { %v5591_v25 = vadd.f32 %v1042_v24, %v1034_v23  ;;  %4604 = vmatprep.subr.mxu1 %v5230_v1 }
0x15bf   :  { %4605 = vmatpush3.msra.mxu1 %v5526_v44 }
0x15c0   :  { %4952 = vtanh.f32 %v5591_v25  ;;  %4606 = vmatprep.subr.mxu1 %v5230_v1 }
0x15c1   :  { %4607 = vmatpush3.msra.mxu1 %v5530_v45 }
0x15c2   :  { %4622 = vmatprep.subr.mxu1 %v5230_v1 }
0x15cd   :  { %v4953_v26 = vpop.eup %4952 }
0x15ce   :  { %1047 = vrot.lane.b32.xlu0 %v4953_v26, %s5232_s20 }
0x1640   :  { %v1048_v27 = vpop.permute.xlu0 %1047 }
0x1641   :  { %v1050_v28 = vmul.f32 %v4951_v19, %v1048_v27 }
0x1643   :  { %1052 = vrot.lane.b32.xlu0 %v1050_v28, %s5233_s24 }
0x167a   :  { %v1402_v30 = vpop.f32.mrf.mxu1 }
0x167b   :  { %v1406_v31 = vadd.f32 %v1402_v30, %v1175_v29 }
0x167c   :  { %v4588_v32 = vpop.f32.mrf.mxu1 }
0x167d   :  { %4954 = vtanh.f32 %v1406_v31  ;;  %v4168_v36 = vmul.f32 -1.442695, %v1406_v31 }
0x167f   :  { %4956 = vpow2.f32 %v4168_v36 }
0x168a   :  { %v4955_v33 = vpop.eup %4954 }
0x168b   :  { %1416 = vrot.lane.b32.xlu1 %v4955_v33, %s5232_s20 }
0x168c   :  { %v4957_v37 = vpop.eup %4956 }
0x168d   :  { %v1410_v38 = vadd.f32 1.0, %v4957_v37 }
0x168f   :  { %4958 = vrcp.f32 %v1410_v38 }
0x169c   :  { %v4959_v39 = vpop.eup %4958 }
0x169d   :  { %v1414_v41 = vmul.f32 %v4959_v39, %v1321_v11 }
0x16b5   :  { %v1053_v34 = vpop.permute.xlu0 %1052 }
0x16b6   :  { %1055 = vst.msk [vmem:[#allocation2 + $0x38] sm:$0xff] %vm227_vm2, %v1053_v34  ;;  %1056 = vst.msk [vmem:[#allocation10] sm:$0xff] %vm227_vm2, %v1053_v34  ;;  %v1190_v34 = vadd.f32 %v5574_v58, %v5626_v55 }
0x16bd   :  { %v1069_v35 = vld [vmem:[#allocation2 + $0x38] sm:$0xff] }
0x16be   :  { %4565 = vmatmul.mubr.msk.f32.gmra.mxu0 %vm227_vm2, %v1069_v35 }
0x16bf   :  { %4597 = vmatprep.mubr.msk.f32.mxu0 %vm5231_vm0, %v5230_v1 }
0x16fd   :  { %v1417_v40 = vpop.permute.xlu1 %1416 }
0x16fe   :  { %v1419_v63 = vmul.f32 %v4959_v39, %v1417_v40 }
0x1700   :  { %1421 = vrot.lane.b32.xlu1 %v1419_v63, %s5233_s24 }
0x1772   :  { %v1422_v46 = vpop.permute.xlu1 %1421 }
0x1773   :  { %v1424_v47 = vadd.f32 %v1422_v46, %v1414_v41 }
0x1775   :  { %4960 = vtanh.f32 %v1424_v47 }
0x177e   :  { %v5628_v56 = vpop.f32.mrf.mxu0 }
0x1780   :  { %v5630_v57 = vpop.f32.mrf.mxu0 }
0x1782   :  { %v4961_v48 = vpop.eup %4960 }
0x1783   :  { %1427 = vrot.lane.b32.xlu1 %v4961_v48, %s5232_s20 }
0x17f5   :  { %v1428_v49 = vpop.permute.xlu1 %1427 }
0x17f6   :  { %v1430_v50 = vmul.f32 %v4959_v39, %v1428_v49 }
0x17f8   :  { %1432 = vrot.lane.b32.xlu1 %v1430_v50, %s5233_s24 }
0x186a   :  { %v1433_v51 = vpop.permute.xlu1 %1432 }
0x186b   :  { %1435 = vst.msk [vmem:[#allocation2 + $0x8] sm:$0xff] %vm227_vm2, %v1433_v51  ;;  %4598 = vmatmul.mubr.msk.f32.vlgmr.msra.gmra.mxu0 %vm227_vm2, %v1433_v51 }
0x186c   :  { %4612 = vmatpush3.msra.mxu0 %v5519_v42  ;;  %4619 = vmatprep.mubr.msk.f32.mxu0 %vm5231_vm0, %v5230_v1 }
0x186d   :  { %4613 = vmatprep.subr.mxu0 %v5230_v1 }
0x186e   :  { %4614 = vmatpush3.msra.mxu0 %v5522_v43 }
0x186f   :  { %4615 = vmatprep.subr.mxu0 %v5230_v1 }
0x1870   :  { %4616 = vmatpush3.msra.mxu0 %v5526_v44 }
0x1871   :  { %4617 = vmatprep.subr.mxu0 %v5230_v1 }
0x1872   :  { %4618 = vmatpush3.msra.mxu0 %v5530_v45 }
0x1873   :  { %4633 = vmatprep.subr.mxu0 %v5230_v1 }
0x192b   :  { %v1505_v3 = vpop.f32.mrf.mxu0 }
0x192c   :  { %v1509_v61 = vadd.f32 %v1505_v3, %v1180_v59 }
0x192d   :  { %v4599_v0 = vpop.f32.mrf.mxu0 }
0x192e   :  { %4962 = vtanh.f32 %v1509_v61  ;;  %v4170_v12 = vmul.f32 -1.442695, %v1509_v61 }
0x1930   :  { %4964 = vpow2.f32 %v4170_v12 }
0x193b   :  { %v4963_v2 = vpop.eup %4962 }
0x193c   :  { %1519 = vrot.lane.b32.xlu0 %v4963_v2, %s5232_s20 }
0x193d   :  { %v4965_v62 = vpop.eup %4964 }
0x193e   :  { %v1513_v4 = vadd.f32 1.0, %v4965_v62 }
0x1940   :  { %4966 = vrcp.f32 %v1513_v4 }
0x194d   :  { %v4967_v5 = vpop.eup %4966 }
0x194e   :  { %v1517_v7 = vmul.f32 %v4967_v5, %v1424_v47 }
0x19ae   :  { %v1520_v6 = vpop.permute.xlu0 %1519 }
0x19af   :  { %v1522_v8 = vmul.f32 %v4967_v5, %v1520_v6  ;;  %v2074_v6 = vld [vmem:[#allocation5 + $0x38] sm:$0xff] }
0x19b1   :  { %1524 = vrot.lane.b32.xlu1 %v1522_v8, %s5233_s24 }
0x1a23   :  { %v1525_v10 = vpop.permute.xlu1 %1524 }
0x1a24   :  { %v1527_v9 = vadd.f32 %v1525_v10, %v1517_v7 }
0x1a26   :  { %4968 = vtanh.f32 %v1527_v9 }
0x1a33   :  { %v4969_v11 = vpop.eup %4968 }
0x1a34   :  { %1530 = vrot.lane.b32.xlu0 %v4969_v11, %s5232_s20  ;;  %v2073_v11 = vld [vmem:[#allocation5 + $0x30] sm:$0xff] }
0x1aa6   :  { %v1531_v13 = vpop.permute.xlu0 %1530 }
0x1aa7   :  { %v1533_v60 = vmul.f32 %v4967_v5, %v1531_v13  ;;  %v2062_v13 = vld [vmem:[#allocation2] sm:$0xff] }
0x1aa9   :  { %1535 = vrot.lane.b32.xlu1 %v1533_v60, %s5233_s24  ;;  %v2072_v60 = vld [vmem:[#allocation5 + $0x28] sm:$0xff] }
0x1b1b   :  { %v1536_v14 = vpop.permute.xlu1 %1535 }
0x1b1c   :  { %1538 = vst.msk [vmem:[#allocation2 + $0x10] sm:$0xff] %vm227_vm2, %v1536_v14  ;;  %4609 = vmatmul.mubr.msk.f32.vlgmr.msra.gmra.mxu1 %vm227_vm2, %v1536_v14  ;;  %v2071_v14 = vld [vmem:[#allocation5 + $0x20] sm:$0xff] }
0x1b1d   :  { %4623 = vmatpush3.msra.mxu1 %v5519_v42  ;;  %4630 = vmatprep.mubr.msk.f32.mxu1 %vm5231_vm0, %v5230_v1 }
0x1b1e   :  { %4624 = vmatprep.subr.mxu1 %v5230_v1 }
0x1b1f   :  { %4625 = vmatpush3.msra.mxu1 %v5522_v43 }
0x1b20   :  { %4626 = vmatprep.subr.mxu1 %v5230_v1 }
0x1b21   :  { %4627 = vmatpush3.msra.mxu1 %v5526_v44 }
0x1b22   :  { %4628 = vmatprep.subr.mxu1 %v5230_v1 }
0x1b23   :  { %4629 = vmatpush3.msra.mxu1 %v5530_v45 }
0x1b24   :  { %4644 = vmatprep.subr.mxu1 %v5230_v1 }
0x1bdc   :  { %v1608_v16 = vpop.f32.mrf.mxu1 }
0x1bdd   :  { %v1612_v17 = vadd.f32 %v1608_v16, %v1185_v15  ;;  %v2063_v15 = vld [vmem:[#allocation2 + $0x8] sm:$0xff]  ;;  %v2064_v16 = vld [vmem:[#allocation2 + $0x10] sm:$0xff] }
0x1bde   :  { %v4610_v18 = vpop.f32.mrf.mxu1 }
0x1bdf   :  { %4970 = vtanh.f32 %v1612_v17  ;;  %v4172_v20 = vmul.f32 -1.442695, %v1612_v17 }
0x1be1   :  { %4972 = vpow2.f32 %v4172_v20  ;;  %v1200_v20 = vadd.f32 %v5574_v58, %v5630_v57 }
0x1bec   :  { %v4971_v19 = vpop.eup %4970 }
0x1bed   :  { %1622 = vrot.lane.b32.xlu0 %v4971_v19, %s5232_s20 }
0x1bee   :  { %v4973_v21 = vpop.eup %4972 }
0x1bef   :  { %v1616_v22 = vadd.f32 1.0, %v4973_v21 }
0x1bf1   :  { %4974 = vrcp.f32 %v1616_v22 }
0x1bfe   :  { %v4975_v23 = vpop.eup %4974 }
0x1bff   :  { %v1620_v27 = vmul.f32 %v4975_v23, %v1527_v9 }
0x1c5f   :  { %v1623_v24 = vpop.permute.xlu0 %1622 }
0x1c60   :  { %v1625_v26 = vmul.f32 %v4975_v23, %v1623_v24 }
0x1c62   :  { %1627 = vrot.lane.b32.xlu1 %v1625_v26, %s5233_s24 }
0x1cd4   :  { %v1628_v28 = vpop.permute.xlu1 %1627 }
0x1cd5   :  { %v1630_v29 = vadd.f32 %v1628_v28, %v1620_v27 }
0x1cd7   :  { %4976 = vtanh.f32 %v1630_v29 }
0x1ce4   :  { %v4977_v30 = vpop.eup %4976 }
0x1ce5   :  { %1633 = vrot.lane.b32.xlu0 %v4977_v30, %s5232_s20 }
0x1d57   :  { %v1634_v31 = vpop.permute.xlu0 %1633 }
0x1d58   :  { %v1636_v32 = vmul.f32 %v4975_v23, %v1634_v31 }
0x1d5a   :  { %1638 = vrot.lane.b32.xlu1 %v1636_v32, %s5233_s24 }
0x1dcc   :  { %v1639_v33 = vpop.permute.xlu1 %1638 }
0x1dcd   :  { %1641 = vst.msk [vmem:[#allocation2 + $0x18] sm:$0xff] %vm227_vm2, %v1639_v33  ;;  %4620 = vmatmul.mubr.msk.f32.vlgmr.msra.gmra.mxu0 %vm227_vm2, %v1639_v33 }
0x1dce   :  { %4634 = vmatpush3.msra.mxu0 %v5519_v42  ;;  %4641 = vmatprep.mubr.msk.f32.mxu0 %vm5231_vm0, %v5230_v1 }
0x1dcf   :  { %4635 = vmatprep.subr.mxu0 %v5230_v1 }
0x1dd0   :  { %4636 = vmatpush3.msra.mxu0 %v5522_v43 }
0x1dd1   :  { %4637 = vmatprep.subr.mxu0 %v5230_v1 }
0x1dd2   :  { %4638 = vmatpush3.msra.mxu0 %v5526_v44 }
0x1dd3   :  { %4639 = vmatprep.subr.mxu0 %v5230_v1 }
0x1dd4   :  { %4640 = vmatpush3.msra.mxu0 %v5530_v45  ;;  %v2065_v17 = vld [vmem:[#allocation2 + $0x18] sm:$0xff] }
0x1dd5   :  { %4655 = vmatprep.subr.mxu0 %v2074_v6 }
0x1e8d   :  { %v1711_v35 = vpop.f32.mrf.mxu0 }
0x1e8e   :  { %v1715_v36 = vadd.f32 %v1711_v35, %v1190_v34  ;;  %v5706_v35 = vld [vmem:[#allocation8 + $0x58] sm:$0xff] }
0x1e8f   :  { %v4621_v37 = vpop.f32.mrf.mxu0 }
0x1e90   :  { %4978 = vtanh.f32 %v1715_v36  ;;  %v4174_v39 = vmul.f32 -1.442695, %v1715_v36  ;;  %v5709_v36 = vld [vmem:[#allocation8 + $0x50] sm:$0xff]  ;;  %v5713_v37 = vld [vmem:[#allocation8 + $0x48] sm:$0xff] }
0x1e92   :  { %4980 = vpow2.f32 %v4174_v39 }
0x1e9d   :  { %v4979_v38 = vpop.eup %4978 }
0x1e9e   :  { %1725 = vrot.lane.b32.xlu0 %v4979_v38, %s5232_s20  ;;  %v5717_v38 = vld [vmem:[#allocation8 + $0x40] sm:$0xff] }
0x1e9f   :  { %v4981_v40 = vpop.eup %4980 }
0x1ea0   :  { %v1719_v63 = vadd.f32 1.0, %v4981_v40 }
0x1ea2   :  { %4982 = vrcp.f32 %v1719_v63  ;;  %v4191_v63 = vld [vmem:[%s6113_s6 + $0x10] sm:$0xff] }
0x1eaf   :  { %v4983_v41 = vpop.eup %4982 }
0x1eb0   :  { %v1723_v48 = vmul.f32 %v4983_v41, %v1630_v29 }
0x1f10   :  { %v1726_v46 = vpop.permute.xlu0 %1725 }
0x1f11   :  { %v1728_v47 = vmul.f32 %v4983_v41, %v1726_v46  ;;  %v4190_v46 = vld [vmem:[%s6112_s5 + $0x10] sm:$0xff] }
0x1f13   :  { %1730 = vrot.lane.b32.xlu1 %v1728_v47, %s5233_s24 }
0x1f85   :  { %v1731_v49 = vpop.permute.xlu1 %1730 }
0x1f86   :  { %v1733_v50 = vadd.f32 %v1731_v49, %v1723_v48  ;;  %v1205_v48 = vadd.f32 %v5628_v56, %v5574_v58 }
0x1f88   :  { %4984 = vtanh.f32 %v1733_v50 }
0x1f95   :  { %v4985_v51 = vpop.eup %4984 }
0x1f96   :  { %1736 = vrot.lane.b32.xlu0 %v4985_v51, %s5232_s20 }
0x2008   :  { %v1737_v52 = vpop.permute.xlu0 %1736 }
0x2009   :  { %v1739_v53 = vmul.f32 %v4983_v41, %v1737_v52 }
0x200b   :  { %1741 = vrot.lane.b32.xlu1 %v1739_v53, %s5233_s24 }
0x207d   :  { %v1742_v55 = vpop.permute.xlu1 %1741 }
0x207e   :  { %1744 = vst.msk [vmem:[#allocation2 + $0x20] sm:$0xff] %vm227_vm2, %v1742_v55  ;;  %4631 = vmatmul.mubr.msk.f32.vlgmr.msra.gmra.mxu1 %vm227_vm2, %v1742_v55  ;;  %v5761_v55 = vld [vmem:[%s6111_s4 + $0x2] ss:$0 sm:$0xff] }
0x207f   :  { %4645 = vmatpush3.msra.mxu1 %v5519_v42  ;;  %4652 = vmatprep.mubr.msk.f32.mxu1 %vm5231_vm0, %v5230_v1  ;;  %v1195_v42 = vadd.f32 %v5624_v54, %v5574_v58 }
0x2080   :  { %4646 = vmatprep.subr.mxu1 %v5230_v1 }
0x2081   :  { %4647 = vmatpush3.msra.mxu1 %v5522_v43 }
0x2082   :  { %4648 = vmatprep.subr.mxu1 %v5230_v1 }
0x2083   :  { %4649 = vmatpush3.msra.mxu1 %v5526_v44 }
0x2084   :  { %4650 = vmatprep.subr.mxu1 %v5230_v1 }
0x2085   :  { %4651 = vmatpush3.msra.mxu1 %v5530_v45  ;;  %v2066_v18 = vld [vmem:[#allocation2 + $0x20] sm:$0xff] }
0x2086   :  { %4675 = vmatprep.subr.mxu1 %v5230_v1 }
0x213e   :  { %v1814_v59 = vpop.f32.mrf.mxu1 }
0x213f   :  { %v1818_v3 = vadd.f32 %v1814_v59, %v1195_v42 }
0x2140   :  { %v4632_v61 = vpop.f32.mrf.mxu1 }
0x2141   :  { %4986 = vtanh.f32 %v1818_v3  ;;  %v4176_v43 = vmul.f32 -1.442695, %v1818_v3 }
0x2143   :  { %4988 = vpow2.f32 %v4176_v43 }
0x214e   :  { %v4987_v0 = vpop.eup %4986 }
0x214f   :  { %1828 = vrot.lane.b32.xlu0 %v4987_v0, %s5232_s20 }
0x2150   :  { %v4989_v2 = vpop.eup %4988 }
0x2151   :  { %v1822_v44 = vadd.f32 1.0, %v4989_v2 }
0x2153   :  { %4990 = vrcp.f32 %v1822_v44 }
0x2160   :  { %v4991_v12 = vpop.eup %4990 }
0x2161   :  { %v1826_v4 = vmul.f32 %v4991_v12, %v1733_v50 }
0x21c1   :  { %v1829_v62 = vpop.permute.xlu0 %1828 }
0x21c2   :  { %v1831_v45 = vmul.f32 %v4991_v12, %v1829_v62 }
0x21c4   :  { %1833 = vrot.lane.b32.xlu1 %v1831_v45, %s5233_s24 }
0x2236   :  { %v1834_v5 = vpop.permute.xlu1 %1833 }
0x2237   :  { %v1836_v54 = vadd.f32 %v1834_v5, %v1826_v4 }
0x2239   :  { %4992 = vtanh.f32 %v1836_v54 }
0x2246   :  { %v4993_v8 = vpop.eup %4992 }
0x2247   :  { %1839 = vrot.lane.b32.xlu0 %v4993_v8, %s5232_s20 }
0x22b9   :  { %v1840_v7 = vpop.permute.xlu0 %1839 }
0x22ba   :  { %v1842_v10 = vmul.f32 %v4991_v12, %v1840_v7 }
0x22bc   :  { %1844 = vrot.lane.b32.xlu1 %v1842_v10, %s5233_s24 }
0x232e   :  { %v1845_v9 = vpop.permute.xlu1 %1844 }
0x232f   :  { %1847 = vst.msk [vmem:[#allocation2 + $0x28] sm:$0xff] %vm227_vm2, %v1845_v9  ;;  %4642 = vmatmul.mubr.msk.f32.vlgmr.msra.gmra.mxu0 %vm227_vm2, %v1845_v9 }
0x2330   :  { %4656 = vmatpush3.msra.mxu0 %v2074_v6  ;;  %4663 = vmatprep.mubr.msk.f32.mxu0 %vm227_vm2, %v2062_v13 }
0x2331   :  { %4657 = vmatprep.subr.mxu0 %v2073_v11 }
0x2332   :  { %4658 = vmatpush3.msra.mxu0 %v2073_v11 }
0x2333   :  { %4659 = vmatprep.subr.mxu0 %v2072_v60 }
0x2334   :  { %4660 = vmatpush3.msra.mxu0 %v2072_v60 }
0x2335   :  { %4661 = vmatprep.subr.mxu0 %v2071_v14 }
0x2336   :  { %4662 = vmatpush3.msra.mxu0 %v2071_v14  ;;  %v2067_v19 = vld [vmem:[#allocation2 + $0x28] sm:$0xff] }
0x2337   :  { %4664 = vmatmul.mubr.msk.f32.vlgmr.msra.gmra.mxu0 %vm227_vm2, %v2063_v15  ;;  %4697 = vmatprep.subr.mxu0 %v5230_v1 }
0x2338   :  { %4666 = vmatprep.mubr.msk.f32.mxu0 %vm227_vm2, %v2064_v16  ;;  %4698 = vmatpush3.msra.mxu0 %v5706_v35 }
0x2339   :  { %4699 = vmatprep.subr.mxu0 %v5230_v1 }
0x233a   :  { %4700 = vmatpush3.msra.mxu0 %v5709_v36 }
0x233b   :  { %4667 = vmatmul.mubr.msk.f32.gmra.mxu0 %vm227_vm2, %v2065_v17  ;;  %4701 = vmatprep.subr.mxu0 %v5230_v1 }
0x233c   :  { %4669 = vmatprep.mubr.msk.f32.mxu0 %vm227_vm2, %v2066_v18  ;;  %4702 = vmatpush3.msra.mxu0 %v5713_v37 }
0x233d   :  { %4703 = vmatprep.subr.mxu0 %v5230_v1 }
0x233e   :  { %4704 = vmatpush3.msra.mxu0 %v5717_v38 }
0x233f   :  { %4670 = vmatmul.mubr.msk.f32.gmra.mxu0 %vm227_vm2, %v2067_v19  ;;  %4719 = vmatprep.subr.mxu0 %v5230_v1 }
0x23ef   :  { %v1917_v21 = vpop.f32.mrf.mxu0 }
0x23f0   :  { %v1921_v22 = vadd.f32 %v1917_v21, %v1200_v20 }
0x23f1   :  { %v4643_v23 = vpop.f32.mrf.mxu0 }
0x23f2   :  { %4994 = vtanh.f32 %v1921_v22  ;;  %v4178_v26 = vmul.f32 -1.442695, %v1921_v22 }
0x23f4   :  { %4996 = vpow2.f32 %v4178_v26 }
0x23f7   :  { %v5756_v49 = vpop.f32.mrf.mxu0 }
0x23f8   :  { %v2176_v22 = vadd.f32 %v5756_v49, %v5761_v55 }
0x23f9   :  { %v2170_v53 = vpop.f32.mrf.mxu0 }
0x23fa   :  { %v2171_v42 = vadd.f32 %v5761_v55, %v2170_v53 }
0x23fb   :  { %v4668_v49 = vpop.f32.mrf.mxu0 }
0x23ff   :  { %v4995_v24 = vpop.eup %4994 }
0x2400   :  { %1931 = vrot.lane.b32.xlu0 %v4995_v24, %s5232_s20 }
0x2401   :  { %v4997_v27 = vpop.eup %4996 }
0x2402   :  { %v1925_v28 = vadd.f32 1.0, %v4997_v27 }
0x2404   :  { %4998 = vrcp.f32 %v1925_v28 }
0x2411   :  { %v4999_v29 = vpop.eup %4998 }
0x2412   :  { %v1929_v32 = vmul.f32 %v4999_v29, %v1836_v54 }
0x2472   :  { %v1932_v30 = vpop.permute.xlu0 %1931 }
0x2473   :  { %v1934_v31 = vmul.f32 %v4999_v29, %v1932_v30 }
0x2475   :  { %1936 = vrot.lane.b32.xlu1 %v1934_v31, %s5233_s24 }
0x24e7   :  { %v1937_v33 = vpop.permute.xlu1 %1936 }
0x24e8   :  { %v5702_v57 = vadd.f32 %v1937_v33, %v1929_v32 }
0x24ea   :  { %5000 = vtanh.f32 %v5702_v57 }
0x24f7   :  { %v5001_v34 = vpop.eup %5000 }
0x24f8   :  { %1942 = vrot.lane.b32.xlu0 %v5001_v34, %s5232_s20 }
0x256a   :  { %v1943_v39 = vpop.permute.xlu0 %1942 }
0x256b   :  { %v1945_v40 = vmul.f32 %v4999_v29, %v1943_v39 }
0x256d   :  { %1947 = vrot.lane.b32.xlu1 %v1945_v40, %s5233_s24 }
0x2571   :  { %2309 = vrot.lane.b32.xlu1 %v4191_v63, %s5233_s24 }
0x25df   :  { %v1948_v41 = vpop.permute.xlu1 %1947 }
0x25e0   :  { %1950 = vst.msk [vmem:[#allocation2 + $0x30] sm:$0xff] %vm227_vm2, %v1948_v41  ;;  %4653 = vmatmul.mubr.msk.f32.vlgmr.msra.gmra.mxu1 %vm227_vm2, %v1948_v41 }
0x25e1   :  { %4676 = vmatpush3.msra.mxu1 %v5706_v35  ;;  %4683 = vmatprep.mubr.msk.f32.mxu1 %vm5231_vm0, %v5230_v1 }
0x25e2   :  { %4677 = vmatprep.subr.mxu1 %v5230_v1 }
0x25e3   :  { %4678 = vmatpush3.msra.mxu1 %v5709_v36  ;;  %v2310_v62 = vpop.permute.xlu1 %2309 }
0x25e4   :  { %4679 = vmatprep.subr.mxu1 %v5230_v1 }
0x25e5   :  { %4680 = vmatpush3.msra.mxu1 %v5713_v37 }
0x25e6   :  { %4681 = vmatprep.subr.mxu1 %v5230_v1 }
0x25e7   :  { %4682 = vmatpush3.msra.mxu1 %v5717_v38  ;;  %v2068_v47 = vld [vmem:[#allocation2 + $0x30] sm:$0xff] }
0x25e8   :  { %4684 = vmatmul.mubr.msk.f32.vlgmr.msra.gmra.mxu1 %vm227_vm2, %v4190_v46  ;;  %4672 = vmatprep.mubr.msk.f32.mxu0 %vm227_vm2, %v2068_v47 }
0x25e9   :  { %4686 = vmatprep.subr.mxu1 %v5230_v1  ;;  %4694 = vmatprep.mubr.msk.f32.mxu1 %vm5231_vm0, %v5230_v1 }
0x25ea   :  { %4687 = vmatpush3.msra.mxu1 %v5706_v35 }
0x25eb   :  { %4688 = vmatprep.subr.mxu1 %v5230_v1 }
0x25ec   :  { %4689 = vmatpush3.msra.mxu1 %v5709_v36 }
0x25ed   :  { %4690 = vmatprep.subr.mxu1 %v5230_v1 }
0x25ee   :  { %4691 = vmatpush3.msra.mxu1 %v5713_v37 }
0x25ef   :  { %4692 = vmatprep.subr.mxu1 %v5230_v1 }
0x25f0   :  { %4693 = vmatpush3.msra.mxu1 %v5717_v38 }
0x25f1   :  { %4708 = vmatprep.subr.mxu1 %v5230_v1 }
0x26a0   :  { %v2020_v50 = vpop.f32.mrf.mxu1 }
0x26a1   :  { %v2024_v51 = vadd.f32 %v2020_v50, %v1205_v48  ;;  %v2180_v50 = vpop.f32.mrf.mxu0 }
0x26a2   :  { %v4654_v52 = vpop.f32.mrf.mxu1 }
0x26a3   :  { %v4180_v8 = vmul.f32 -1.442695, %v2024_v51 }
0x26a8   :  { %v2296_v59 = vpop.f32.mrf.mxu1 }
0x26a9   :  { %v2300_v3 = vadd.f32 %v2296_v59, %v2171_v42  ;;  %v2181_v59 = vadd.f32 %v5761_v55, %v2180_v50 }
0x26aa   :  { %v4685_v61 = vpop.f32.mrf.mxu1 }
0x26ab   :  { %5002 = vtanh.f32 %v2300_v3  ;;  %v4193_v58 = vmul.f32 -1.442695, %v2300_v3 }
0x26ad   :  { %5004 = vpow2.f32 %v4193_v58 }
0x26b8   :  { %v5003_v0 = vpop.eup %5002 }
0x26b9   :  { %2314 = vrot.lane.b32.xlu0 %v5003_v0, %s5232_s20 }
0x26ba   :  { %v5005_v56 = vpop.eup %5004 }
0x26bb   :  { %v2304_v43 = vadd.f32 1.0, %v5005_v56 }
0x26bd   :  { %5006 = vrcp.f32 %v2304_v43 }
0x26ca   :  { %v5007_v2 = vpop.eup %5006 }
0x26cb   :  { %v2312_v45 = vmul.f32 %v5007_v2, %v2310_v62 }
0x272b   :  { %v2315_v44 = vpop.permute.xlu0 %2314 }
0x272c   :  { %v2317_v12 = vmul.f32 %v5007_v2, %v2315_v44 }
0x272e   :  { %2319 = vrot.lane.b32.xlu0 %v2317_v12, %s5233_s24 }
0x27a0   :  { %v2320_v4 = vpop.permute.xlu0 %2319 }
0x27a1   :  { %v2322_v5 = vadd.f32 %v2320_v4, %v2312_v45 }
0x27a3   :  { %5008 = vtanh.f32 %v2322_v5 }
0x27a4   :  { %5010 = vtanh.f32 %v2024_v51  ;;  %v5811_v51 = vpop.f32.mrf.mxu0 }
0x27a5   :  { %5012 = vpow2.f32 %v4180_v8 }
0x27a6   :  { %v5813_v52 = vpop.f32.mrf.mxu0 }
0x27b0   :  { %v5009_v54 = vpop.eup %5008 }
0x27b1   :  { %2325 = vrot.lane.b32.xlu1 %v5009_v54, %s5232_s20  ;;  %v5011_v6 = vpop.eup %5010 }
0x27b2   :  { %v5013_v7 = vpop.eup %5012 }
0x27b3   :  { %v2028_v10 = vadd.f32 1.0, %v5013_v7 }
0x27b5   :  { %2034 = vrot.lane.b32.xlu1 %v5011_v6, %s5232_s20  ;;  %5014 = vrcp.f32 %v2028_v10  ;;  %v2186_v10 = vadd.f32 %v4668_v49, %v5761_v55 }
0x27c2   :  { %v5015_v13 = vpop.eup %5014 }
0x27c3   :  { %v2032_v16 = vmul.f32 %v5015_v13, %v5702_v57 }
0x2823   :  { %v2326_v9 = vpop.permute.xlu1 %2325 }
0x2824   :  { %v2328_v11 = vmul.f32 %v5007_v2, %v2326_v9 }
0x2826   :  { %2330 = vrot.lane.b32.xlu0 %v2328_v11, %s5233_s24 }
0x2827   :  { %v2035_v60 = vpop.permute.xlu1 %2034 }
0x2828   :  { %v2037_v14 = vmul.f32 %v5015_v13, %v2035_v60 }
0x282a   :  { %2039 = vrot.lane.b32.xlu1 %v2037_v14, %s5233_s24 }
0x2898   :  { %v2331_v15 = vpop.permute.xlu0 %2330 }
0x2899   :  { %2333 = vst.msk [vmem:[#allocation2] sm:$0xff] %vm227_vm2, %v2331_v15  ;;  %4695 = vmatmul.mubr.msk.f32.vlgmr.msra.gmra.mxu1 %vm227_vm2, %v2331_v15 }
0x289a   :  { %4709 = vmatpush3.msra.mxu1 %v5706_v35  ;;  %4716 = vmatprep.mubr.msk.f32.mxu1 %vm5231_vm0, %v5230_v1 }
0x289b   :  { %4710 = vmatprep.subr.mxu1 %v5230_v1 }
0x289c   :  { %v2040_v17 = vpop.permute.xlu1 %2039  ;;  %4711 = vmatpush3.msra.mxu1 %v5709_v36 }
0x289d   :  { %v5778_v18 = vadd.f32 %v2040_v17, %v2032_v16  ;;  %4712 = vmatprep.subr.mxu1 %v5230_v1 }
0x289e   :  { %4713 = vmatpush3.msra.mxu1 %v5713_v37 }
0x289f   :  { %5016 = vtanh.f32 %v5778_v18  ;;  %4714 = vmatprep.subr.mxu1 %v5230_v1 }
0x28a0   :  { %4715 = vmatpush3.msra.mxu1 %v5717_v38 }
0x28a1   :  { %4730 = vmatprep.subr.mxu1 %v5230_v1 }
0x28ac   :  { %v5017_v19 = vpop.eup %5016 }
0x28ad   :  { %2045 = vrot.lane.b32.xlu1 %v5017_v19, %s5232_s20 }
0x291f   :  { %v2046_v20 = vpop.permute.xlu1 %2045 }
0x2920   :  { %v2048_v21 = vmul.f32 %v5015_v13, %v2046_v20 }
0x2922   :  { %2050 = vrot.lane.b32.xlu1 %v2048_v21, %s5233_s24 }
0x2959   :  { %v2403_v23 = vpop.f32.mrf.mxu1 }
0x295a   :  { %v2407_v24 = vadd.f32 %v2403_v23, %v2176_v22 }
0x295b   :  { %v4696_v26 = vpop.f32.mrf.mxu1 }
0x295c   :  { %5018 = vtanh.f32 %v2407_v24  ;;  %v4195_v30 = vmul.f32 -1.442695, %v2407_v24 }
0x295e   :  { %5020 = vpow2.f32 %v4195_v30 }
0x2969   :  { %v5019_v27 = vpop.eup %5018 }
0x296a   :  { %2417 = vrot.lane.b32.xlu0 %v5019_v27, %s5232_s20 }
0x296b   :  { %v5021_v31 = vpop.eup %5020 }
0x296c   :  { %v2411_v32 = vadd.f32 1.0, %v5021_v31 }
0x296e   :  { %5022 = vrcp.f32 %v2411_v32 }
0x297b   :  { %v5023_v33 = vpop.eup %5022 }
0x297c   :  { %v2415_v39 = vmul.f32 %v5023_v33, %v2322_v5 }
0x2994   :  { %v2051_v28 = vpop.permute.xlu1 %2050 }
0x2995   :  { %2053 = vst.msk [vmem:[#allocation2 + $0x38] sm:$0xff] %vm227_vm2, %v2051_v28  ;;  %2055 = vst.msk [vmem:[#allocation10 + $0x8] sm:$0xff] %vm227_vm2, %v2051_v28 }
0x299c   :  { %v2069_v29 = vld [vmem:[#allocation2 + $0x38] sm:$0xff] }
0x299d   :  { %4673 = vmatmul.mubr.msk.f32.gmra.mxu0 %vm227_vm2, %v2069_v29  ;;  %v2191_v29 = vadd.f32 %v5761_v55, %v5813_v52 }
0x299e   :  { %4705 = vmatprep.mubr.msk.f32.mxu0 %vm5231_vm0, %v5230_v1 }
0x29dc   :  { %v2418_v57 = vpop.permute.xlu0 %2417 }
0x29dd   :  { %v2420_v34 = vmul.f32 %v5023_v33, %v2418_v57 }
0x29df   :  { %2422 = vrot.lane.b32.xlu0 %v2420_v34, %s5233_s24 }
0x2a51   :  { %v2423_v40 = vpop.permute.xlu0 %2422 }
0x2a52   :  { %v2425_v63 = vadd.f32 %v2423_v40, %v2415_v39 }
0x2a54   :  { %5024 = vtanh.f32 %v2425_v63 }
0x2a5d   :  { %v5815_v53 = vpop.f32.mrf.mxu0 }
0x2a5f   :  { %v5817_v42 = vpop.f32.mrf.mxu0 }
0x2a61   :  { %v5025_v41 = vpop.eup %5024 }
0x2a62   :  { %2428 = vrot.lane.b32.xlu0 %v5025_v41, %s5232_s20 }
0x2ad4   :  { %v2429_v46 = vpop.permute.xlu0 %2428 }
0x2ad5   :  { %v2431_v47 = vmul.f32 %v5023_v33, %v2429_v46 }
0x2ad7   :  { %2433 = vrot.lane.b32.xlu0 %v2431_v47, %s5233_s24 }
0x2b49   :  { %v2434_v48 = vpop.permute.xlu0 %2433 }
0x2b4a   :  { %2436 = vst.msk [vmem:[#allocation2 + $0x8] sm:$0xff] %vm227_vm2, %v2434_v48  ;;  %4706 = vmatmul.mubr.msk.f32.vlgmr.msra.gmra.mxu0 %vm227_vm2, %v2434_v48 }
0x2b4b   :  { %4720 = vmatpush3.msra.mxu0 %v5706_v35  ;;  %4727 = vmatprep.mubr.msk.f32.mxu0 %vm5231_vm0, %v5230_v1 }
0x2b4c   :  { %4721 = vmatprep.subr.mxu0 %v5230_v1 }
0x2b4d   :  { %4722 = vmatpush3.msra.mxu0 %v5709_v36 }
0x2b4e   :  { %4723 = vmatprep.subr.mxu0 %v5230_v1 }
0x2b4f   :  { %4724 = vmatpush3.msra.mxu0 %v5713_v37 }
0x2b50   :  { %4725 = vmatprep.subr.mxu0 %v5230_v1 }
0x2b51   :  { %4726 = vmatpush3.msra.mxu0 %v5717_v38 }
0x2b52   :  { %4741 = vmatprep.subr.mxu0 %v5230_v1 }
0x2c0a   :  { %v2506_v3 = vpop.f32.mrf.mxu0 }
0x2c0b   :  { %v2510_v61 = vadd.f32 %v2506_v3, %v2181_v59 }
0x2c0c   :  { %v4707_v0 = vpop.f32.mrf.mxu0 }
0x2c0d   :  { %5026 = vtanh.f32 %v2510_v61  ;;  %v4197_v56 = vmul.f32 -1.442695, %v2510_v61 }
0x2c0f   :  { %5028 = vpow2.f32 %v4197_v56 }
0x2c1a   :  { %v5027_v58 = vpop.eup %5026 }
0x2c1b   :  { %2520 = vrot.lane.b32.xlu1 %v5027_v58, %s5232_s20 }
0x2c1c   :  { %v5029_v43 = vpop.eup %5028 }
0x2c1d   :  { %v2514_v2 = vadd.f32 1.0, %v5029_v43 }
0x2c1f   :  { %5030 = vrcp.f32 %v2514_v2 }
0x2c2c   :  { %v5031_v44 = vpop.eup %5030 }
0x2c2d   :  { %v2518_v45 = vmul.f32 %v5031_v44, %v2425_v63 }
0x2c8d   :  { %v2521_v12 = vpop.permute.xlu1 %2520 }
0x2c8e   :  { %v2523_v62 = vmul.f32 %v5031_v44, %v2521_v12 }
0x2c90   :  { %2525 = vrot.lane.b32.xlu0 %v2523_v62, %s5233_s24  ;;  %v3075_v62 = vld [vmem:[#allocation5 + $0x58] sm:$0xff] }
0x2d02   :  { %v2526_v4 = vpop.permute.xlu0 %2525 }
0x2d03   :  { %v2528_v5 = vadd.f32 %v2526_v4, %v2518_v45 }
0x2d05   :  { %5032 = vtanh.f32 %v2528_v5 }
0x2d12   :  { %v5033_v54 = vpop.eup %5032 }
0x2d13   :  { %2531 = vrot.lane.b32.xlu1 %v5033_v54, %s5232_s20 }
0x2d85   :  { %v2532_v6 = vpop.permute.xlu1 %2531 }
0x2d86   :  { %v2534_v8 = vmul.f32 %v5031_v44, %v2532_v6  ;;  %v3074_v6 = vld [vmem:[#allocation5 + $0x50] sm:$0xff] }
0x2d88   :  { %2536 = vrot.lane.b32.xlu0 %v2534_v8, %s5233_s24  ;;  %v3063_v8 = vld [vmem:[#allocation2] sm:$0xff] }
0x2dfa   :  { %v2537_v7 = vpop.permute.xlu0 %2536 }
0x2dfb   :  { %2539 = vst.msk [vmem:[#allocation2 + $0x10] sm:$0xff] %vm227_vm2, %v2537_v7  ;;  %4717 = vmatmul.mubr.msk.f32.vlgmr.msra.gmra.mxu1 %vm227_vm2, %v2537_v7  ;;  %v3073_v7 = vld [vmem:[#allocation5 + $0x48] sm:$0xff] }
0x2dfc   :  { %4731 = vmatpush3.msra.mxu1 %v5706_v35  ;;  %4738 = vmatprep.mubr.msk.f32.mxu1 %vm5231_vm0, %v5230_v1 }
0x2dfd   :  { %4732 = vmatprep.subr.mxu1 %v5230_v1 }
0x2dfe   :  { %4733 = vmatpush3.msra.mxu1 %v5709_v36 }
0x2dff   :  { %4734 = vmatprep.subr.mxu1 %v5230_v1 }
0x2e00   :  { %4735 = vmatpush3.msra.mxu1 %v5713_v37 }
0x2e01   :  { %4736 = vmatprep.subr.mxu1 %v5230_v1 }
0x2e02   :  { %4737 = vmatpush3.msra.mxu1 %v5717_v38 }
0x2e03   :  { %4752 = vmatprep.subr.mxu1 %v5230_v1 }
0x2ebb   :  { %v2609_v9 = vpop.f32.mrf.mxu1 }
0x2ebc   :  { %v2613_v11 = vadd.f32 %v2609_v9, %v2186_v10  ;;  %v3072_v10 = vld [vmem:[#allocation5 + $0x40] sm:$0xff] }
0x2ebd   :  { %v4718_v13 = vpop.f32.mrf.mxu1  ;;  %v3064_v9 = vld [vmem:[#allocation2 + $0x8] sm:$0xff] }
0x2ebe   :  { %5034 = vtanh.f32 %v2613_v11  ;;  %v4199_v14 = vmul.f32 -1.442695, %v2613_v11  ;;  %v3065_v11 = vld [vmem:[#allocation2 + $0x10] sm:$0xff] }
0x2ec0   :  { %5036 = vpow2.f32 %v4199_v14 }
0x2ecb   :  { %v5035_v60 = vpop.eup %5034 }
0x2ecc   :  { %2623 = vrot.lane.b32.xlu1 %v5035_v60, %s5232_s20 }
0x2ecd   :  { %v5037_v15 = vpop.eup %5036 }
0x2ece   :  { %v2617_v16 = vadd.f32 1.0, %v5037_v15  ;;  %v2201_v15 = vadd.f32 %v5761_v55, %v5817_v42 }
0x2ed0   :  { %5038 = vrcp.f32 %v2617_v16 }
0x2edd   :  { %v5039_v17 = vpop.eup %5038 }
0x2ede   :  { %v2621_v21 = vmul.f32 %v5039_v17, %v2528_v5 }
0x2f3e   :  { %v2624_v19 = vpop.permute.xlu1 %2623 }
0x2f3f   :  { %v2626_v20 = vmul.f32 %v5039_v17, %v2624_v19 }
0x2f41   :  { %2628 = vrot.lane.b32.xlu0 %v2626_v20, %s5233_s24 }
0x2fb3   :  { %v2629_v22 = vpop.permute.xlu0 %2628 }
0x2fb4   :  { %v2631_v23 = vadd.f32 %v2629_v22, %v2621_v21 }
0x2fb6   :  { %5040 = vtanh.f32 %v2631_v23 }
0x2fc3   :  { %v5041_v24 = vpop.eup %5040 }
0x2fc4   :  { %2634 = vrot.lane.b32.xlu1 %v5041_v24, %s5232_s20 }
0x3036   :  { %v2635_v26 = vpop.permute.xlu1 %2634 }
0x3037   :  { %v2637_v27 = vmul.f32 %v5039_v17, %v2635_v26 }
0x3039   :  { %2639 = vrot.lane.b32.xlu0 %v2637_v27, %s5233_s24 }
0x30ab   :  { %v2640_v28 = vpop.permute.xlu0 %2639 }
0x30ac   :  { %2642 = vst.msk [vmem:[#allocation2 + $0x18] sm:$0xff] %vm227_vm2, %v2640_v28  ;;  %4728 = vmatmul.mubr.msk.f32.vlgmr.msra.gmra.mxu0 %vm227_vm2, %v2640_v28 }
0x30ad   :  { %4742 = vmatpush3.msra.mxu0 %v5706_v35  ;;  %4749 = vmatprep.mubr.msk.f32.mxu0 %vm5231_vm0, %v5230_v1 }
0x30ae   :  { %4743 = vmatprep.subr.mxu0 %v5230_v1 }
0x30af   :  { %4744 = vmatpush3.msra.mxu0 %v5709_v36 }
0x30b0   :  { %4745 = vmatprep.subr.mxu0 %v5230_v1 }
0x30b1   :  { %4746 = vmatpush3.msra.mxu0 %v5713_v37 }
0x30b2   :  { %4747 = vmatprep.subr.mxu0 %v5230_v1 }
0x30b3   :  { %4748 = vmatpush3.msra.mxu0 %v5717_v38  ;;  %v3066_v13 = vld [vmem:[#allocation2 + $0x18] sm:$0xff] }
0x30b4   :  { %4763 = vmatprep.subr.mxu0 %v3075_v62 }
0x316c   :  { %v2712_v30 = vpop.f32.mrf.mxu0 }
0x316d   :  { %v2716_v31 = vadd.f32 %v2712_v30, %v2191_v29 }
0x316e   :  { %v4729_v32 = vpop.f32.mrf.mxu0 }
0x316f   :  { %5042 = vtanh.f32 %v2716_v31  ;;  %v4201_v57 = vmul.f32 -1.442695, %v2716_v31  ;;  %v5893_v31 = vld [vmem:[#allocation8 + $0x78] sm:$0xff]  ;;  %v5896_v32 = vld [vmem:[#allocation8 + $0x70] sm:$0xff] }
0x3171   :  { %5044 = vpow2.f32 %v4201_v57  ;;  %v5904_v57 = vld [vmem:[#allocation8 + $0x60] sm:$0xff] }
0x317c   :  { %v5043_v33 = vpop.eup %5042 }
0x317d   :  { %2726 = vrot.lane.b32.xlu1 %v5043_v33, %s5232_s20  ;;  %v5900_v33 = vld [vmem:[#allocation8 + $0x68] sm:$0xff] }
0x317e   :  { %v5045_v34 = vpop.eup %5044 }
0x317f   :  { %v2720_v39 = vadd.f32 1.0, %v5045_v34 }
0x3181   :  { %5046 = vrcp.f32 %v2720_v39 }
0x318e   :  { %v5047_v40 = vpop.eup %5046 }
0x318f   :  { %v2724_v46 = vmul.f32 %v5047_v40, %v2631_v23 }
0x31ef   :  { %v2727_v63 = vpop.permute.xlu1 %2726 }
0x31f0   :  { %v2729_v41 = vmul.f32 %v5047_v40, %v2727_v63 }
0x31f2   :  { %2731 = vrot.lane.b32.xlu0 %v2729_v41, %s5233_s24  ;;  %v4217_v41 = vld [vmem:[%s6112_s5 + $0x18] sm:$0xff] }
0x3264   :  { %v2732_v47 = vpop.permute.xlu0 %2731 }
0x3265   :  { %v2734_v48 = vadd.f32 %v2732_v47, %v2724_v46  ;;  %v2206_v47 = vadd.f32 %v5815_v53, %v5761_v55 }
0x3267   :  { %5048 = vtanh.f32 %v2734_v48 }
0x3274   :  { %v5049_v49 = vpop.eup %5048 }
0x3275   :  { %2737 = vrot.lane.b32.xlu1 %v5049_v49, %s5232_s20 }
0x32e7   :  { %v2738_v50 = vpop.permute.xlu1 %2737 }
0x32e8   :  { %v2740_v52 = vmul.f32 %v5047_v40, %v2738_v50  ;;  %v4218_v40 = vld [vmem:[%s6113_s6 + $0x18] sm:$0xff] }
0x32ea   :  { %2742 = vrot.lane.b32.xlu0 %v2740_v52, %s5233_s24 }
0x335c   :  { %v2743_v59 = vpop.permute.xlu0 %2742 }
0x335d   :  { %2745 = vst.msk [vmem:[#allocation2 + $0x20] sm:$0xff] %vm227_vm2, %v2743_v59  ;;  %4739 = vmatmul.mubr.msk.f32.vlgmr.msra.gmra.mxu1 %vm227_vm2, %v2743_v59 }
0x335e   :  { %4753 = vmatpush3.msra.mxu1 %v5706_v35  ;;  %4760 = vmatprep.mubr.msk.f32.mxu1 %vm5231_vm0, %v5230_v1  ;;  %v2196_v35 = vadd.f32 %v5811_v51, %v5761_v55 }
0x335f   :  { %4754 = vmatprep.subr.mxu1 %v5230_v1 }
0x3360   :  { %4755 = vmatpush3.msra.mxu1 %v5709_v36 }
0x3361   :  { %4756 = vmatprep.subr.mxu1 %v5230_v1 }
0x3362   :  { %4757 = vmatpush3.msra.mxu1 %v5713_v37 }
0x3363   :  { %4758 = vmatprep.subr.mxu1 %v5230_v1 }
0x3364   :  { %4759 = vmatpush3.msra.mxu1 %v5717_v38  ;;  %v3067_v60 = vld [vmem:[#allocation2 + $0x20] sm:$0xff] }
0x3365   :  { %4783 = vmatprep.subr.mxu1 %v5230_v1 }
0x341d   :  { %v2815_v3 = vpop.f32.mrf.mxu1 }
0x341e   :  { %v2819_v61 = vadd.f32 %v2815_v3, %v2196_v35  ;;  %v5948_v35 = vld [vmem:[%s6111_s4 + $0x3] ss:$0 sm:$0xff] }
0x341f   :  { %v4740_v0 = vpop.f32.mrf.mxu1 }
0x3420   :  { %5050 = vtanh.f32 %v2819_v61  ;;  %v4203_v36 = vmul.f32 -1.442695, %v2819_v61 }
0x3422   :  { %5052 = vpow2.f32 %v4203_v36 }
0x342d   :  { %v5051_v58 = vpop.eup %5050 }
0x342e   :  { %2829 = vrot.lane.b32.xlu1 %v5051_v58, %s5232_s20 }
0x342f   :  { %v5053_v56 = vpop.eup %5052 }
0x3430   :  { %v2823_v37 = vadd.f32 1.0, %v5053_v56 }
0x3432   :  { %5054 = vrcp.f32 %v2823_v37 }
0x343f   :  { %v5055_v43 = vpop.eup %5054 }
0x3440   :  { %v2827_v44 = vmul.f32 %v5055_v43, %v2734_v48 }
0x34a0   :  { %v2830_v2 = vpop.permute.xlu1 %2829 }
0x34a1   :  { %v2832_v38 = vmul.f32 %v5055_v43, %v2830_v2 }
0x34a3   :  { %2834 = vrot.lane.b32.xlu0 %v2832_v38, %s5233_s24 }
0x3515   :  { %v2835_v12 = vpop.permute.xlu0 %2834 }
0x3516   :  { %v2837_v51 = vadd.f32 %v2835_v12, %v2827_v44 }
0x3518   :  { %5056 = vtanh.f32 %v2837_v51 }
0x3525   :  { %v5057_v45 = vpop.eup %5056 }
0x3526   :  { %2840 = vrot.lane.b32.xlu1 %v5057_v45, %s5232_s20 }
0x3598   :  { %v2841_v4 = vpop.permute.xlu1 %2840 }
0x3599   :  { %v2843_v5 = vmul.f32 %v5055_v43, %v2841_v4 }
0x359b   :  { %2845 = vrot.lane.b32.xlu0 %v2843_v5, %s5233_s24 }
0x360d   :  { %v2846_v54 = vpop.permute.xlu0 %2845 }
0x360e   :  { %2848 = vst.msk [vmem:[#allocation2 + $0x28] sm:$0xff] %vm227_vm2, %v2846_v54  ;;  %4750 = vmatmul.mubr.msk.f32.vlgmr.msra.gmra.mxu0 %vm227_vm2, %v2846_v54 }
0x360f   :  { %4764 = vmatpush3.msra.mxu0 %v3075_v62  ;;  %4771 = vmatprep.mubr.msk.f32.mxu0 %vm227_vm2, %v3063_v8 }
0x3610   :  { %4765 = vmatprep.subr.mxu0 %v3074_v6 }
0x3611   :  { %4766 = vmatpush3.msra.mxu0 %v3074_v6 }
0x3612   :  { %4767 = vmatprep.subr.mxu0 %v3073_v7 }
0x3613   :  { %4768 = vmatpush3.msra.mxu0 %v3073_v7 }
0x3614   :  { %4769 = vmatprep.subr.mxu0 %v3072_v10 }
0x3615   :  { %4770 = vmatpush3.msra.mxu0 %v3072_v10  ;;  %v3068_v14 = vld [vmem:[#allocation2 + $0x28] sm:$0xff] }
0x3616   :  { %4772 = vmatmul.mubr.msk.f32.vlgmr.msra.gmra.mxu0 %vm227_vm2, %v3064_v9  ;;  %4805 = vmatprep.subr.mxu0 %v5230_v1 }
0x3617   :  { %4774 = vmatprep.mubr.msk.f32.mxu0 %vm227_vm2, %v3065_v11  ;;  %4806 = vmatpush3.msra.mxu0 %v5893_v31 }
0x3618   :  { %4807 = vmatprep.subr.mxu0 %v5230_v1 }
0x3619   :  { %4808 = vmatpush3.msra.mxu0 %v5896_v32 }
0x361a   :  { %4775 = vmatmul.mubr.msk.f32.gmra.mxu0 %vm227_vm2, %v3066_v13  ;;  %4809 = vmatprep.subr.mxu0 %v5230_v1 }
0x361b   :  { %4777 = vmatprep.mubr.msk.f32.mxu0 %vm227_vm2, %v3067_v60  ;;  %4810 = vmatpush3.msra.mxu0 %v5900_v33 }
0x361c   :  { %4811 = vmatprep.subr.mxu0 %v5230_v1 }
0x361d   :  { %4812 = vmatpush3.msra.mxu0 %v5904_v57 }
0x361e   :  { %4778 = vmatmul.mubr.msk.f32.gmra.mxu0 %vm227_vm2, %v3068_v14  ;;  %4827 = vmatprep.subr.mxu0 %v5230_v1 }
0x36ce   :  { %v2918_v16 = vpop.f32.mrf.mxu0 }
0x36cf   :  { %v2922_v17 = vadd.f32 %v2918_v16, %v2201_v15 }
0x36d0   :  { %v4751_v19 = vpop.f32.mrf.mxu0 }
0x36d1   :  { %5058 = vtanh.f32 %v2922_v17  ;;  %v4205_v21 = vmul.f32 -1.442695, %v2922_v17 }
0x36d3   :  { %5060 = vpow2.f32 %v4205_v21 }
0x36d6   :  { %v5943_v48 = vpop.f32.mrf.mxu0 }
0x36d7   :  { %v3177_v19 = vadd.f32 %v5943_v48, %v5948_v35 }
0x36d8   :  { %v3171_v59 = vpop.f32.mrf.mxu0 }
0x36d9   :  { %v3172_v3 = vadd.f32 %v5948_v35, %v3171_v59 }
0x36de   :  { %v5059_v20 = vpop.eup %5058 }
0x36df   :  { %2932 = vrot.lane.b32.xlu1 %v5059_v20, %s5232_s20 }
0x36e0   :  { %v5061_v22 = vpop.eup %5060 }
0x36e1   :  { %v2926_v23 = vadd.f32 1.0, %v5061_v22 }
0x36e3   :  { %5062 = vrcp.f32 %v2926_v23 }
0x36f0   :  { %v5063_v24 = vpop.eup %5062 }
0x36f1   :  { %v2930_v28 = vmul.f32 %v5063_v24, %v2837_v51 }
0x3751   :  { %v2933_v26 = vpop.permute.xlu1 %2932 }
0x3752   :  { %v2935_v27 = vmul.f32 %v5063_v24, %v2933_v26 }
0x3754   :  { %2937 = vrot.lane.b32.xlu0 %v2935_v27, %s5233_s24 }
0x37c6   :  { %v2938_v29 = vpop.permute.xlu0 %2937 }
0x37c7   :  { %v5889_v42 = vadd.f32 %v2938_v29, %v2930_v28 }
0x37c9   :  { %5064 = vtanh.f32 %v5889_v42 }
0x37d6   :  { %v5065_v30 = vpop.eup %5064 }
0x37d7   :  { %2943 = vrot.lane.b32.xlu1 %v5065_v30, %s5232_s20 }
0x3849   :  { %v2944_v34 = vpop.permute.xlu1 %2943 }
0x384a   :  { %v2946_v39 = vmul.f32 %v5063_v24, %v2944_v34 }
0x384c   :  { %2948 = vrot.lane.b32.xlu0 %v2946_v39, %s5233_s24 }
0x3850   :  { %3310 = vrot.lane.b32.xlu0 %v4218_v40, %s5233_s24 }
0x38be   :  { %v2949_v63 = vpop.permute.xlu0 %2948 }
0x38bf   :  { %2951 = vst.msk [vmem:[#allocation2 + $0x30] sm:$0xff] %vm227_vm2, %v2949_v63  ;;  %4761 = vmatmul.mubr.msk.f32.vlgmr.msra.gmra.mxu1 %vm227_vm2, %v2949_v63 }
0x38c0   :  { %4784 = vmatpush3.msra.mxu1 %v5893_v31  ;;  %4791 = vmatprep.mubr.msk.f32.mxu1 %vm5231_vm0, %v5230_v1 }
0x38c1   :  { %4785 = vmatprep.subr.mxu1 %v5230_v1 }
0x38c2   :  { %4786 = vmatpush3.msra.mxu1 %v5896_v32  ;;  %v3311_v38 = vpop.permute.xlu0 %3310 }
0x38c3   :  { %4787 = vmatprep.subr.mxu1 %v5230_v1 }
0x38c4   :  { %4788 = vmatpush3.msra.mxu1 %v5900_v33 }
0x38c5   :  { %4789 = vmatprep.subr.mxu1 %v5230_v1 }
0x38c6   :  { %4790 = vmatpush3.msra.mxu1 %v5904_v57  ;;  %v3069_v46 = vld [vmem:[#allocation2 + $0x30] sm:$0xff] }
0x38c7   :  { %4792 = vmatmul.mubr.msk.f32.vlgmr.msra.gmra.mxu1 %vm227_vm2, %v4217_v41  ;;  %4780 = vmatprep.mubr.msk.f32.mxu0 %vm227_vm2, %v3069_v46 }
0x38c8   :  { %4794 = vmatprep.subr.mxu1 %v5230_v1  ;;  %4802 = vmatprep.mubr.msk.f32.mxu1 %vm5231_vm0, %v5230_v1 }
0x38c9   :  { %4795 = vmatpush3.msra.mxu1 %v5893_v31 }
0x38ca   :  { %4796 = vmatprep.subr.mxu1 %v5230_v1 }
0x38cb   :  { %4797 = vmatpush3.msra.mxu1 %v5896_v32 }
0x38cc   :  { %4798 = vmatprep.subr.mxu1 %v5230_v1 }
0x38cd   :  { %4799 = vmatpush3.msra.mxu1 %v5900_v33 }
0x38ce   :  { %4800 = vmatprep.subr.mxu1 %v5230_v1 }
0x38cf   :  { %4801 = vmatpush3.msra.mxu1 %v5904_v57 }
0x38d0   :  { %4816 = vmatprep.subr.mxu1 %v5230_v1 }
0x397f   :  { %v3021_v49 = vpop.f32.mrf.mxu1 }
0x3980   :  { %v3025_v50 = vadd.f32 %v3021_v49, %v2206_v47  ;;  %v4776_v49 = vpop.f32.mrf.mxu0 }
0x3981   :  { %v4762_v52 = vpop.f32.mrf.mxu1 }
0x3982   :  { %v4207_v4 = vmul.f32 -1.442695, %v3025_v50 }
0x3987   :  { %v3297_v61 = vpop.f32.mrf.mxu1 }
0x3988   :  { %v3301_v0 = vadd.f32 %v3297_v61, %v3172_v3 }
0x3989   :  { %v4793_v58 = vpop.f32.mrf.mxu1 }
0x398a   :  { %5066 = vtanh.f32 %v3301_v0  ;;  %v4220_v55 = vmul.f32 -1.442695, %v3301_v0 }
0x398c   :  { %5068 = vpow2.f32 %v4220_v55 }
0x3997   :  { %v5067_v36 = vpop.eup %5066 }
0x3998   :  { %3315 = vrot.lane.b32.xlu1 %v5067_v36, %s5232_s20 }
0x3999   :  { %v5069_v53 = vpop.eup %5068 }
0x399a   :  { %v3305_v56 = vadd.f32 1.0, %v5069_v53 }
0x399c   :  { %5070 = vrcp.f32 %v3305_v56 }
0x39a9   :  { %v5071_v37 = vpop.eup %5070 }
0x39aa   :  { %v3313_v44 = vmul.f32 %v5071_v37, %v3311_v38 }
0x3a0a   :  { %v3316_v43 = vpop.permute.xlu1 %3315 }
0x3a0b   :  { %v3318_v2 = vmul.f32 %v5071_v37, %v3316_v43 }
0x3a0d   :  { %3320 = vrot.lane.b32.xlu1 %v3318_v2, %s5233_s24 }
0x3a7f   :  { %v3321_v12 = vpop.permute.xlu1 %3320 }
0x3a80   :  { %v3323_v51 = vadd.f32 %v3321_v12, %v3313_v44 }
0x3a82   :  { %5072 = vtanh.f32 %v3323_v51 }
0x3a83   :  { %5074 = vtanh.f32 %v3025_v50  ;;  %v3181_v50 = vpop.f32.mrf.mxu0 }
0x3a84   :  { %5076 = vpow2.f32 %v4207_v4  ;;  %v3182_v0 = vadd.f32 %v5948_v35, %v3181_v50 }
0x3a85   :  { %v5998_v52 = vpop.f32.mrf.mxu0 }
0x3a87   :  { %v6000_v59 = vpop.f32.mrf.mxu0 }
0x3a8f   :  { %v5073_v62 = vpop.eup %5072 }
0x3a90   :  { %3326 = vrot.lane.b32.xlu0 %v5073_v62, %s5232_s20  ;;  %v5075_v45 = vpop.eup %5074 }
0x3a91   :  { %v5077_v5 = vpop.eup %5076 }
0x3a92   :  { %v3029_v54 = vadd.f32 1.0, %v5077_v5 }
0x3a94   :  { %3035 = vrot.lane.b32.xlu0 %v5075_v45, %s5232_s20  ;;  %5078 = vrcp.f32 %v3029_v54 }
0x3aa1   :  { %v5079_v7 = vpop.eup %5078 }
0x3aa2   :  { %v3033_v13 = vmul.f32 %v5079_v7, %v5889_v42 }
0x3b02   :  { %v3327_v6 = vpop.permute.xlu0 %3326 }
0x3b03   :  { %v3329_v8 = vmul.f32 %v5071_v37, %v3327_v6  ;;  %v3187_v6 = vadd.f32 %v4776_v49, %v5948_v35 }
0x3b05   :  { %3331 = vrot.lane.b32.xlu1 %v3329_v8, %s5233_s24 }
0x3b06   :  { %v3036_v10 = vpop.permute.xlu0 %3035 }
0x3b07   :  { %v3038_v9 = vmul.f32 %v5079_v7, %v3036_v10 }
0x3b09   :  { %3040 = vrot.lane.b32.xlu0 %v3038_v9, %s5233_s24 }
0x3b77   :  { %v3332_v11 = vpop.permute.xlu1 %3331 }
0x3b78   :  { %3334 = vst.msk [vmem:[#allocation2] sm:$0xff] %vm227_vm2, %v3332_v11  ;;  %4803 = vmatmul.mubr.msk.f32.vlgmr.msra.gmra.mxu1 %vm227_vm2, %v3332_v11 }
0x3b79   :  { %4817 = vmatpush3.msra.mxu1 %v5893_v31  ;;  %4824 = vmatprep.mubr.msk.f32.mxu1 %vm5231_vm0, %v5230_v1 }
0x3b7a   :  { %4818 = vmatprep.subr.mxu1 %v5230_v1 }
0x3b7b   :  { %v3041_v60 = vpop.permute.xlu0 %3040  ;;  %4819 = vmatpush3.msra.mxu1 %v5896_v32 }
0x3b7c   :  { %v5965_v14 = vadd.f32 %v3041_v60, %v3033_v13  ;;  %4820 = vmatprep.subr.mxu1 %v5230_v1 }
0x3b7d   :  { %4821 = vmatpush3.msra.mxu1 %v5900_v33 }
0x3b7e   :  { %5080 = vtanh.f32 %v5965_v14  ;;  %4822 = vmatprep.subr.mxu1 %v5230_v1 }
0x3b7f   :  { %4823 = vmatpush3.msra.mxu1 %v5904_v57 }
0x3b80   :  { %4838 = vmatprep.subr.mxu1 %v5230_v1 }
0x3b8b   :  { %v5081_v15 = vpop.eup %5080 }
0x3b8c   :  { %3046 = vrot.lane.b32.xlu0 %v5081_v15, %s5232_s20 }
0x3bfe   :  { %v3047_v16 = vpop.permute.xlu0 %3046 }
0x3bff   :  { %v3049_v17 = vmul.f32 %v5079_v7, %v3047_v16 }
0x3c01   :  { %3051 = vrot.lane.b32.xlu0 %v3049_v17, %s5233_s24 }
0x3c38   :  { %v3404_v20 = vpop.f32.mrf.mxu1 }
0x3c39   :  { %v3408_v21 = vadd.f32 %v3404_v20, %v3177_v19 }
0x3c3a   :  { %v4804_v22 = vpop.f32.mrf.mxu1 }
0x3c3b   :  { %5082 = vtanh.f32 %v3408_v21  ;;  %v4222_v27 = vmul.f32 -1.442695, %v3408_v21 }
0x3c3d   :  { %5084 = vpow2.f32 %v4222_v27  ;;  %v3192_v27 = vadd.f32 %v5948_v35, %v6000_v59 }
0x3c48   :  { %v5083_v23 = vpop.eup %5082 }
0x3c49   :  { %3418 = vrot.lane.b32.xlu1 %v5083_v23, %s5232_s20 }
0x3c4a   :  { %v5085_v28 = vpop.eup %5084 }
0x3c4b   :  { %v3412_v29 = vadd.f32 1.0, %v5085_v28 }
0x3c4d   :  { %5086 = vrcp.f32 %v3412_v29 }
0x3c5a   :  { %v5087_v42 = vpop.eup %5086 }
0x3c5b   :  { %v3416_v39 = vmul.f32 %v5087_v42, %v3323_v51 }
0x3c73   :  { %v3052_v24 = vpop.permute.xlu0 %3051 }
0x3c74   :  { %3054 = vst.msk [vmem:[#allocation2 + $0x38] sm:$0xff] %vm227_vm2, %v3052_v24  ;;  %3056 = vst.msk [vmem:[#allocation10 + $0x10] sm:$0xff] %vm227_vm2, %v3052_v24 }
0x3c7b   :  { %v3070_v26 = vld [vmem:[#allocation2 + $0x38] sm:$0xff] }
0x3c7c   :  { %4781 = vmatmul.mubr.msk.f32.gmra.mxu0 %vm227_vm2, %v3070_v26 }
0x3c7d   :  { %4813 = vmatprep.mubr.msk.f32.mxu0 %vm5231_vm0, %v5230_v1 }
0x3cbb   :  { %v3419_v30 = vpop.permute.xlu1 %3418 }
0x3cbc   :  { %v3421_v34 = vmul.f32 %v5087_v42, %v3419_v30 }
0x3cbe   :  { %3423 = vrot.lane.b32.xlu1 %v3421_v34, %s5233_s24 }
0x3d30   :  { %v3424_v40 = vpop.permute.xlu1 %3423 }
0x3d31   :  { %v3426_v63 = vadd.f32 %v3424_v40, %v3416_v39 }
0x3d33   :  { %5088 = vtanh.f32 %v3426_v63 }
0x3d3c   :  { %v6002_v3 = vpop.f32.mrf.mxu0 }
0x3d3e   :  { %v6004_v61 = vpop.f32.mrf.mxu0 }
0x3d40   :  { %v5089_v41 = vpop.eup %5088 }
0x3d41   :  { %3429 = vrot.lane.b32.xlu1 %v5089_v41, %s5232_s20 }
0x3db3   :  { %v3430_v46 = vpop.permute.xlu1 %3429 }
0x3db4   :  { %v3432_v47 = vmul.f32 %v5087_v42, %v3430_v46 }
0x3db6   :  { %3434 = vrot.lane.b32.xlu1 %v3432_v47, %s5233_s24 }
0x3e28   :  { %v3435_v48 = vpop.permute.xlu1 %3434 }
0x3e29   :  { %3437 = vst.msk [vmem:[#allocation2 + $0x8] sm:$0xff] %vm227_vm2, %v3435_v48  ;;  %4814 = vmatmul.mubr.msk.f32.vlgmr.msra.gmra.mxu0 %vm227_vm2, %v3435_v48 }
0x3e2a   :  { %4828 = vmatpush3.msra.mxu0 %v5893_v31  ;;  %4835 = vmatprep.mubr.msk.f32.mxu0 %vm5231_vm0, %v5230_v1 }
0x3e2b   :  { %4829 = vmatprep.subr.mxu0 %v5230_v1 }
0x3e2c   :  { %4830 = vmatpush3.msra.mxu0 %v5896_v32 }
0x3e2d   :  { %4831 = vmatprep.subr.mxu0 %v5230_v1 }
0x3e2e   :  { %4832 = vmatpush3.msra.mxu0 %v5900_v33 }
0x3e2f   :  { %4833 = vmatprep.subr.mxu0 %v5230_v1 }
0x3e30   :  { %4834 = vmatpush3.msra.mxu0 %v5904_v57 }
0x3e31   :  { %4849 = vmatprep.subr.mxu0 %v5230_v1 }
0x3ee9   :  { %v3507_v58 = vpop.f32.mrf.mxu0 }
0x3eea   :  { %v3511_v36 = vadd.f32 %v3507_v58, %v3182_v0 }
0x3eeb   :  { %v4815_v55 = vpop.f32.mrf.mxu0 }
0x3eec   :  { %5090 = vtanh.f32 %v3511_v36  ;;  %v4224_v56 = vmul.f32 -1.442695, %v3511_v36  ;;  %v3197_v36 = vadd.f32 %v5998_v52, %v5948_v35 }
0x3eee   :  { %5092 = vpow2.f32 %v4224_v56 }
0x3ef9   :  { %v5091_v53 = vpop.eup %5090 }
0x3efa   :  { %3521 = vrot.lane.b32.xlu0 %v5091_v53, %s5232_s20 }
0x3efb   :  { %v5093_v37 = vpop.eup %5092 }
0x3efc   :  { %v3515_v43 = vadd.f32 1.0, %v5093_v37 }
0x3efe   :  { %5094 = vrcp.f32 %v3515_v43 }
0x3f0b   :  { %v5095_v2 = vpop.eup %5094 }
0x3f0c   :  { %v3519_v12 = vmul.f32 %v5095_v2, %v3426_v63 }
0x3f6c   :  { %v3522_v38 = vpop.permute.xlu0 %3521 }
0x3f6d   :  { %v3524_v44 = vmul.f32 %v5095_v2, %v3522_v38 }
0x3f6f   :  { %3526 = vrot.lane.b32.xlu1 %v3524_v44, %s5233_s24 }
0x3fe1   :  { %v3527_v51 = vpop.permute.xlu1 %3526 }
0x3fe2   :  { %v3529_v62 = vadd.f32 %v3527_v51, %v3519_v12 }
0x3fe4   :  { %5096 = vtanh.f32 %v3529_v62 }
0x3ff1   :  { %v5097_v45 = vpop.eup %5096 }
0x3ff2   :  { %3532 = vrot.lane.b32.xlu0 %v5097_v45, %s5232_s20  ;;  %v3202_v45 = vadd.f32 %v5948_v35, %v6004_v61 }
0x4064   :  { %v3533_v4 = vpop.permute.xlu0 %3532 }
0x4065   :  { %v3535_v5 = vmul.f32 %v5095_v2, %v3533_v4 }
0x4067   :  { %3537 = vrot.lane.b32.xlu1 %v3535_v5, %s5233_s24 }
0x40d9   :  { %v3538_v54 = vpop.permute.xlu1 %3537 }
0x40da   :  { %3540 = vst.msk [vmem:[#allocation2 + $0x10] sm:$0xff] %vm227_vm2, %v3538_v54  ;;  %4825 = vmatmul.mubr.msk.f32.vlgmr.msra.gmra.mxu1 %vm227_vm2, %v3538_v54 }
0x40db   :  { %4839 = vmatpush3.msra.mxu1 %v5893_v31  ;;  %4846 = vmatprep.mubr.msk.f32.mxu1 %vm5231_vm0, %v5230_v1 }
0x40dc   :  { %4840 = vmatprep.subr.mxu1 %v5230_v1 }
0x40dd   :  { %4841 = vmatpush3.msra.mxu1 %v5896_v32 }
0x40de   :  { %4842 = vmatprep.subr.mxu1 %v5230_v1 }
0x40df   :  { %4843 = vmatpush3.msra.mxu1 %v5900_v33 }
0x40e0   :  { %4844 = vmatprep.subr.mxu1 %v5230_v1 }
0x40e1   :  { %4845 = vmatpush3.msra.mxu1 %v5904_v57 }
0x40e2   :  { %4860 = vmatprep.subr.mxu1 %v5230_v1 }
0x419a   :  { %v3610_v8 = vpop.f32.mrf.mxu1 }
0x419b   :  { %v3614_v7 = vadd.f32 %v3610_v8, %v3187_v6 }
0x419c   :  { %v4826_v10 = vpop.f32.mrf.mxu1 }
0x419d   :  { %5098 = vtanh.f32 %v3614_v7  ;;  %v4226_v11 = vmul.f32 -1.442695, %v3614_v7 }
0x419f   :  { %5100 = vpow2.f32 %v4226_v11 }
0x41aa   :  { %v5099_v9 = vpop.eup %5098 }
0x41ab   :  { %3624 = vrot.lane.b32.xlu0 %v5099_v9, %s5232_s20 }
0x41ac   :  { %v5101_v13 = vpop.eup %5100 }
0x41ad   :  { %v3618_v60 = vadd.f32 1.0, %v5101_v13 }
0x41af   :  { %5102 = vrcp.f32 %v3618_v60 }
0x41bc   :  { %v5103_v15 = vpop.eup %5102 }
0x41bd   :  { %v3622_v19 = vmul.f32 %v5103_v15, %v3529_v62 }
0x421d   :  { %v3625_v16 = vpop.permute.xlu0 %3624 }
0x421e   :  { %v3627_v17 = vmul.f32 %v5103_v15, %v3625_v16 }
0x4220   :  { %3629 = vrot.lane.b32.xlu1 %v3627_v17, %s5233_s24 }
0x4292   :  { %v3630_v20 = vpop.permute.xlu1 %3629 }
0x4293   :  { %v3632_v21 = vadd.f32 %v3630_v20, %v3622_v19 }
0x4295   :  { %5104 = vtanh.f32 %v3632_v21 }
0x42a2   :  { %v5105_v22 = vpop.eup %5104 }
0x42a3   :  { %3635 = vrot.lane.b32.xlu0 %v5105_v22, %s5232_s20 }
0x4315   :  { %v3636_v23 = vpop.permute.xlu0 %3635 }
0x4316   :  { %v3638_v24 = vmul.f32 %v5103_v15, %v3636_v23 }
0x4318   :  { %3640 = vrot.lane.b32.xlu1 %v3638_v24, %s5233_s24 }
0x438a   :  { %v3641_v26 = vpop.permute.xlu1 %3640 }
0x438b   :  { %3643 = vst.msk [vmem:[#allocation2 + $0x18] sm:$0xff] %vm227_vm2, %v3641_v26  ;;  %4836 = vmatmul.mubr.msk.f32.vlgmr.msra.gmra.mxu0 %vm227_vm2, %v3641_v26 }
0x438c   :  { %4850 = vmatpush3.msra.mxu0 %v5893_v31  ;;  %4857 = vmatprep.mubr.msk.f32.mxu0 %vm5231_vm0, %v5230_v1 }
0x438d   :  { %4851 = vmatprep.subr.mxu0 %v5230_v1 }
0x438e   :  { %4852 = vmatpush3.msra.mxu0 %v5896_v32 }
0x438f   :  { %4853 = vmatprep.subr.mxu0 %v5230_v1 }
0x4390   :  { %4854 = vmatpush3.msra.mxu0 %v5900_v33 }
0x4391   :  { %4855 = vmatprep.subr.mxu0 %v5230_v1 }
0x4392   :  { %4856 = vmatpush3.msra.mxu0 %v5904_v57 }
0x444b   :  { %v3713_v28 = vpop.f32.mrf.mxu0 }
0x444c   :  { %v3717_v29 = vadd.f32 %v3713_v28, %v3192_v27 }
0x444d   :  { %v4837_v42 = vpop.f32.mrf.mxu0 }
0x444e   :  { %5106 = vtanh.f32 %v3717_v29  ;;  %v4228_v34 = vmul.f32 -1.442695, %v3717_v29 }
0x4450   :  { %5108 = vpow2.f32 %v4228_v34 }
0x445b   :  { %v5107_v30 = vpop.eup %5106 }
0x445c   :  { %3727 = vrot.lane.b32.xlu0 %v5107_v30, %s5232_s20 }
0x445d   :  { %v5109_v39 = vpop.eup %5108 }
0x445e   :  { %v3721_v40 = vadd.f32 1.0, %v5109_v39 }
0x4460   :  { %5110 = vrcp.f32 %v3721_v40 }
0x446d   :  { %v5111_v63 = vpop.eup %5110 }
0x446e   :  { %v3725_v47 = vmul.f32 %v5111_v63, %v3632_v21  ;;  %v3207_v21 = vadd.f32 %v6002_v3, %v5948_v35  ;;  %v4235_v35 = vld [vmem:[%s6114_s7] ss:$0 sm:$0xff]  ;;  %s5235_s7 = smov [#allocation10]  }
0x44ce   :  { %v3728_v41 = vpop.permute.xlu0 %3727 }
0x44cf   :  { %v3730_v46 = vmul.f32 %v5111_v63, %v3728_v41 }
0x44d1   :  { %3732 = vrot.lane.b32.xlu1 %v3730_v46, %s5233_s24 }
0x4543   :  { %v3733_v48 = vpop.permute.xlu1 %3732 }
0x4544   :  { %v3735_v49 = vadd.f32 %v3733_v48, %v3725_v47 }
0x4546   :  { %5112 = vtanh.f32 %v3735_v49 }
0x4553   :  { %v5113_v50 = vpop.eup %5112 }
0x4554   :  { %3738 = vrot.lane.b32.xlu0 %v5113_v50, %s5232_s20 }
0x45c6   :  { %v3739_v59 = vpop.permute.xlu0 %3738 }
0x45c7   :  { %v3741_v0 = vmul.f32 %v5111_v63, %v3739_v59 }
0x45c9   :  { %3743 = vrot.lane.b32.xlu1 %v3741_v0, %s5233_s24 }
0x463b   :  { %v3744_v58 = vpop.permute.xlu1 %3743 }
0x463c   :  { %3746 = vst.msk [vmem:[#allocation2 + $0x20] sm:$0xff] %vm227_vm2, %v3744_v58  ;;  %4847 = vmatmul.mubr.msk.f32.vlgmr.msra.gmra.mxu1 %vm227_vm2, %v3744_v58 }
0x463d   :  { %4861 = vmatpush3.msra.mxu1 %v5893_v31  ;;  %4868 = vmatprep.mubr.msk.f32.mxu1 %vm5231_vm0, %v5230_v1 }
0x463e   :  { %4862 = vmatprep.subr.mxu1 %v5230_v1 }
0x463f   :  { %4863 = vmatpush3.msra.mxu1 %v5896_v32 }
0x4640   :  { %4864 = vmatprep.subr.mxu1 %v5230_v1 }
0x4641   :  { %4865 = vmatpush3.msra.mxu1 %v5900_v33 }
0x4642   :  { %4866 = vmatprep.subr.mxu1 %v5230_v1 }
0x4643   :  { %4867 = vmatpush3.msra.mxu1 %v5904_v57 }
0x46fc   :  { %v3816_v55 = vpop.f32.mrf.mxu1 }
0x46fd   :  { %v3820_v31 = vadd.f32 %v3816_v55, %v3197_v36 }
0x46fe   :  { %v4848_v53 = vpop.f32.mrf.mxu1 }
0x46ff   :  { %5114 = vtanh.f32 %v3820_v31  ;;  %v4230_v37 = vmul.f32 -1.442695, %v3820_v31 }
0x4701   :  { %5116 = vpow2.f32 %v4230_v37 }
0x470c   :  { %v5115_v56 = vpop.eup %5114 }
0x470d   :  { %3830 = vrot.lane.b32.xlu0 %v5115_v56, %s5232_s20 }
0x470e   :  { %v5117_v32 = vpop.eup %5116 }
0x470f   :  { %v3824_v43 = vadd.f32 1.0, %v5117_v32 }
0x4711   :  { %5118 = vrcp.f32 %v3824_v43 }
0x471e   :  { %v5119_v33 = vpop.eup %5118 }
0x471f   :  { %v3828_v57 = vmul.f32 %v5119_v33, %v3735_v49 }
0x477f   :  { %v3831_v2 = vpop.permute.xlu0 %3830 }
0x4780   :  { %v3833_v1 = vmul.f32 %v5119_v33, %v3831_v2 }
0x4782   :  { %3835 = vrot.lane.b32.xlu1 %v3833_v1, %s5233_s24 }
0x47f4   :  { %v3836_v38 = vpop.permute.xlu1 %3835 }
0x47f5   :  { %v3838_v52 = vadd.f32 %v3836_v38, %v3828_v57 }
0x47f7   :  { %5120 = vtanh.f32 %v3838_v52 }
0x4804   :  { %v5121_v44 = vpop.eup %5120 }
0x4805   :  { %3841 = vrot.lane.b32.xlu0 %v5121_v44, %s5232_s20 }
0x4877   :  { %v3842_v12 = vpop.permute.xlu0 %3841 }
0x4878   :  { %v3844_v51 = vmul.f32 %v5119_v33, %v3842_v12 }
0x487a   :  { %3846 = vrot.lane.b32.xlu1 %v3844_v51, %s5233_s24 }
0x48ec   :  { %v3847_v62 = vpop.permute.xlu1 %3846 }
0x48ed   :  { %3849 = vst.msk [vmem:[#allocation2 + $0x28] sm:$0xff] %vm227_vm2, %v3847_v62  ;;  %4858 = vmatmul.mubr.msk.f32.vlgmr.msra.gmra.mxu0 %vm227_vm2, %v3847_v62 }
0x49ad   :  { %v3919_v4 = vpop.f32.mrf.mxu0 }
0x49ae   :  { %v3923_v5 = vadd.f32 %v3919_v4, %v3202_v45 }
0x49af   :  { %v4859_v54 = vpop.f32.mrf.mxu0 }
0x49b0   :  { %5122 = vtanh.f32 %v3923_v5  ;;  %v4232_v8 = vmul.f32 -1.442695, %v3923_v5 }
0x49b2   :  { %5124 = vpow2.f32 %v4232_v8 }
0x49bd   :  { %v5123_v6 = vpop.eup %5122 }
0x49be   :  { %3933 = vrot.lane.b32.xlu0 %v5123_v6, %s5232_s20 }
0x49bf   :  { %v5125_v7 = vpop.eup %5124 }
0x49c0   :  { %v3927_v10 = vadd.f32 1.0, %v5125_v7 }
0x49c2   :  { %5126 = vrcp.f32 %v3927_v10 }
0x49cf   :  { %v5127_v9 = vpop.eup %5126 }
0x49d0   :  { %v3931_v60 = vmul.f32 %v5127_v9, %v3838_v52 }
0x4a30   :  { %v3934_v11 = vpop.permute.xlu0 %3933 }
0x4a31   :  { %v3936_v13 = vmul.f32 %v5127_v9, %v3934_v11 }
0x4a33   :  { %3938 = vrot.lane.b32.xlu1 %v3936_v13, %s5233_s24 }
0x4aa5   :  { %v3939_v15 = vpop.permute.xlu1 %3938 }
0x4aa6   :  { %v3941_v61 = vadd.f32 %v3939_v15, %v3931_v60 }
0x4aa8   :  { %5128 = vtanh.f32 %v3941_v61 }
0x4ab5   :  { %v5129_v16 = vpop.eup %5128 }
0x4ab6   :  { %3944 = vrot.lane.b32.xlu0 %v5129_v16, %s5232_s20 }
0x4b28   :  { %v3945_v17 = vpop.permute.xlu0 %3944 }
0x4b29   :  { %v3947_v19 = vmul.f32 %v5127_v9, %v3945_v17 }
0x4b2b   :  { %3949 = vrot.lane.b32.xlu1 %v3947_v19, %s5233_s24 }
0x4b9d   :  { %v3950_v20 = vpop.permute.xlu1 %3949 }
0x4b9e   :  { %3952 = vst.msk [vmem:[#allocation2 + $0x30] sm:$0xff] %vm227_vm2, %v3950_v20  ;;  %4869 = vmatmul.mubr.msk.f32.vlgmr.msra.gmra.mxu1 %vm227_vm2, %v3950_v20 }
0x4c5e   :  { %v4022_v22 = vpop.f32.mrf.mxu1 }
0x4c5f   :  { %v4026_v23 = vadd.f32 %v4022_v22, %v3207_v21 }
0x4c60   :  { %v4870_v24 = vpop.f32.mrf.mxu1 }
0x4c61   :  { %5130 = vtanh.f32 %v4026_v23  ;;  %v4234_v27 = vmul.f32 -1.442695, %v4026_v23 }
0x4c63   :  { %5132 = vpow2.f32 %v4234_v27 }
0x4c6e   :  { %v5131_v26 = vpop.eup %5130 }
0x4c6f   :  { %4036 = vrot.lane.b32.xlu0 %v5131_v26, %s5232_s20 }
0x4c70   :  { %v5133_v28 = vpop.eup %5132 }
0x4c71   :  { %v4030_v29 = vadd.f32 1.0, %v5133_v28 }
0x4c73   :  { %5134 = vrcp.f32 %v4030_v29 }
0x4c80   :  { %v5135_v42 = vpop.eup %5134 }
0x4c81   :  { %v4034_v3 = vmul.f32 %v5135_v42, %v3941_v61 }
0x4ce1   :  { %v4037_v30 = vpop.permute.xlu0 %4036 }
0x4ce2   :  { %v4039_v34 = vmul.f32 %v5135_v42, %v4037_v30 }
0x4ce4   :  { %4041 = vrot.lane.b32.xlu1 %v4039_v34, %s5233_s24 }
0x4ce8   :  { %4070 = vrot.lane.b32.xlu1 %v4235_v35, %s5234_s3 }
0x4d56   :  { %v4042_v39 = vpop.permute.xlu1 %4041 }
0x4d57   :  { %v4044_v40 = vadd.f32 %v4042_v39, %v4034_v3 }
0x4d59   :  { %5136 = vtanh.f32 %v4044_v40 }
0x4d5a   :  { %v4071_v46 = vpop.permute.xlu1 %4070 }
0x4d66   :  { %v5137_v63 = vpop.eup %5136 }
0x4d67   :  { %4047 = vrot.lane.b32.xlu0 %v5137_v63, %s5232_s20  ;;  %s4098_s20 = sshll.u32 %s5235_s7, 4  ;;  %s4099_s20 = int_to_ptr.vmem [resolvable:$true] %s4098_s20 }
0x4d68   :  { %s5178_s15 = scalar_lea.vmem %s4099_s20, 512  ;;  %p5183_p11 = scmp.lt.s32.totalorder %s4099_s20, %s4099_s20 }
0x4d69   :  { %p5179_p10 = scmp.ne.s32.totalorder %s4099_s20, %s5178_s15  ;;  %p5184_p12 = scmp.lt.s32.totalorder %s5178_s15, %s5178_s15 }
0x4d6b   :  { %p5185_p13 = por %p5184_p12, %p5183_p11 }
0x4d6d   :  { %p5186_p0 = pnand %p5185_p13, %p5179_p10 }
0x4dd9   :  { %v4048_v41 = vpop.permute.xlu0 %4047 }
0x4dda   :  { %v4050_v47 = vmul.f32 %v5135_v42, %v4048_v41 }
0x4ddc   :  { %v4073_v48 = vmul.f32 %v4071_v46, %v4050_v47 }
0x4dde   :  { %4075 = vrot.lane.b32.xlu0 %v4073_v48, %s5233_s24 }
0x4de2   :  { %1058 = vrot.lane.b32.xlu0 %v5591_v25, %s5234_s3 }
0x4de6   :  { %2057 = vrot.lane.b32.xlu0 %v5778_v18, %s5234_s3 }
0x4dea   :  { %3058 = vrot.lane.b32.xlu0 %v5965_v14, %s5234_s3 }
0x4dee   :  { %4052 = vrot.lane.b32.xlu0 %v4050_v47, %s5233_s24  ;;  %s4110_s24 = sshll.u32 %s5236_s14, 4  ;;  %s4111_s24 = int_to_ptr.vmem [resolvable:$true] %s4110_s24 }
0x4df2   :  { %4059 = vrot.lane.b32.xlu0 %v4044_v40, %s5234_s3 }
0x4e50   :  { %v4076_v49 = vpop.permute.xlu0 %4075 }
0x4e51   :  { %v4078_v50 = vsel %vm227_vm2, %v4076_v49, 0.0 }
0x4e52   :  { %4079 = vadd.xlane.f32.xlu1 %v4078_v50 }
0x4e54   :  { %v1059_v59 = vpop.permute.xlu0 %1058 }
0x4e55   :  { %1061 = vst.msk [vmem:[#allocation11] sm:$0xff] %vm227_vm2, %v1059_v59 }
0x4e58   :  { %v2058_v0 = vpop.permute.xlu0 %2057 }
0x4e59   :  { %2061 = vst.msk [vmem:[#allocation11 + $0x8] sm:$0xff] %vm227_vm2, %v2058_v0 }
0x4e5c   :  { %v3059_v58 = vpop.permute.xlu0 %3058 }
0x4e5d   :  { %3062 = vst.msk [vmem:[#allocation11 + $0x10] sm:$0xff] %vm227_vm2, %v3059_v58 }
0x4e60   :  { %v4053_v25 = vpop.permute.xlu0 %4052 }
0x4e61   :  { %4055 = vst.msk [vmem:[#allocation2 + $0x38] sm:$0xff] %vm227_vm2, %v4053_v25  ;;  %4057 = vst.msk [vmem:[#allocation10 + $0x18] sm:$0xff] %vm227_vm2, %v4053_v25 }
0x4e62   :  { %5189 = shalt.err (!%p5186_p0)
}
0x4e63   :  { %4104 = dma.vmem_to_hbm [thread:$0]  %s4099_s20, 512, %s6117_s10, [#allocation7], %s5227_s22, %s5227_s22, %s5228_s23  }
0x4e64   :  { %v4060_v18 = vpop.permute.xlu0 %4059  ;;  %s5198_s1 = scalar_lea.vmem %s4111_s24, 512  ;;  %p5203_p2 = scmp.lt.s32.totalorder %s4111_s24, %s4111_s24 }
0x4e65   :  { %4063 = vst.msk [vmem:[#allocation11 + $0x18] sm:$0xff] %vm227_vm2, %v4060_v18  ;;  %p5199_p1 = scmp.ne.s32.totalorder %s4111_s24, %s5198_s1  ;;  %p5204_p3 = scmp.lt.s32.totalorder %s5198_s1, %s5198_s1 }
0x4e67   :  { %p5205_p4 = por %p5204_p3, %p5203_p2 }
0x4e69   :  { %p5206_p5 = pnand %p5205_p4, %p5199_p1 }
0x4e6b   :  { %5209 = shalt.err (!%p5206_p5)
}
0x4e6c   :  { %4116 = dma.vmem_to_hbm [thread:$0]  %s4111_s24, 512, %s6118_s11, [#allocation12], %s5227_s22, %s5227_s22, %s5228_s23   ;;  %v4236_v14 = vld [vmem:[#allocation4] ss:$0 sm:$0xff]  ;;  %vm4089_vm3 = vcmask 7168  }
0x4edb   :  { %v4080_v36 = vpop.xlane.xlu1 %4079 }
0x4edc   :  { %v4088_v55 = vadd.f32 %v4236_v14, %v4080_v36 }
0x4ede   :  { %4090 = vst.msk [vmem:[%s6116_s9] sm:$0xff] %vm4089_vm3, %v4088_v55 }
0x4edf   :  { %5222 = dma.done.wait [#allocation7], 512  }
0x4ee0   :  { %5223 = vsyncadd [#allocation7], 4294966784 }
0x4ee1   :  { %5224 = dma.done.wait [#allocation12], 512  }
0x4ee2   :  { %5225 = vsyncadd [#allocation12], 4294966784 }
0x4ee3   :  { %4125 = vsyncpa [#allocation6], 1 }
0x4ee4   :  { %4126 = vsyncpa [#allocation9], 1 }
0x4ee5   :  { %4127 = vsyncpa [#allocation7], 1 }
0x4ee6   :  { %4128 = vsyncpa [#allocation12], 1 }

</bundles_post_ra>
